<compile_context>
chip_gen: v7x
topology: tpu7x:2x2x1
jax: 0.10.0
libtpu: 0.0.40
codegen_flags: <defaults>
</compile_context>

<pallas_src>
import numpy as np
import jax
import jax.numpy as jnp
from jax import lax
from jax.experimental import pallas as pl
from jax.experimental.pallas import tpu as pltpu

HIDDEN = 32
IN_FEAT = 3
NUM_LAYERS = 4


def lstm_kernel(x_ref, mask_ref, wih_ref, whh_ref, b_ref, wlin_ref, blin_ref,
                out_ref, seq_ref, proj_ref):
    # x_ref   : (T, B, 32)    input features, zero-padded from 3 -> 32
    # mask_ref: (T, B, 32)    1.0 where t < length[b], else 0.0 (lane-dense)
    # wih_ref : (4, 32, 128)  per-layer input->gates weights (gate order i,f,o,g)
    # whh_ref : (4, 32, 128)  per-layer hidden->gates weights (same gate order)
    # b_ref   : (4, 1, 128)   per-layer (b_ih + b_hh), same gate order
    # wlin_ref: (1, 32)       final linear weight (row vector)
    # blin_ref: (1,) in SMEM  final linear bias (scalar)
    # out_ref : (T, B)
    # seq_ref : (T, B, 32)    VMEM scratch: current layer's output sequence
    # proj_ref: (T, B, 128)   VMEM scratch: hoisted input projection
    T = x_ref.shape[0]
    B = x_ref.shape[1]
    H = HIDDEN

    for layer in range(NUM_LAYERS):
        wih = wih_ref[layer]       # (32, 128)
        whh = whh_ref[layer]       # (32, 128)
        bias = b_ref[layer]        # (1, 128)

        # Hoist the input projection (+bias) out of the recurrent loop:
        # one (T,B,32)x(32,128) MXU matmul per layer, off the critical path.
        layer_in = x_ref[...] if layer == 0 else seq_ref[...]
        proj_ref[...] = lax.dot_general(
            layer_in, wih, (((2,), (0,)), ((), ())),
            preferred_element_type=jnp.float32) + bias

        def step(t, carry):
            h, c = carry
            gates = proj_ref[t] + jnp.dot(h, whh,
                                          preferred_element_type=jnp.float32)  # (B,128)
            # gate lanes are packed [i, f, o | g]: one full-width sigmoid and
            # one full-width tanh cover all gates (2 EUP pushes).
            sig = jax.nn.sigmoid(gates)
            tnh = jnp.tanh(gates)
            i_g = sig[:, 0 * H:1 * H]
            f_g = sig[:, 1 * H:2 * H]
            o_g = sig[:, 2 * H:3 * H]
            g_g = tnh[:, 3 * H:4 * H]
            c_new = f_g * c + i_g * g_g
            h_new = o_g * jnp.tanh(c_new)
            # packed-sequence semantics: freeze state past length, emit zeros
            m = mask_ref[t]                    # (B, 32), 0/1 in f32
            im = 1.0 - m
            c = m * c_new + im * c
            h = m * h_new + im * h
            seq_ref[t] = m * h_new
            return h, c

        h0 = jnp.zeros((B, H), jnp.float32)
        c0 = jnp.zeros((B, H), jnp.float32)
        lax.fori_loop(0, T, step, (h0, c0), unroll=True)

    # Final Linear(32 -> 1): VPU multiply + lane reduce, lane-dense (T, B) output.
    y = seq_ref[...]                           # (T, B, 32)
    w = wlin_ref[...]                          # (1, 32)
    lin = jnp.sum(y * w, axis=-1)              # (T, B)
    out_ref[...] = lin + blin_ref[0]


def lstm_network_forward(x, lengths, params):
    """x: (B, T, 3) float32, lengths: host int array (B,). Returns (B, T_out, 1)."""
    B, T, F = x.shape
    assert F == IN_FEAT
    wih, whh, b, wlin, blin = params

    # pad features 3 -> 32 (matching zero-padded columns in layer-0 W_ih)
    xp = jnp.concatenate([x, jnp.zeros((B, T, HIDDEN - F), jnp.float32)], axis=-1)
    xp = jnp.transpose(xp, (1, 0, 2))                        # (T, B, 32)

    lens = jnp.asarray(np.asarray(lengths), jnp.int32)       # (B,)
    t_idx = jnp.arange(T, dtype=jnp.int32)[:, None]          # (T, 1)
    mask2d = (t_idx < lens[None, :]).astype(jnp.float32)     # (T, B)
    mask = jnp.broadcast_to(mask2d[:, :, None], (T, B, HIDDEN))  # lane-dense

    vmem = pl.BlockSpec(memory_space=pltpu.MemorySpace.VMEM)
    smem = pl.BlockSpec(memory_space=pltpu.MemorySpace.SMEM)
    out = pl.pallas_call(
        lstm_kernel,
        out_shape=jax.ShapeDtypeStruct((T, B), jnp.float32),
        in_specs=[vmem, vmem, vmem, vmem, vmem, vmem, smem],
        out_specs=vmem,
        scratch_shapes=[
            pltpu.VMEM((T, B, HIDDEN), jnp.float32),      # layer output sequence
            pltpu.VMEM((T, B, 4 * HIDDEN), jnp.float32),  # hoisted input projection
        ],
    )(xp, mask, wih, whh, b, wlin, blin)

    out = jnp.transpose(out, (1, 0))[:, :, None]             # (B, T, 1)
    t_out = int(np.max(np.asarray(lengths)))                 # pad_packed_sequence length
    return out[:, :t_out, :]


def init_params(key):
    """Deterministic params matching nn.LSTM(3,32,num_layers=4)+Linear(32,1) shapes.

    Gate lanes are repacked from PyTorch's [i, f, g, o] to [i, f, o, g] so the
    kernel can activate all sigmoid gates with one full-width sigmoid and the
    cell gate with one full-width tanh.
    """
    k = 1.0 / np.sqrt(HIDDEN)
    keys = jax.random.split(key, 4 * NUM_LAYERS + 2)
    perm = np.concatenate([np.arange(0, HIDDEN),
                           np.arange(HIDDEN, 2 * HIDDEN),
                           np.arange(3 * HIDDEN, 4 * HIDDEN),
                           np.arange(2 * HIDDEN, 3 * HIDDEN)])
    wih_list, whh_list, b_list = [], [], []
    ki = 0
    for layer in range(NUM_LAYERS):
        in_sz = IN_FEAT if layer == 0 else HIDDEN
        w_ih = jax.random.uniform(keys[ki], (4 * HIDDEN, in_sz), jnp.float32, -k, k); ki += 1
        w_hh = jax.random.uniform(keys[ki], (4 * HIDDEN, HIDDEN), jnp.float32, -k, k); ki += 1
        b_ih = jax.random.uniform(keys[ki], (4 * HIDDEN,), jnp.float32, -k, k); ki += 1
        b_hh = jax.random.uniform(keys[ki], (4 * HIDDEN,), jnp.float32, -k, k); ki += 1
        w_ih = w_ih[perm]                      # reorder gates -> [i, f, o, g]
        w_hh = w_hh[perm]
        bias = (b_ih + b_hh)[perm]
        if layer == 0:
            # zero-pad the 3 input columns to 32 (paired with zero-padded x features)
            w_ih = jnp.concatenate(
                [w_ih, jnp.zeros((4 * HIDDEN, HIDDEN - IN_FEAT), jnp.float32)], axis=1)
        wih_list.append(w_ih.T)                # (32, 128)
        whh_list.append(w_hh.T)                # (32, 128)
        b_list.append(bias[None, :])           # (1, 128)
    wih = jnp.stack(wih_list)                  # (4, 32, 128)
    whh = jnp.stack(whh_list)                  # (4, 32, 128)
    b = jnp.stack(b_list)                      # (4, 1, 128)
    kl = 1.0 / np.sqrt(HIDDEN)
    w_lin = jax.random.uniform(keys[ki], (1, HIDDEN), jnp.float32, -kl, kl); ki += 1
    b_lin = jax.random.uniform(keys[ki], (1,), jnp.float32, -kl, kl)
    return wih, whh, b, w_lin, b_lin


def reference_forward(x, lengths, params):
    """Pure-JAX reference of the same semantics (same gate packing), for sanity check."""
    wih, whh, b, wlin, blin = params
    B, T, F = x.shape
    xp = jnp.concatenate([x, jnp.zeros((B, T, HIDDEN - F), jnp.float32)], axis=-1)
    seq = jnp.transpose(xp, (1, 0, 2))
    lens = jnp.asarray(np.asarray(lengths), jnp.int32)
    mask = (jnp.arange(T)[:, None] < lens[None, :]).astype(jnp.float32)[..., None]
    H = HIDDEN
    for l in range(NUM_LAYERS):
        h = jnp.zeros((B, H)); c = jnp.zeros((B, H))
        outs = []
        for t in range(T):
            gates = seq[t] @ wih[l] + h @ whh[l] + b[l]
            i_g = jax.nn.sigmoid(gates[:, 0 * H:1 * H])
            f_g = jax.nn.sigmoid(gates[:, 1 * H:2 * H])
            o_g = jax.nn.sigmoid(gates[:, 2 * H:3 * H])
            g_g = jnp.tanh(gates[:, 3 * H:4 * H])
            c_new = f_g * c + i_g * g_g
            h_new = o_g * jnp.tanh(c_new)
            m = mask[t]
            c = m * c_new + (1 - m) * c
            h = m * h_new + (1 - m) * h
            outs.append(m * h_new)
        seq = jnp.stack(outs)
    out = jnp.einsum('tbh,h->tb', seq, wlin[0]) + blin[0]     # (T, B)
    out = jnp.transpose(out)[:, :, None]                      # (B, T, 1)
    t_out = int(np.max(np.asarray(lengths)))
    return out[:, :t_out, :]


if __name__ == "__main__":
    key = jax.random.PRNGKey(0)
    kx, kp = jax.random.split(key)

    B, T = 2, 8
    x = jax.random.normal(kx, (B, T, IN_FEAT), jnp.float32)
    lengths = np.array([8, 5], dtype=np.int64)     # lengths stay on host, like PyTorch

    params = init_params(kp)

    out = lstm_network_forward(x, lengths, params)
    out = jax.block_until_ready(out)

    ref = reference_forward(x, lengths, params)
    assert out.shape == (B, int(np.max(lengths)), 1), out.shape
    np.testing.assert_allclose(np.asarray(out), np.asarray(ref), rtol=1e-4, atol=2e-5)

    print("KERNEL_OK")
</pallas_src>

<mosaic_0001>
module attributes {stable_mosaic.version = 11 : i64} {
  func.func @lstm_kernel(%arg0: memref<8x2x32xf32, #tpu.memory_space<vmem>>, %arg1: memref<8x2x32xf32, #tpu.memory_space<vmem>>, %arg2: memref<4x32x128xf32, #tpu.memory_space<vmem>>, %arg3: memref<4x32x128xf32, #tpu.memory_space<vmem>>, %arg4: memref<4x1x128xf32, #tpu.memory_space<vmem>>, %arg5: memref<1x32xf32, #tpu.memory_space<vmem>>, %arg6: memref<1xf32, #tpu.memory_space<smem>>, %arg7: memref<8x2xf32, #tpu.memory_space<vmem>>, %arg8: memref<8x2x32xf32, #tpu.memory_space<vmem>>, %arg9: memref<8x2x128xf32, #tpu.memory_space<vmem>>) attributes {dimension_semantics = [], scalar_prefetch = 0 : i64, scratch_operands = 2 : i64, tpu.core_type = #tpu.core_type<tc>} {
    %c0 = arith.constant 0 : index
    %c0_0 = arith.constant 0 : index
    %c0_1 = arith.constant 0 : index
    %0 = vector.load %arg2[%c0, %c0_0, %c0_1] : memref<4x32x128xf32, #tpu.memory_space<vmem>>, vector<1x32x128xf32>
    %1 = vector.shape_cast %0 : vector<1x32x128xf32> to vector<32x128xf32>
    %c0_2 = arith.constant 0 : index
    %c0_3 = arith.constant 0 : index
    %c0_4 = arith.constant 0 : index
    %2 = vector.load %arg3[%c0_2, %c0_3, %c0_4] : memref<4x32x128xf32, #tpu.memory_space<vmem>>, vector<1x32x128xf32>
    %3 = vector.shape_cast %2 : vector<1x32x128xf32> to vector<32x128xf32>
    %c0_5 = arith.constant 0 : index
    %c0_6 = arith.constant 0 : index
    %c0_7 = arith.constant 0 : index
    %4 = vector.load %arg4[%c0_5, %c0_6, %c0_7] : memref<4x1x128xf32, #tpu.memory_space<vmem>>, vector<1x1x128xf32>
    %5 = vector.shape_cast %4 : vector<1x1x128xf32> to vector<1x128xf32>
    %c0_8 = arith.constant 0 : index
    %c0_9 = arith.constant 0 : index
    %c0_10 = arith.constant 0 : index
    %6 = vector.load %arg0[%c0_8, %c0_9, %c0_10] : memref<8x2x32xf32, #tpu.memory_space<vmem>>, vector<8x2x32xf32>
    %cst = arith.constant dense<0.000000e+00> : vector<8x2x128xf32>
    %7 = tpu.matmul %6, %1, %cst {dimension_numbers = #tpu.dot_dimension_numbers<[2], [0], [0, 1], [1], [0, 0, 0, 1, 1, 1], [], []>} : vector<8x2x32xf32>, vector<32x128xf32>, vector<8x2x128xf32> -> vector<8x2x128xf32>
    %8 = vector.shape_cast %5 : vector<1x128xf32> to vector<1x1x128xf32>
    %9 = vector.broadcast %8 : vector<1x1x128xf32> to vector<8x2x128xf32>
    %10 = arith.addf %7, %9 : vector<8x2x128xf32>
    %c0_11 = arith.constant 0 : index
    %c0_12 = arith.constant 0 : index
    %c0_13 = arith.constant 0 : index
    %11 = vector.load %arg9[%c0_11, %c0_12, %c0_13] : memref<8x2x128xf32, #tpu.memory_space<vmem>>, vector<8x2x128xf32>
    tpu.vector_store %arg9[%c0_11, %c0_12, %c0_13], %10 {strides = array<i32>} : memref<8x2x128xf32, #tpu.memory_space<vmem>>, vector<8x2x128xf32>,
    %cst_14 = arith.constant 0.000000e+00 : f32
    %12 = vector.broadcast %cst_14 : f32 to vector<2x32xf32>
    %cst_15 = arith.constant 0.000000e+00 : f32
    %13 = vector.broadcast %cst_15 : f32 to vector<2x32xf32>
    %c0_i32 = arith.constant 0 : i32
    %14 = arith.index_cast %c0_i32 : i32 to index
    %c0_16 = arith.constant 0 : index
    %c0_17 = arith.constant 0 : index
    %15 = vector.load %arg9[%14, %c0_16, %c0_17] : memref<8x2x128xf32, #tpu.memory_space<vmem>>, vector<1x2x128xf32>
    %16 = vector.shape_cast %15 : vector<1x2x128xf32> to vector<2x128xf32>
    %cst_18 = arith.constant dense<0.000000e+00> : vector<2x128xf32>
    %17 = tpu.matmul %12, %3, %cst_18 {dimension_numbers = #tpu.dot_dimension_numbers<[1], [0], [0], [1], [0, 0, 1, 1], [], []>} : vector<2x32xf32>, vector<32x128xf32>, vector<2x128xf32> -> vector<2x128xf32>
    %18 = arith.addf %16, %17 : vector<2x128xf32>
    %19 = arith.negf %18 : vector<2x128xf32>
    %20 = math.exp %19 : vector<2x128xf32>
    %cst_19 = arith.constant 1.000000e+00 : f32
    %21 = vector.broadcast %cst_19 : f32 to vector<2x128xf32>
    %22 = arith.addf %21, %20 : vector<2x128xf32>
    %23 = arith.divf %21, %22 : vector<2x128xf32>
    %24 = math.tanh %18 : vector<2x128xf32>
    %25 = vector.extract_strided_slice %23 {offsets = [0, 0], sizes = [2, 32], strides = [1, 1]} : vector<2x128xf32> to vector<2x32xf32>
    %26 = vector.extract_strided_slice %23 {offsets = [0, 32], sizes = [2, 32], strides = [1, 1]} : vector<2x128xf32> to vector<2x32xf32>
    %27 = vector.extract_strided_slice %23 {offsets = [0, 64], sizes = [2, 32], strides = [1, 1]} : vector<2x128xf32> to vector<2x32xf32>
    %28 = vector.extract_strided_slice %24 {offsets = [0, 96], sizes = [2, 32], strides = [1, 1]} : vector<2x128xf32> to vector<2x32xf32>
    %29 = arith.mulf %26, %13 : vector<2x32xf32>
    %30 = arith.mulf %25, %28 : vector<2x32xf32>
    %31 = arith.addf %29, %30 : vector<2x32xf32>
    %32 = math.tanh %31 : vector<2x32xf32>
    %33 = arith.mulf %27, %32 : vector<2x32xf32>
    %34 = arith.index_cast %c0_i32 : i32 to index
    %c0_20 = arith.constant 0 : index
    %c0_21 = arith.constant 0 : index
    %35 = vector.load %arg1[%34, %c0_20, %c0_21] : memref<8x2x32xf32, #tpu.memory_space<vmem>>, vector<1x2x32xf32>
    %36 = vector.shape_cast %35 : vector<1x2x32xf32> to vector<2x32xf32>
    %cst_22 = arith.constant 1.000000e+00 : f32
    %37 = vector.broadcast %cst_22 : f32 to vector<2x32xf32>
    %38 = arith.subf %37, %36 : vector<2x32xf32>
    %39 = arith.mulf %36, %31 : vector<2x32xf32>
    %40 = arith.mulf %38, %13 : vector<2x32xf32>
    %41 = arith.addf %39, %40 : vector<2x32xf32>
    %42 = arith.mulf %36, %33 : vector<2x32xf32>
    %43 = arith.mulf %38, %12 : vector<2x32xf32>
    %44 = arith.addf %42, %43 : vector<2x32xf32>
    %45 = arith.mulf %36, %33 : vector<2x32xf32>
    %46 = arith.index_cast %c0_i32 : i32 to index
    %c0_23 = arith.constant 0 : index
    %c0_24 = arith.constant 0 : index
    %47 = vector.load %arg8[%46, %c0_23, %c0_24] : memref<8x2x32xf32, #tpu.memory_space<vmem>>, vector<1x2x32xf32>
    %48 = vector.shape_cast %47 : vector<1x2x32xf32> to vector<2x32xf32>
    %49 = vector.shape_cast %45 : vector<2x32xf32> to vector<1x2x32xf32>
    tpu.vector_store %arg8[%46, %c0_23, %c0_24], %49 {strides = array<i32>} : memref<8x2x32xf32, #tpu.memory_space<vmem>>, vector<1x2x32xf32>,
    %c1_i32 = arith.constant 1 : i32
    %50 = arith.index_cast %c1_i32 : i32 to index
    %c0_25 = arith.constant 0 : index
    %c0_26 = arith.constant 0 : index
    %51 = vector.load %arg9[%50, %c0_25, %c0_26] : memref<8x2x128xf32, #tpu.memory_space<vmem>>, vector<1x2x128xf32>
    %52 = vector.shape_cast %51 : vector<1x2x128xf32> to vector<2x128xf32>
    %cst_27 = arith.constant dense<0.000000e+00> : vector<2x128xf32>
    %53 = tpu.matmul %44, %3, %cst_27 {dimension_numbers = #tpu.dot_dimension_numbers<[1], [0], [0], [1], [0, 0, 1, 1], [], []>} : vector<2x32xf32>, vector<32x128xf32>, vector<2x128xf32> -> vector<2x128xf32>
    %54 = arith.addf %52, %53 : vector<2x128xf32>
    %55 = arith.negf %54 : vector<2x128xf32>
    %56 = math.exp %55 : vector<2x128xf32>
    %cst_28 = arith.constant 1.000000e+00 : f32
    %57 = vector.broadcast %cst_28 : f32 to vector<2x128xf32>
    %58 = arith.addf %57, %56 : vector<2x128xf32>
    %59 = arith.divf %57, %58 : vector<2x128xf32>
    %60 = math.tanh %54 : vector<2x128xf32>
    %61 = vector.extract_strided_slice %59 {offsets = [0, 0], sizes = [2, 32], strides = [1, 1]} : vector<2x128xf32> to vector<2x32xf32>
    %62 = vector.extract_strided_slice %59 {offsets = [0, 32], sizes = [2, 32], strides = [1, 1]} : vector<2x128xf32> to vector<2x32xf32>
    %63 = vector.extract_strided_slice %59 {offsets = [0, 64], sizes = [2, 32], strides = [1, 1]} : vector<2x128xf32> to vector<2x32xf32>
    %64 = vector.extract_strided_slice %60 {offsets = [0, 96], sizes = [2, 32], strides = [1, 1]} : vector<2x128xf32> to vector<2x32xf32>
    %65 = arith.mulf %62, %41 : vector<2x32xf32>
    %66 = arith.mulf %61, %64 : vector<2x32xf32>
    %67 = arith.addf %65, %66 : vector<2x32xf32>
    %68 = math.tanh %67 : vector<2x32xf32>
    %69 = arith.mulf %63, %68 : vector<2x32xf32>
    %70 = arith.index_cast %c1_i32 : i32 to index
    %c0_29 = arith.constant 0 : index
    %c0_30 = arith.constant 0 : index
    %71 = vector.load %arg1[%70, %c0_29, %c0_30] : memref<8x2x32xf32, #tpu.memory_space<vmem>>, vector<1x2x32xf32>
    %72 = vector.shape_cast %71 : vector<1x2x32xf32> to vector<2x32xf32>
    %cst_31 = arith.constant 1.000000e+00 : f32
    %73 = vector.broadcast %cst_31 : f32 to vector<2x32xf32>
    %74 = arith.subf %73, %72 : vector<2x32xf32>
    %75 = arith.mulf %72, %67 : vector<2x32xf32>
    %76 = arith.mulf %74, %41 : vector<2x32xf32>
    %77 = arith.addf %75, %76 : vector<2x32xf32>
    %78 = arith.mulf %72, %69 : vector<2x32xf32>
    %79 = arith.mulf %74, %44 : vector<2x32xf32>
    %80 = arith.addf %78, %79 : vector<2x32xf32>
    %81 = arith.mulf %72, %69 : vector<2x32xf32>
    %82 = arith.index_cast %c1_i32 : i32 to index
    %c0_32 = arith.constant 0 : index
    %c0_33 = arith.constant 0 : index
    %83 = vector.load %arg8[%82, %c0_32, %c0_33] : memref<8x2x32xf32, #tpu.memory_space<vmem>>, vector<1x2x32xf32>
    %84 = vector.shape_cast %83 : vector<1x2x32xf32> to vector<2x32xf32>
    %85 = vector.shape_cast %81 : vector<2x32xf32> to vector<1x2x32xf32>
    tpu.vector_store %arg8[%82, %c0_32, %c0_33], %85 {strides = array<i32>} : memref<8x2x32xf32, #tpu.memory_space<vmem>>, vector<1x2x32xf32>,
    %c2_i32 = arith.constant 2 : i32
    %86 = arith.index_cast %c2_i32 : i32 to index
    %c0_34 = arith.constant 0 : index
    %c0_35 = arith.constant 0 : index
    %87 = vector.load %arg9[%86, %c0_34, %c0_35] : memref<8x2x128xf32, #tpu.memory_space<vmem>>, vector<1x2x128xf32>
    %88 = vector.shape_cast %87 : vector<1x2x128xf32> to vector<2x128xf32>
    %cst_36 = arith.constant dense<0.000000e+00> : vector<2x128xf32>
    %89 = tpu.matmul %80, %3, %cst_36 {dimension_numbers = #tpu.dot_dimension_numbers<[1], [0], [0], [1], [0, 0, 1, 1], [], []>} : vector<2x32xf32>, vector<32x128xf32>, vector<2x128xf32> -> vector<2x128xf32>
    %90 = arith.addf %88, %89 : vector<2x128xf32>
    %91 = arith.negf %90 : vector<2x128xf32>
    %92 = math.exp %91 : vector<2x128xf32>
    %cst_37 = arith.constant 1.000000e+00 : f32
    %93 = vector.broadcast %cst_37 : f32 to vector<2x128xf32>
    %94 = arith.addf %93, %92 : vector<2x128xf32>
    %95 = arith.divf %93, %94 : vector<2x128xf32>
    %96 = math.tanh %90 : vector<2x128xf32>
    %97 = vector.extract_strided_slice %95 {offsets = [0, 0], sizes = [2, 32], strides = [1, 1]} : vector<2x128xf32> to vector<2x32xf32>
    %98 = vector.extract_strided_slice %95 {offsets = [0, 32], sizes = [2, 32], strides = [1, 1]} : vector<2x128xf32> to vector<2x32xf32>
    %99 = vector.extract_strided_slice %95 {offsets = [0, 64], sizes = [2, 32], strides = [1, 1]} : vector<2x128xf32> to vector<2x32xf32>
    %100 = vector.extract_strided_slice %96 {offsets = [0, 96], sizes = [2, 32], strides = [1, 1]} : vector<2x128xf32> to vector<2x32xf32>
    %101 = arith.mulf %98, %77 : vector<2x32xf32>
    %102 = arith.mulf %97, %100 : vector<2x32xf32>
    %103 = arith.addf %101, %102 : vector<2x32xf32>
    %104 = math.tanh %103 : vector<2x32xf32>
    %105 = arith.mulf %99, %104 : vector<2x32xf32>
    %106 = arith.index_cast %c2_i32 : i32 to index
    %c0_38 = arith.constant 0 : index
    %c0_39 = arith.constant 0 : index
    %107 = vector.load %arg1[%106, %c0_38, %c0_39] : memref<8x2x32xf32, #tpu.memory_space<vmem>>, vector<1x2x32xf32>
    %108 = vector.shape_cast %107 : vector<1x2x32xf32> to vector<2x32xf32>
    %cst_40 = arith.constant 1.000000e+00 : f32
    %109 = vector.broadcast %cst_40 : f32 to vector<2x32xf32>
    %110 = arith.subf %109, %108 : vector<2x32xf32>
    %111 = arith.mulf %108, %103 : vector<2x32xf32>
    %112 = arith.mulf %110, %77 : vector<2x32xf32>
    %113 = arith.addf %111, %112 : vector<2x32xf32>
    %114 = arith.mulf %108, %105 : vector<2x32xf32>
    %115 = arith.mulf %110, %80 : vector<2x32xf32>
    %116 = arith.addf %114, %115 : vector<2x32xf32>
    %117 = arith.mulf %108, %105 : vector<2x32xf32>
    %118 = arith.index_cast %c2_i32 : i32 to index
    %c0_41 = arith.constant 0 : index
    %c0_42 = arith.constant 0 : index
    %119 = vector.load %arg8[%118, %c0_41, %c0_42] : memref<8x2x32xf32, #tpu.memory_space<vmem>>, vector<1x2x32xf32>
    %120 = vector.shape_cast %119 : vector<1x2x32xf32> to vector<2x32xf32>
    %121 = vector.shape_cast %117 : vector<2x32xf32> to vector<1x2x32xf32>
    tpu.vector_store %arg8[%118, %c0_41, %c0_42], %121 {strides = array<i32>} : memref<8x2x32xf32, #tpu.memory_space<vmem>>, vector<1x2x32xf32>,
    %c3_i32 = arith.constant 3 : i32
    %122 = arith.index_cast %c3_i32 : i32 to index
    %c0_43 = arith.constant 0 : index
    %c0_44 = arith.constant 0 : index
    %123 = vector.load %arg9[%122, %c0_43, %c0_44] : memref<8x2x128xf32, #tpu.memory_space<vmem>>, vector<1x2x128xf32>
    %124 = vector.shape_cast %123 : vector<1x2x128xf32> to vector<2x128xf32>
    %cst_45 = arith.constant dense<0.000000e+00> : vector<2x128xf32>
    %125 = tpu.matmul %116, %3, %cst_45 {dimension_numbers = #tpu.dot_dimension_numbers<[1], [0], [0], [1], [0, 0, 1, 1], [], []>} : vector<2x32xf32>, vector<32x128xf32>, vector<2x128xf32> -> vector<2x128xf32>
    %126 = arith.addf %124, %125 : vector<2x128xf32>
    %127 = arith.negf %126 : vector<2x128xf32>
    %128 = math.exp %127 : vector<2x128xf32>
    %cst_46 = arith.constant 1.000000e+00 : f32
    %129 = vector.broadcast %cst_46 : f32 to vector<2x128xf32>
    %130 = arith.addf %129, %128 : vector<2x128xf32>
    %131 = arith.divf %129, %130 : vector<2x128xf32>
    %132 = math.tanh %126 : vector<2x128xf32>
    %133 = vector.extract_strided_slice %131 {offsets = [0, 0], sizes = [2, 32], strides = [1, 1]} : vector<2x128xf32> to vector<2x32xf32>
    %134 = vector.extract_strided_slice %131 {offsets = [0, 32], sizes = [2, 32], strides = [1, 1]} : vector<2x128xf32> to vector<2x32xf32>
    %135 = vector.extract_strided_slice %131 {offsets = [0, 64], sizes = [2, 32], strides = [1, 1]} : vector<2x128xf32> to vector<2x32xf32>
    %136 = vector.extract_strided_slice %132 {offsets = [0, 96], sizes = [2, 32], strides = [1, 1]} : vector<2x128xf32> to vector<2x32xf32>
    %137 = arith.mulf %134, %113 : vector<2x32xf32>
    %138 = arith.mulf %133, %136 : vector<2x32xf32>
    %139 = arith.addf %137, %138 : vector<2x32xf32>
    %140 = math.tanh %139 : vector<2x32xf32>
    %141 = arith.mulf %135, %140 : vector<2x32xf32>
    %142 = arith.index_cast %c3_i32 : i32 to index
    %c0_47 = arith.constant 0 : index
    %c0_48 = arith.constant 0 : index
    %143 = vector.load %arg1[%142, %c0_47, %c0_48] : memref<8x2x32xf32, #tpu.memory_space<vmem>>, vector<1x2x32xf32>
    %144 = vector.shape_cast %143 : vector<1x2x32xf32> to vector<2x32xf32>
    %cst_49 = arith.constant 1.000000e+00 : f32
    %145 = vector.broadcast %cst_49 : f32 to vector<2x32xf32>
    %146 = arith.subf %145, %144 : vector<2x32xf32>
    %147 = arith.mulf %144, %139 : vector<2x32xf32>
    %148 = arith.mulf %146, %113 : vector<2x32xf32>
    %149 = arith.addf %147, %148 : vector<2x32xf32>
    %150 = arith.mulf %144, %141 : vector<2x32xf32>
    %151 = arith.mulf %146, %116 : vector<2x32xf32>
    %152 = arith.addf %150, %151 : vector<2x32xf32>
    %153 = arith.mulf %144, %141 : vector<2x32xf32>
    %154 = arith.index_cast %c3_i32 : i32 to index
    %c0_50 = arith.constant 0 : index
    %c0_51 = arith.constant 0 : index
    %155 = vector.load %arg8[%154, %c0_50, %c0_51] : memref<8x2x32xf32, #tpu.memory_space<vmem>>, vector<1x2x32xf32>
    %156 = vector.shape_cast %155 : vector<1x2x32xf32> to vector<2x32xf32>
    %157 = vector.shape_cast %153 : vector<2x32xf32> to vector<1x2x32xf32>
    tpu.vector_store %arg8[%154, %c0_50, %c0_51], %157 {strides = array<i32>} : memref<8x2x32xf32, #tpu.memory_space<vmem>>, vector<1x2x32xf32>,
    %c4_i32 = arith.constant 4 : i32
    %158 = arith.index_cast %c4_i32 : i32 to index
    %c0_52 = arith.constant 0 : index
    %c0_53 = arith.constant 0 : index
    %159 = vector.load %arg9[%158, %c0_52, %c0_53] : memref<8x2x128xf32, #tpu.memory_space<vmem>>, vector<1x2x128xf32>
    %160 = vector.shape_cast %159 : vector<1x2x128xf32> to vector<2x128xf32>
    %cst_54 = arith.constant dense<0.000000e+00> : vector<2x128xf32>
    %161 = tpu.matmul %152, %3, %cst_54 {dimension_numbers = #tpu.dot_dimension_numbers<[1], [0], [0], [1], [0, 0, 1, 1], [], []>} : vector<2x32xf32>, vector<32x128xf32>, vector<2x128xf32> -> vector<2x128xf32>
    %162 = arith.addf %160, %161 : vector<2x128xf32>
    %163 = arith.negf %162 : vector<2x128xf32>
    %164 = math.exp %163 : vector<2x128xf32>
    %cst_55 = arith.constant 1.000000e+00 : f32
    %165 = vector.broadcast %cst_55 : f32 to vector<2x128xf32>
    %166 = arith.addf %165, %164 : vector<2x128xf32>
    %167 = arith.divf %165, %166 : vector<2x128xf32>
    %168 = math.tanh %162 : vector<2x128xf32>
    %169 = vector.extract_strided_slice %167 {offsets = [0, 0], sizes = [2, 32], strides = [1, 1]} : vector<2x128xf32> to vector<2x32xf32>
    %170 = vector.extract_strided_slice %167 {offsets = [0, 32], sizes = [2, 32], strides = [1, 1]} : vector<2x128xf32> to vector<2x32xf32>
    %171 = vector.extract_strided_slice %167 {offsets = [0, 64], sizes = [2, 32], strides = [1, 1]} : vector<2x128xf32> to vector<2x32xf32>
    %172 = vector.extract_strided_slice %168 {offsets = [0, 96], sizes = [2, 32], strides = [1, 1]} : vector<2x128xf32> to vector<2x32xf32>
    %173 = arith.mulf %170, %149 : vector<2x32xf32>
    %174 = arith.mulf %169, %172 : vector<2x32xf32>
    %175 = arith.addf %173, %174 : vector<2x32xf32>
    %176 = math.tanh %175 : vector<2x32xf32>
    %177 = arith.mulf %171, %176 : vector<2x32xf32>
    %178 = arith.index_cast %c4_i32 : i32 to index
    %c0_56 = arith.constant 0 : index
    %c0_57 = arith.constant 0 : index
    %179 = vector.load %arg1[%178, %c0_56, %c0_57] : memref<8x2x32xf32, #tpu.memory_space<vmem>>, vector<1x2x32xf32>
    %180 = vector.shape_cast %179 : vector<1x2x32xf32> to vector<2x32xf32>
    %cst_58 = arith.constant 1.000000e+00 : f32
    %181 = vector.broadcast %cst_58 : f32 to vector<2x32xf32>
    %182 = arith.subf %181, %180 : vector<2x32xf32>
    %183 = arith.mulf %180, %175 : vector<2x32xf32>
    %184 = arith.mulf %182, %149 : vector<2x32xf32>
    %185 = arith.addf %183, %184 : vector<2x32xf32>
    %186 = arith.mulf %180, %177 : vector<2x32xf32>
    %187 = arith.mulf %182, %152 : vector<2x32xf32>
    %188 = arith.addf %186, %187 : vector<2x32xf32>
    %189 = arith.mulf %180, %177 : vector<2x32xf32>
    %190 = arith.index_cast %c4_i32 : i32 to index
    %c0_59 = arith.constant 0 : index
    %c0_60 = arith.constant 0 : index
    %191 = vector.load %arg8[%190, %c0_59, %c0_60] : memref<8x2x32xf32, #tpu.memory_space<vmem>>, vector<1x2x32xf32>
    %192 = vector.shape_cast %191 : vector<1x2x32xf32> to vector<2x32xf32>
    %193 = vector.shape_cast %189 : vector<2x32xf32> to vector<1x2x32xf32>
    tpu.vector_store %arg8[%190, %c0_59, %c0_60], %193 {strides = array<i32>} : memref<8x2x32xf32, #tpu.memory_space<vmem>>, vector<1x2x32xf32>,
    %c5_i32 = arith.constant 5 : i32
    %194 = arith.index_cast %c5_i32 : i32 to index
    %c0_61 = arith.constant 0 : index
    %c0_62 = arith.constant 0 : index
    %195 = vector.load %arg9[%194, %c0_61, %c0_62] : memref<8x2x128xf32, #tpu.memory_space<vmem>>, vector<1x2x128xf32>
    %196 = vector.shape_cast %195 : vector<1x2x128xf32> to vector<2x128xf32>
    %cst_63 = arith.constant dense<0.000000e+00> : vector<2x128xf32>
    %197 = tpu.matmul %188, %3, %cst_63 {dimension_numbers = #tpu.dot_dimension_numbers<[1], [0], [0], [1], [0, 0, 1, 1], [], []>} : vector<2x32xf32>, vector<32x128xf32>, vector<2x128xf32> -> vector<2x128xf32>
    %198 = arith.addf %196, %197 : vector<2x128xf32>
    %199 = arith.negf %198 : vector<2x128xf32>
    %200 = math.exp %199 : vector<2x128xf32>
    %cst_64 = arith.constant 1.000000e+00 : f32
    %201 = vector.broadcast %cst_64 : f32 to vector<2x128xf32>
    %202 = arith.addf %201, %200 : vector<2x128xf32>
    %203 = arith.divf %201, %202 : vector<2x128xf32>
    %204 = math.tanh %198 : vector<2x128xf32>
    %205 = vector.extract_strided_slice %203 {offsets = [0, 0], sizes = [2, 32], strides = [1, 1]} : vector<2x128xf32> to vector<2x32xf32>
    %206 = vector.extract_strided_slice %203 {offsets = [0, 32], sizes = [2, 32], strides = [1, 1]} : vector<2x128xf32> to vector<2x32xf32>
    %207 = vector.extract_strided_slice %203 {offsets = [0, 64], sizes = [2, 32], strides = [1, 1]} : vector<2x128xf32> to vector<2x32xf32>
    %208 = vector.extract_strided_slice %204 {offsets = [0, 96], sizes = [2, 32], strides = [1, 1]} : vector<2x128xf32> to vector<2x32xf32>
    %209 = arith.mulf %206, %185 : vector<2x32xf32>
    %210 = arith.mulf %205, %208 : vector<2x32xf32>
    %211 = arith.addf %209, %210 : vector<2x32xf32>
    %212 = math.tanh %211 : vector<2x32xf32>
    %213 = arith.mulf %207, %212 : vector<2x32xf32>
    %214 = arith.index_cast %c5_i32 : i32 to index
    %c0_65 = arith.constant 0 : index
    %c0_66 = arith.constant 0 : index
    %215 = vector.load %arg1[%214, %c0_65, %c0_66] : memref<8x2x32xf32, #tpu.memory_space<vmem>>, vector<1x2x32xf32>
    %216 = vector.shape_cast %215 : vector<1x2x32xf32> to vector<2x32xf32>
    %cst_67 = arith.constant 1.000000e+00 : f32
    %217 = vector.broadcast %cst_67 : f32 to vector<2x32xf32>
    %218 = arith.subf %217, %216 : vector<2x32xf32>
    %219 = arith.mulf %216, %211 : vector<2x32xf32>
    %220 = arith.mulf %218, %185 : vector<2x32xf32>
    %221 = arith.addf %219, %220 : vector<2x32xf32>
    %222 = arith.mulf %216, %213 : vector<2x32xf32>
    %223 = arith.mulf %218, %188 : vector<2x32xf32>
    %224 = arith.addf %222, %223 : vector<2x32xf32>
    %225 = arith.mulf %216, %213 : vector<2x32xf32>
    %226 = arith.index_cast %c5_i32 : i32 to index
    %c0_68 = arith.constant 0 : index
    %c0_69 = arith.constant 0 : index
    %227 = vector.load %arg8[%226, %c0_68, %c0_69] : memref<8x2x32xf32, #tpu.memory_space<vmem>>, vector<1x2x32xf32>
    %228 = vector.shape_cast %227 : vector<1x2x32xf32> to vector<2x32xf32>
    %229 = vector.shape_cast %225 : vector<2x32xf32> to vector<1x2x32xf32>
    tpu.vector_store %arg8[%226, %c0_68, %c0_69], %229 {strides = array<i32>} : memref<8x2x32xf32, #tpu.memory_space<vmem>>, vector<1x2x32xf32>,
    %c6_i32 = arith.constant 6 : i32
    %230 = arith.index_cast %c6_i32 : i32 to index
    %c0_70 = arith.constant 0 : index
    %c0_71 = arith.constant 0 : index
    %231 = vector.load %arg9[%230, %c0_70, %c0_71] : memref<8x2x128xf32, #tpu.memory_space<vmem>>, vector<1x2x128xf32>
    %232 = vector.shape_cast %231 : vector<1x2x128xf32> to vector<2x128xf32>
    %cst_72 = arith.constant dense<0.000000e+00> : vector<2x128xf32>
    %233 = tpu.matmul %224, %3, %cst_72 {dimension_numbers = #tpu.dot_dimension_numbers<[1], [0], [0], [1], [0, 0, 1, 1], [], []>} : vector<2x32xf32>, vector<32x128xf32>, vector<2x128xf32> -> vector<2x128xf32>
    %234 = arith.addf %232, %233 : vector<2x128xf32>
    %235 = arith.negf %234 : vector<2x128xf32>
    %236 = math.exp %235 : vector<2x128xf32>
    %cst_73 = arith.constant 1.000000e+00 : f32
    %237 = vector.broadcast %cst_73 : f32 to vector<2x128xf32>
    %238 = arith.addf %237, %236 : vector<2x128xf32>
    %239 = arith.divf %237, %238 : vector<2x128xf32>
    %240 = math.tanh %234 : vector<2x128xf32>
    %241 = vector.extract_strided_slice %239 {offsets = [0, 0], sizes = [2, 32], strides = [1, 1]} : vector<2x128xf32> to vector<2x32xf32>
    %242 = vector.extract_strided_slice %239 {offsets = [0, 32], sizes = [2, 32], strides = [1, 1]} : vector<2x128xf32> to vector<2x32xf32>
    %243 = vector.extract_strided_slice %239 {offsets = [0, 64], sizes = [2, 32], strides = [1, 1]} : vector<2x128xf32> to vector<2x32xf32>
    %244 = vector.extract_strided_slice %240 {offsets = [0, 96], sizes = [2, 32], strides = [1, 1]} : vector<2x128xf32> to vector<2x32xf32>
    %245 = arith.mulf %242, %221 : vector<2x32xf32>
    %246 = arith.mulf %241, %244 : vector<2x32xf32>
    %247 = arith.addf %245, %246 : vector<2x32xf32>
    %248 = math.tanh %247 : vector<2x32xf32>
    %249 = arith.mulf %243, %248 : vector<2x32xf32>
    %250 = arith.index_cast %c6_i32 : i32 to index
    %c0_74 = arith.constant 0 : index
    %c0_75 = arith.constant 0 : index
    %251 = vector.load %arg1[%250, %c0_74, %c0_75] : memref<8x2x32xf32, #tpu.memory_space<vmem>>, vector<1x2x32xf32>
    %252 = vector.shape_cast %251 : vector<1x2x32xf32> to vector<2x32xf32>
    %cst_76 = arith.constant 1.000000e+00 : f32
    %253 = vector.broadcast %cst_76 : f32 to vector<2x32xf32>
    %254 = arith.subf %253, %252 : vector<2x32xf32>
    %255 = arith.mulf %252, %247 : vector<2x32xf32>
    %256 = arith.mulf %254, %221 : vector<2x32xf32>
    %257 = arith.addf %255, %256 : vector<2x32xf32>
    %258 = arith.mulf %252, %249 : vector<2x32xf32>
    %259 = arith.mulf %254, %224 : vector<2x32xf32>
    %260 = arith.addf %258, %259 : vector<2x32xf32>
    %261 = arith.mulf %252, %249 : vector<2x32xf32>
    %262 = arith.index_cast %c6_i32 : i32 to index
    %c0_77 = arith.constant 0 : index
    %c0_78 = arith.constant 0 : index
    %263 = vector.load %arg8[%262, %c0_77, %c0_78] : memref<8x2x32xf32, #tpu.memory_space<vmem>>, vector<1x2x32xf32>
    %264 = vector.shape_cast %263 : vector<1x2x32xf32> to vector<2x32xf32>
    %265 = vector.shape_cast %261 : vector<2x32xf32> to vector<1x2x32xf32>
    tpu.vector_store %arg8[%262, %c0_77, %c0_78], %265 {strides = array<i32>} : memref<8x2x32xf32, #tpu.memory_space<vmem>>, vector<1x2x32xf32>,
    %c7_i32 = arith.constant 7 : i32
    %266 = arith.index_cast %c7_i32 : i32 to index
    %c0_79 = arith.constant 0 : index
    %c0_80 = arith.constant 0 : index
    %267 = vector.load %arg9[%266, %c0_79, %c0_80] : memref<8x2x128xf32, #tpu.memory_space<vmem>>, vector<1x2x128xf32>
    %268 = vector.shape_cast %267 : vector<1x2x128xf32> to vector<2x128xf32>
    %cst_81 = arith.constant dense<0.000000e+00> : vector<2x128xf32>
    %269 = tpu.matmul %260, %3, %cst_81 {dimension_numbers = #tpu.dot_dimension_numbers<[1], [0], [0], [1], [0, 0, 1, 1], [], []>} : vector<2x32xf32>, vector<32x128xf32>, vector<2x128xf32> -> vector<2x128xf32>
    %270 = arith.addf %268, %269 : vector<2x128xf32>
    %271 = arith.negf %270 : vector<2x128xf32>
    %272 = math.exp %271 : vector<2x128xf32>
    %cst_82 = arith.constant 1.000000e+00 : f32
    %273 = vector.broadcast %cst_82 : f32 to vector<2x128xf32>
    %274 = arith.addf %273, %272 : vector<2x128xf32>
    %275 = arith.divf %273, %274 : vector<2x128xf32>
    %276 = math.tanh %270 : vector<2x128xf32>
    %277 = vector.extract_strided_slice %275 {offsets = [0, 0], sizes = [2, 32], strides = [1, 1]} : vector<2x128xf32> to vector<2x32xf32>
    %278 = vector.extract_strided_slice %275 {offsets = [0, 32], sizes = [2, 32], strides = [1, 1]} : vector<2x128xf32> to vector<2x32xf32>
    %279 = vector.extract_strided_slice %275 {offsets = [0, 64], sizes = [2, 32], strides = [1, 1]} : vector<2x128xf32> to vector<2x32xf32>
    %280 = vector.extract_strided_slice %276 {offsets = [0, 96], sizes = [2, 32], strides = [1, 1]} : vector<2x128xf32> to vector<2x32xf32>
    %281 = arith.mulf %278, %257 : vector<2x32xf32>
    %282 = arith.mulf %277, %280 : vector<2x32xf32>
    %283 = arith.addf %281, %282 : vector<2x32xf32>
    %284 = math.tanh %283 : vector<2x32xf32>
    %285 = arith.mulf %279, %284 : vector<2x32xf32>
    %286 = arith.index_cast %c7_i32 : i32 to index
    %c0_83 = arith.constant 0 : index
    %c0_84 = arith.constant 0 : index
    %287 = vector.load %arg1[%286, %c0_83, %c0_84] : memref<8x2x32xf32, #tpu.memory_space<vmem>>, vector<1x2x32xf32>
    %288 = vector.shape_cast %287 : vector<1x2x32xf32> to vector<2x32xf32>
    %cst_85 = arith.constant 1.000000e+00 : f32
    %289 = vector.broadcast %cst_85 : f32 to vector<2x32xf32>
    %290 = arith.subf %289, %288 : vector<2x32xf32>
    %291 = arith.mulf %288, %283 : vector<2x32xf32>
    %292 = arith.mulf %290, %257 : vector<2x32xf32>
    %293 = arith.addf %291, %292 : vector<2x32xf32>
    %294 = arith.mulf %288, %285 : vector<2x32xf32>
    %295 = arith.mulf %290, %260 : vector<2x32xf32>
    %296 = arith.addf %294, %295 : vector<2x32xf32>
    %297 = arith.mulf %288, %285 : vector<2x32xf32>
    %298 = arith.index_cast %c7_i32 : i32 to index
    %c0_86 = arith.constant 0 : index
    %c0_87 = arith.constant 0 : index
    %299 = vector.load %arg8[%298, %c0_86, %c0_87] : memref<8x2x32xf32, #tpu.memory_space<vmem>>, vector<1x2x32xf32>
    %300 = vector.shape_cast %299 : vector<1x2x32xf32> to vector<2x32xf32>
    %301 = vector.shape_cast %297 : vector<2x32xf32> to vector<1x2x32xf32>
    tpu.vector_store %arg8[%298, %c0_86, %c0_87], %301 {strides = array<i32>} : memref<8x2x32xf32, #tpu.memory_space<vmem>>, vector<1x2x32xf32>,
    %c8_i32 = arith.constant 8 : i32
    %c1 = arith.constant 1 : index
    %c0_88 = arith.constant 0 : index
    %c0_89 = arith.constant 0 : index
    %302 = vector.load %arg2[%c1, %c0_88, %c0_89] : memref<4x32x128xf32, #tpu.memory_space<vmem>>, vector<1x32x128xf32>
    %303 = vector.shape_cast %302 : vector<1x32x128xf32> to vector<32x128xf32>
    %c1_90 = arith.constant 1 : index
    %c0_91 = arith.constant 0 : index
    %c0_92 = arith.constant 0 : index
    %304 = vector.load %arg3[%c1_90, %c0_91, %c0_92] : memref<4x32x128xf32, #tpu.memory_space<vmem>>, vector<1x32x128xf32>
    %305 = vector.shape_cast %304 : vector<1x32x128xf32> to vector<32x128xf32>
    %c1_93 = arith.constant 1 : index
    %c0_94 = arith.constant 0 : index
    %c0_95 = arith.constant 0 : index
    %306 = vector.load %arg4[%c1_93, %c0_94, %c0_95] : memref<4x1x128xf32, #tpu.memory_space<vmem>>, vector<1x1x128xf32>
    %307 = vector.shape_cast %306 : vector<1x1x128xf32> to vector<1x128xf32>
    %c0_96 = arith.constant 0 : index
    %c0_97 = arith.constant 0 : index
    %c0_98 = arith.constant 0 : index
    %308 = vector.load %arg8[%c0_96, %c0_97, %c0_98] : memref<8x2x32xf32, #tpu.memory_space<vmem>>, vector<8x2x32xf32>
    %cst_99 = arith.constant dense<0.000000e+00> : vector<8x2x128xf32>
    %309 = tpu.matmul %308, %303, %cst_99 {dimension_numbers = #tpu.dot_dimension_numbers<[2], [0], [0, 1], [1], [0, 0, 0, 1, 1, 1], [], []>} : vector<8x2x32xf32>, vector<32x128xf32>, vector<8x2x128xf32> -> vector<8x2x128xf32>
    %310 = vector.shape_cast %307 : vector<1x128xf32> to vector<1x1x128xf32>
    %311 = vector.broadcast %310 : vector<1x1x128xf32> to vector<8x2x128xf32>
    %312 = arith.addf %309, %311 : vector<8x2x128xf32>
    %c0_100 = arith.constant 0 : index
    %c0_101 = arith.constant 0 : index
    %c0_102 = arith.constant 0 : index
    %313 = vector.load %arg9[%c0_100, %c0_101, %c0_102] : memref<8x2x128xf32, #tpu.memory_space<vmem>>, vector<8x2x128xf32>
    tpu.vector_store %arg9[%c0_100, %c0_101, %c0_102], %312 {strides = array<i32>} : memref<8x2x128xf32, #tpu.memory_space<vmem>>, vector<8x2x128xf32>,
    %cst_103 = arith.constant 0.000000e+00 : f32
    %314 = vector.broadcast %cst_103 : f32 to vector<2x32xf32>
    %cst_104 = arith.constant 0.000000e+00 : f32
    %315 = vector.broadcast %cst_104 : f32 to vector<2x32xf32>
    %c0_i32_105 = arith.constant 0 : i32
    %316 = arith.index_cast %c0_i32_105 : i32 to index
    %c0_106 = arith.constant 0 : index
    %c0_107 = arith.constant 0 : index
    %317 = vector.load %arg9[%316, %c0_106, %c0_107] : memref<8x2x128xf32, #tpu.memory_space<vmem>>, vector<1x2x128xf32>
    %318 = vector.shape_cast %317 : vector<1x2x128xf32> to vector<2x128xf32>
    %cst_108 = arith.constant dense<0.000000e+00> : vector<2x128xf32>
    %319 = tpu.matmul %314, %305, %cst_108 {dimension_numbers = #tpu.dot_dimension_numbers<[1], [0], [0], [1], [0, 0, 1, 1], [], []>} : vector<2x32xf32>, vector<32x128xf32>, vector<2x128xf32> -> vector<2x128xf32>
    %320 = arith.addf %318, %319 : vector<2x128xf32>
    %321 = arith.negf %320 : vector<2x128xf32>
    %322 = math.exp %321 : vector<2x128xf32>
    %cst_109 = arith.constant 1.000000e+00 : f32
    %323 = vector.broadcast %cst_109 : f32 to vector<2x128xf32>
    %324 = arith.addf %323, %322 : vector<2x128xf32>
    %325 = arith.divf %323, %324 : vector<2x128xf32>
    %326 = math.tanh %320 : vector<2x128xf32>
    %327 = vector.extract_strided_slice %325 {offsets = [0, 0], sizes = [2, 32], strides = [1, 1]} : vector<2x128xf32> to vector<2x32xf32>
    %328 = vector.extract_strided_slice %325 {offsets = [0, 32], sizes = [2, 32], strides = [1, 1]} : vector<2x128xf32> to vector<2x32xf32>
    %329 = vector.extract_strided_slice %325 {offsets = [0, 64], sizes = [2, 32], strides = [1, 1]} : vector<2x128xf32> to vector<2x32xf32>
    %330 = vector.extract_strided_slice %326 {offsets = [0, 96], sizes = [2, 32], strides = [1, 1]} : vector<2x128xf32> to vector<2x32xf32>
    %331 = arith.mulf %328, %315 : vector<2x32xf32>
    %332 = arith.mulf %327, %330 : vector<2x32xf32>
    %333 = arith.addf %331, %332 : vector<2x32xf32>
    %334 = math.tanh %333 : vector<2x32xf32>
    %335 = arith.mulf %329, %334 : vector<2x32xf32>
    %336 = arith.index_cast %c0_i32_105 : i32 to index
    %c0_110 = arith.constant 0 : index
    %c0_111 = arith.constant 0 : index
    %337 = vector.load %arg1[%336, %c0_110, %c0_111] : memref<8x2x32xf32, #tpu.memory_space<vmem>>, vector<1x2x32xf32>
    %338 = vector.shape_cast %337 : vector<1x2x32xf32> to vector<2x32xf32>
    %cst_112 = arith.constant 1.000000e+00 : f32
    %339 = vector.broadcast %cst_112 : f32 to vector<2x32xf32>
    %340 = arith.subf %339, %338 : vector<2x32xf32>
    %341 = arith.mulf %338, %333 : vector<2x32xf32>
    %342 = arith.mulf %340, %315 : vector<2x32xf32>
    %343 = arith.addf %341, %342 : vector<2x32xf32>
    %344 = arith.mulf %338, %335 : vector<2x32xf32>
    %345 = arith.mulf %340, %314 : vector<2x32xf32>
    %346 = arith.addf %344, %345 : vector<2x32xf32>
    %347 = arith.mulf %338, %335 : vector<2x32xf32>
    %348 = arith.index_cast %c0_i32_105 : i32 to index
    %c0_113 = arith.constant 0 : index
    %c0_114 = arith.constant 0 : index
    %349 = vector.load %arg8[%348, %c0_113, %c0_114] : memref<8x2x32xf32, #tpu.memory_space<vmem>>, vector<1x2x32xf32>
    %350 = vector.shape_cast %349 : vector<1x2x32xf32> to vector<2x32xf32>
    %351 = vector.shape_cast %347 : vector<2x32xf32> to vector<1x2x32xf32>
    tpu.vector_store %arg8[%348, %c0_113, %c0_114], %351 {strides = array<i32>} : memref<8x2x32xf32, #tpu.memory_space<vmem>>, vector<1x2x32xf32>,
    %c1_i32_115 = arith.constant 1 : i32
    %352 = arith.index_cast %c1_i32_115 : i32 to index
    %c0_116 = arith.constant 0 : index
    %c0_117 = arith.constant 0 : index
    %353 = vector.load %arg9[%352, %c0_116, %c0_117] : memref<8x2x128xf32, #tpu.memory_space<vmem>>, vector<1x2x128xf32>
    %354 = vector.shape_cast %353 : vector<1x2x128xf32> to vector<2x128xf32>
    %cst_118 = arith.constant dense<0.000000e+00> : vector<2x128xf32>
    %355 = tpu.matmul %346, %305, %cst_118 {dimension_numbers = #tpu.dot_dimension_numbers<[1], [0], [0], [1], [0, 0, 1, 1], [], []>} : vector<2x32xf32>, vector<32x128xf32>, vector<2x128xf32> -> vector<2x128xf32>
    %356 = arith.addf %354, %355 : vector<2x128xf32>
    %357 = arith.negf %356 : vector<2x128xf32>
    %358 = math.exp %357 : vector<2x128xf32>
    %cst_119 = arith.constant 1.000000e+00 : f32
    %359 = vector.broadcast %cst_119 : f32 to vector<2x128xf32>
    %360 = arith.addf %359, %358 : vector<2x128xf32>
    %361 = arith.divf %359, %360 : vector<2x128xf32>
    %362 = math.tanh %356 : vector<2x128xf32>
    %363 = vector.extract_strided_slice %361 {offsets = [0, 0], sizes = [2, 32], strides = [1, 1]} : vector<2x128xf32> to vector<2x32xf32>
    %364 = vector.extract_strided_slice %361 {offsets = [0, 32], sizes = [2, 32], strides = [1, 1]} : vector<2x128xf32> to vector<2x32xf32>
    %365 = vector.extract_strided_slice %361 {offsets = [0, 64], sizes = [2, 32], strides = [1, 1]} : vector<2x128xf32> to vector<2x32xf32>
    %366 = vector.extract_strided_slice %362 {offsets = [0, 96], sizes = [2, 32], strides = [1, 1]} : vector<2x128xf32> to vector<2x32xf32>
    %367 = arith.mulf %364, %343 : vector<2x32xf32>
    %368 = arith.mulf %363, %366 : vector<2x32xf32>
    %369 = arith.addf %367, %368 : vector<2x32xf32>
    %370 = math.tanh %369 : vector<2x32xf32>
    %371 = arith.mulf %365, %370 : vector<2x32xf32>
    %372 = arith.index_cast %c1_i32_115 : i32 to index
    %c0_120 = arith.constant 0 : index
    %c0_121 = arith.constant 0 : index
    %373 = vector.load %arg1[%372, %c0_120, %c0_121] : memref<8x2x32xf32, #tpu.memory_space<vmem>>, vector<1x2x32xf32>
    %374 = vector.shape_cast %373 : vector<1x2x32xf32> to vector<2x32xf32>
    %cst_122 = arith.constant 1.000000e+00 : f32
    %375 = vector.broadcast %cst_122 : f32 to vector<2x32xf32>
    %376 = arith.subf %375, %374 : vector<2x32xf32>
    %377 = arith.mulf %374, %369 : vector<2x32xf32>
    %378 = arith.mulf %376, %343 : vector<2x32xf32>
    %379 = arith.addf %377, %378 : vector<2x32xf32>
    %380 = arith.mulf %374, %371 : vector<2x32xf32>
    %381 = arith.mulf %376, %346 : vector<2x32xf32>
    %382 = arith.addf %380, %381 : vector<2x32xf32>
    %383 = arith.mulf %374, %371 : vector<2x32xf32>
    %384 = arith.index_cast %c1_i32_115 : i32 to index
    %c0_123 = arith.constant 0 : index
    %c0_124 = arith.constant 0 : index
    %385 = vector.load %arg8[%384, %c0_123, %c0_124] : memref<8x2x32xf32, #tpu.memory_space<vmem>>, vector<1x2x32xf32>
    %386 = vector.shape_cast %385 : vector<1x2x32xf32> to vector<2x32xf32>
    %387 = vector.shape_cast %383 : vector<2x32xf32> to vector<1x2x32xf32>
    tpu.vector_store %arg8[%384, %c0_123, %c0_124], %387 {strides = array<i32>} : memref<8x2x32xf32, #tpu.memory_space<vmem>>, vector<1x2x32xf32>,
    %c2_i32_125 = arith.constant 2 : i32
    %388 = arith.index_cast %c2_i32_125 : i32 to index
    %c0_126 = arith.constant 0 : index
    %c0_127 = arith.constant 0 : index
    %389 = vector.load %arg9[%388, %c0_126, %c0_127] : memref<8x2x128xf32, #tpu.memory_space<vmem>>, vector<1x2x128xf32>
    %390 = vector.shape_cast %389 : vector<1x2x128xf32> to vector<2x128xf32>
    %cst_128 = arith.constant dense<0.000000e+00> : vector<2x128xf32>
    %391 = tpu.matmul %382, %305, %cst_128 {dimension_numbers = #tpu.dot_dimension_numbers<[1], [0], [0], [1], [0, 0, 1, 1], [], []>} : vector<2x32xf32>, vector<32x128xf32>, vector<2x128xf32> -> vector<2x128xf32>
    %392 = arith.addf %390, %391 : vector<2x128xf32>
    %393 = arith.negf %392 : vector<2x128xf32>
    %394 = math.exp %393 : vector<2x128xf32>
    %cst_129 = arith.constant 1.000000e+00 : f32
    %395 = vector.broadcast %cst_129 : f32 to vector<2x128xf32>
    %396 = arith.addf %395, %394 : vector<2x128xf32>
    %397 = arith.divf %395, %396 : vector<2x128xf32>
    %398 = math.tanh %392 : vector<2x128xf32>
    %399 = vector.extract_strided_slice %397 {offsets = [0, 0], sizes = [2, 32], strides = [1, 1]} : vector<2x128xf32> to vector<2x32xf32>
    %400 = vector.extract_strided_slice %397 {offsets = [0, 32], sizes = [2, 32], strides = [1, 1]} : vector<2x128xf32> to vector<2x32xf32>
    %401 = vector.extract_strided_slice %397 {offsets = [0, 64], sizes = [2, 32], strides = [1, 1]} : vector<2x128xf32> to vector<2x32xf32>
    %402 = vector.extract_strided_slice %398 {offsets = [0, 96], sizes = [2, 32], strides = [1, 1]} : vector<2x128xf32> to vector<2x32xf32>
    %403 = arith.mulf %400, %379 : vector<2x32xf32>
    %404 = arith.mulf %399, %402 : vector<2x32xf32>
    %405 = arith.addf %403, %404 : vector<2x32xf32>
    %406 = math.tanh %405 : vector<2x32xf32>
    %407 = arith.mulf %401, %406 : vector<2x32xf32>
    %408 = arith.index_cast %c2_i32_125 : i32 to index
    %c0_130 = arith.constant 0 : index
    %c0_131 = arith.constant 0 : index
    %409 = vector.load %arg1[%408, %c0_130, %c0_131] : memref<8x2x32xf32, #tpu.memory_space<vmem>>, vector<1x2x32xf32>
    %410 = vector.shape_cast %409 : vector<1x2x32xf32> to vector<2x32xf32>
    %cst_132 = arith.constant 1.000000e+00 : f32
    %411 = vector.broadcast %cst_132 : f32 to vector<2x32xf32>
    %412 = arith.subf %411, %410 : vector<2x32xf32>
    %413 = arith.mulf %410, %405 : vector<2x32xf32>
    %414 = arith.mulf %412, %379 : vector<2x32xf32>
    %415 = arith.addf %413, %414 : vector<2x32xf32>
    %416 = arith.mulf %410, %407 : vector<2x32xf32>
    %417 = arith.mulf %412, %382 : vector<2x32xf32>
    %418 = arith.addf %416, %417 : vector<2x32xf32>
    %419 = arith.mulf %410, %407 : vector<2x32xf32>
    %420 = arith.index_cast %c2_i32_125 : i32 to index
    %c0_133 = arith.constant 0 : index
    %c0_134 = arith.constant 0 : index
    %421 = vector.load %arg8[%420, %c0_133, %c0_134] : memref<8x2x32xf32, #tpu.memory_space<vmem>>, vector<1x2x32xf32>
    %422 = vector.shape_cast %421 : vector<1x2x32xf32> to vector<2x32xf32>
    %423 = vector.shape_cast %419 : vector<2x32xf32> to vector<1x2x32xf32>
    tpu.vector_store %arg8[%420, %c0_133, %c0_134], %423 {strides = array<i32>} : memref<8x2x32xf32, #tpu.memory_space<vmem>>, vector<1x2x32xf32>,
    %c3_i32_135 = arith.constant 3 : i32
    %424 = arith.index_cast %c3_i32_135 : i32 to index
    %c0_136 = arith.constant 0 : index
    %c0_137 = arith.constant 0 : index
    %425 = vector.load %arg9[%424, %c0_136, %c0_137] : memref<8x2x128xf32, #tpu.memory_space<vmem>>, vector<1x2x128xf32>
    %426 = vector.shape_cast %425 : vector<1x2x128xf32> to vector<2x128xf32>
    %cst_138 = arith.constant dense<0.000000e+00> : vector<2x128xf32>
    %427 = tpu.matmul %418, %305, %cst_138 {dimension_numbers = #tpu.dot_dimension_numbers<[1], [0], [0], [1], [0, 0, 1, 1], [], []>} : vector<2x32xf32>, vector<32x128xf32>, vector<2x128xf32> -> vector<2x128xf32>
    %428 = arith.addf %426, %427 : vector<2x128xf32>
    %429 = arith.negf %428 : vector<2x128xf32>
    %430 = math.exp %429 : vector<2x128xf32>
    %cst_139 = arith.constant 1.000000e+00 : f32
    %431 = vector.broadcast %cst_139 : f32 to vector<2x128xf32>
    %432 = arith.addf %431, %430 : vector<2x128xf32>
    %433 = arith.divf %431, %432 : vector<2x128xf32>
    %434 = math.tanh %428 : vector<2x128xf32>
    %435 = vector.extract_strided_slice %433 {offsets = [0, 0], sizes = [2, 32], strides = [1, 1]} : vector<2x128xf32> to vector<2x32xf32>
    %436 = vector.extract_strided_slice %433 {offsets = [0, 32], sizes = [2, 32], strides = [1, 1]} : vector<2x128xf32> to vector<2x32xf32>
    %437 = vector.extract_strided_slice %433 {offsets = [0, 64], sizes = [2, 32], strides = [1, 1]} : vector<2x128xf32> to vector<2x32xf32>
    %438 = vector.extract_strided_slice %434 {offsets = [0, 96], sizes = [2, 32], strides = [1, 1]} : vector<2x128xf32> to vector<2x32xf32>
    %439 = arith.mulf %436, %415 : vector<2x32xf32>
    %440 = arith.mulf %435, %438 : vector<2x32xf32>
    %441 = arith.addf %439, %440 : vector<2x32xf32>
    %442 = math.tanh %441 : vector<2x32xf32>
    %443 = arith.mulf %437, %442 : vector<2x32xf32>
    %444 = arith.index_cast %c3_i32_135 : i32 to index
    %c0_140 = arith.constant 0 : index
    %c0_141 = arith.constant 0 : index
    %445 = vector.load %arg1[%444, %c0_140, %c0_141] : memref<8x2x32xf32, #tpu.memory_space<vmem>>, vector<1x2x32xf32>
    %446 = vector.shape_cast %445 : vector<1x2x32xf32> to vector<2x32xf32>
    %cst_142 = arith.constant 1.000000e+00 : f32
    %447 = vector.broadcast %cst_142 : f32 to vector<2x32xf32>
    %448 = arith.subf %447, %446 : vector<2x32xf32>
    %449 = arith.mulf %446, %441 : vector<2x32xf32>
    %450 = arith.mulf %448, %415 : vector<2x32xf32>
    %451 = arith.addf %449, %450 : vector<2x32xf32>
    %452 = arith.mulf %446, %443 : vector<2x32xf32>
    %453 = arith.mulf %448, %418 : vector<2x32xf32>
    %454 = arith.addf %452, %453 : vector<2x32xf32>
    %455 = arith.mulf %446, %443 : vector<2x32xf32>
    %456 = arith.index_cast %c3_i32_135 : i32 to index
    %c0_143 = arith.constant 0 : index
    %c0_144 = arith.constant 0 : index
    %457 = vector.load %arg8[%456, %c0_143, %c0_144] : memref<8x2x32xf32, #tpu.memory_space<vmem>>, vector<1x2x32xf32>
    %458 = vector.shape_cast %457 : vector<1x2x32xf32> to vector<2x32xf32>
    %459 = vector.shape_cast %455 : vector<2x32xf32> to vector<1x2x32xf32>
    tpu.vector_store %arg8[%456, %c0_143, %c0_144], %459 {strides = array<i32>} : memref<8x2x32xf32, #tpu.memory_space<vmem>>, vector<1x2x32xf32>,
    %c4_i32_145 = arith.constant 4 : i32
    %460 = arith.index_cast %c4_i32_145 : i32 to index
    %c0_146 = arith.constant 0 : index
    %c0_147 = arith.constant 0 : index
    %461 = vector.load %arg9[%460, %c0_146, %c0_147] : memref<8x2x128xf32, #tpu.memory_space<vmem>>, vector<1x2x128xf32>
    %462 = vector.shape_cast %461 : vector<1x2x128xf32> to vector<2x128xf32>
    %cst_148 = arith.constant dense<0.000000e+00> : vector<2x128xf32>
    %463 = tpu.matmul %454, %305, %cst_148 {dimension_numbers = #tpu.dot_dimension_numbers<[1], [0], [0], [1], [0, 0, 1, 1], [], []>} : vector<2x32xf32>, vector<32x128xf32>, vector<2x128xf32> -> vector<2x128xf32>
    %464 = arith.addf %462, %463 : vector<2x128xf32>
    %465 = arith.negf %464 : vector<2x128xf32>
    %466 = math.exp %465 : vector<2x128xf32>
    %cst_149 = arith.constant 1.000000e+00 : f32
    %467 = vector.broadcast %cst_149 : f32 to vector<2x128xf32>
    %468 = arith.addf %467, %466 : vector<2x128xf32>
    %469 = arith.divf %467, %468 : vector<2x128xf32>
    %470 = math.tanh %464 : vector<2x128xf32>
    %471 = vector.extract_strided_slice %469 {offsets = [0, 0], sizes = [2, 32], strides = [1, 1]} : vector<2x128xf32> to vector<2x32xf32>
    %472 = vector.extract_strided_slice %469 {offsets = [0, 32], sizes = [2, 32], strides = [1, 1]} : vector<2x128xf32> to vector<2x32xf32>
    %473 = vector.extract_strided_slice %469 {offsets = [0, 64], sizes = [2, 32], strides = [1, 1]} : vector<2x128xf32> to vector<2x32xf32>
    %474 = vector.extract_strided_slice %470 {offsets = [0, 96], sizes = [2, 32], strides = [1, 1]} : vector<2x128xf32> to vector<2x32xf32>
    %475 = arith.mulf %472, %451 : vector<2x32xf32>
    %476 = arith.mulf %471, %474 : vector<2x32xf32>
    %477 = arith.addf %475, %476 : vector<2x32xf32>
    %478 = math.tanh %477 : vector<2x32xf32>
    %479 = arith.mulf %473, %478 : vector<2x32xf32>
    %480 = arith.index_cast %c4_i32_145 : i32 to index
    %c0_150 = arith.constant 0 : index
    %c0_151 = arith.constant 0 : index
    %481 = vector.load %arg1[%480, %c0_150, %c0_151] : memref<8x2x32xf32, #tpu.memory_space<vmem>>, vector<1x2x32xf32>
    %482 = vector.shape_cast %481 : vector<1x2x32xf32> to vector<2x32xf32>
    %cst_152 = arith.constant 1.000000e+00 : f32
    %483 = vector.broadcast %cst_152 : f32 to vector<2x32xf32>
    %484 = arith.subf %483, %482 : vector<2x32xf32>
    %485 = arith.mulf %482, %477 : vector<2x32xf32>
    %486 = arith.mulf %484, %451 : vector<2x32xf32>
    %487 = arith.addf %485, %486 : vector<2x32xf32>
    %488 = arith.mulf %482, %479 : vector<2x32xf32>
    %489 = arith.mulf %484, %454 : vector<2x32xf32>
    %490 = arith.addf %488, %489 : vector<2x32xf32>
    %491 = arith.mulf %482, %479 : vector<2x32xf32>
    %492 = arith.index_cast %c4_i32_145 : i32 to index
    %c0_153 = arith.constant 0 : index
    %c0_154 = arith.constant 0 : index
    %493 = vector.load %arg8[%492, %c0_153, %c0_154] : memref<8x2x32xf32, #tpu.memory_space<vmem>>, vector<1x2x32xf32>
    %494 = vector.shape_cast %493 : vector<1x2x32xf32> to vector<2x32xf32>
    %495 = vector.shape_cast %491 : vector<2x32xf32> to vector<1x2x32xf32>
    tpu.vector_store %arg8[%492, %c0_153, %c0_154], %495 {strides = array<i32>} : memref<8x2x32xf32, #tpu.memory_space<vmem>>, vector<1x2x32xf32>,
    %c5_i32_155 = arith.constant 5 : i32
    %496 = arith.index_cast %c5_i32_155 : i32 to index
    %c0_156 = arith.constant 0 : index
    %c0_157 = arith.constant 0 : index
    %497 = vector.load %arg9[%496, %c0_156, %c0_157] : memref<8x2x128xf32, #tpu.memory_space<vmem>>, vector<1x2x128xf32>
    %498 = vector.shape_cast %497 : vector<1x2x128xf32> to vector<2x128xf32>
    %cst_158 = arith.constant dense<0.000000e+00> : vector<2x128xf32>
    %499 = tpu.matmul %490, %305, %cst_158 {dimension_numbers = #tpu.dot_dimension_numbers<[1], [0], [0], [1], [0, 0, 1, 1], [], []>} : vector<2x32xf32>, vector<32x128xf32>, vector<2x128xf32> -> vector<2x128xf32>
    %500 = arith.addf %498, %499 : vector<2x128xf32>
    %501 = arith.negf %500 : vector<2x128xf32>
    %502 = math.exp %501 : vector<2x128xf32>
    %cst_159 = arith.constant 1.000000e+00 : f32
    %503 = vector.broadcast %cst_159 : f32 to vector<2x128xf32>
    %504 = arith.addf %503, %502 : vector<2x128xf32>
    %505 = arith.divf %503, %504 : vector<2x128xf32>
    %506 = math.tanh %500 : vector<2x128xf32>
    %507 = vector.extract_strided_slice %505 {offsets = [0, 0], sizes = [2, 32], strides = [1, 1]} : vector<2x128xf32> to vector<2x32xf32>
    %508 = vector.extract_strided_slice %505 {offsets = [0, 32], sizes = [2, 32], strides = [1, 1]} : vector<2x128xf32> to vector<2x32xf32>
    %509 = vector.extract_strided_slice %505 {offsets = [0, 64], sizes = [2, 32], strides = [1, 1]} : vector<2x128xf32> to vector<2x32xf32>
    %510 = vector.extract_strided_slice %506 {offsets = [0, 96], sizes = [2, 32], strides = [1, 1]} : vector<2x128xf32> to vector<2x32xf32>
    %511 = arith.mulf %508, %487 : vector<2x32xf32>
    %512 = arith.mulf %507, %510 : vector<2x32xf32>
    %513 = arith.addf %511, %512 : vector<2x32xf32>
    %514 = math.tanh %513 : vector<2x32xf32>
    %515 = arith.mulf %509, %514 : vector<2x32xf32>
    %516 = arith.index_cast %c5_i32_155 : i32 to index
    %c0_160 = arith.constant 0 : index
    %c0_161 = arith.constant 0 : index
    %517 = vector.load %arg1[%516, %c0_160, %c0_161] : memref<8x2x32xf32, #tpu.memory_space<vmem>>, vector<1x2x32xf32>
    %518 = vector.shape_cast %517 : vector<1x2x32xf32> to vector<2x32xf32>
    %cst_162 = arith.constant 1.000000e+00 : f32
    %519 = vector.broadcast %cst_162 : f32 to vector<2x32xf32>
    %520 = arith.subf %519, %518 : vector<2x32xf32>
    %521 = arith.mulf %518, %513 : vector<2x32xf32>
    %522 = arith.mulf %520, %487 : vector<2x32xf32>
    %523 = arith.addf %521, %522 : vector<2x32xf32>
    %524 = arith.mulf %518, %515 : vector<2x32xf32>
    %525 = arith.mulf %520, %490 : vector<2x32xf32>
    %526 = arith.addf %524, %525 : vector<2x32xf32>
    %527 = arith.mulf %518, %515 : vector<2x32xf32>
    %528 = arith.index_cast %c5_i32_155 : i32 to index
    %c0_163 = arith.constant 0 : index
    %c0_164 = arith.constant 0 : index
    %529 = vector.load %arg8[%528, %c0_163, %c0_164] : memref<8x2x32xf32, #tpu.memory_space<vmem>>, vector<1x2x32xf32>
    %530 = vector.shape_cast %529 : vector<1x2x32xf32> to vector<2x32xf32>
    %531 = vector.shape_cast %527 : vector<2x32xf32> to vector<1x2x32xf32>
    tpu.vector_store %arg8[%528, %c0_163, %c0_164], %531 {strides = array<i32>} : memref<8x2x32xf32, #tpu.memory_space<vmem>>, vector<1x2x32xf32>,
    %c6_i32_165 = arith.constant 6 : i32
    %532 = arith.index_cast %c6_i32_165 : i32 to index
    %c0_166 = arith.constant 0 : index
    %c0_167 = arith.constant 0 : index
    %533 = vector.load %arg9[%532, %c0_166, %c0_167] : memref<8x2x128xf32, #tpu.memory_space<vmem>>, vector<1x2x128xf32>
    %534 = vector.shape_cast %533 : vector<1x2x128xf32> to vector<2x128xf32>
    %cst_168 = arith.constant dense<0.000000e+00> : vector<2x128xf32>
    %535 = tpu.matmul %526, %305, %cst_168 {dimension_numbers = #tpu.dot_dimension_numbers<[1], [0], [0], [1], [0, 0, 1, 1], [], []>} : vector<2x32xf32>, vector<32x128xf32>, vector<2x128xf32> -> vector<2x128xf32>
    %536 = arith.addf %534, %535 : vector<2x128xf32>
    %537 = arith.negf %536 : vector<2x128xf32>
    %538 = math.exp %537 : vector<2x128xf32>
    %cst_169 = arith.constant 1.000000e+00 : f32
    %539 = vector.broadcast %cst_169 : f32 to vector<2x128xf32>
    %540 = arith.addf %539, %538 : vector<2x128xf32>
    %541 = arith.divf %539, %540 : vector<2x128xf32>
    %542 = math.tanh %536 : vector<2x128xf32>
    %543 = vector.extract_strided_slice %541 {offsets = [0, 0], sizes = [2, 32], strides = [1, 1]} : vector<2x128xf32> to vector<2x32xf32>
    %544 = vector.extract_strided_slice %541 {offsets = [0, 32], sizes = [2, 32], strides = [1, 1]} : vector<2x128xf32> to vector<2x32xf32>
    %545 = vector.extract_strided_slice %541 {offsets = [0, 64], sizes = [2, 32], strides = [1, 1]} : vector<2x128xf32> to vector<2x32xf32>
    %546 = vector.extract_strided_slice %542 {offsets = [0, 96], sizes = [2, 32], strides = [1, 1]} : vector<2x128xf32> to vector<2x32xf32>
    %547 = arith.mulf %544, %523 : vector<2x32xf32>
    %548 = arith.mulf %543, %546 : vector<2x32xf32>
    %549 = arith.addf %547, %548 : vector<2x32xf32>
    %550 = math.tanh %549 : vector<2x32xf32>
    %551 = arith.mulf %545, %550 : vector<2x32xf32>
    %552 = arith.index_cast %c6_i32_165 : i32 to index
    %c0_170 = arith.constant 0 : index
    %c0_171 = arith.constant 0 : index
    %553 = vector.load %arg1[%552, %c0_170, %c0_171] : memref<8x2x32xf32, #tpu.memory_space<vmem>>, vector<1x2x32xf32>
    %554 = vector.shape_cast %553 : vector<1x2x32xf32> to vector<2x32xf32>
    %cst_172 = arith.constant 1.000000e+00 : f32
    %555 = vector.broadcast %cst_172 : f32 to vector<2x32xf32>
    %556 = arith.subf %555, %554 : vector<2x32xf32>
    %557 = arith.mulf %554, %549 : vector<2x32xf32>
    %558 = arith.mulf %556, %523 : vector<2x32xf32>
    %559 = arith.addf %557, %558 : vector<2x32xf32>
    %560 = arith.mulf %554, %551 : vector<2x32xf32>
    %561 = arith.mulf %556, %526 : vector<2x32xf32>
    %562 = arith.addf %560, %561 : vector<2x32xf32>
    %563 = arith.mulf %554, %551 : vector<2x32xf32>
    %564 = arith.index_cast %c6_i32_165 : i32 to index
    %c0_173 = arith.constant 0 : index
    %c0_174 = arith.constant 0 : index
    %565 = vector.load %arg8[%564, %c0_173, %c0_174] : memref<8x2x32xf32, #tpu.memory_space<vmem>>, vector<1x2x32xf32>
    %566 = vector.shape_cast %565 : vector<1x2x32xf32> to vector<2x32xf32>
    %567 = vector.shape_cast %563 : vector<2x32xf32> to vector<1x2x32xf32>
    tpu.vector_store %arg8[%564, %c0_173, %c0_174], %567 {strides = array<i32>} : memref<8x2x32xf32, #tpu.memory_space<vmem>>, vector<1x2x32xf32>,
    %c7_i32_175 = arith.constant 7 : i32
    %568 = arith.index_cast %c7_i32_175 : i32 to index
    %c0_176 = arith.constant 0 : index
    %c0_177 = arith.constant 0 : index
    %569 = vector.load %arg9[%568, %c0_176, %c0_177] : memref<8x2x128xf32, #tpu.memory_space<vmem>>, vector<1x2x128xf32>
    %570 = vector.shape_cast %569 : vector<1x2x128xf32> to vector<2x128xf32>
    %cst_178 = arith.constant dense<0.000000e+00> : vector<2x128xf32>
    %571 = tpu.matmul %562, %305, %cst_178 {dimension_numbers = #tpu.dot_dimension_numbers<[1], [0], [0], [1], [0, 0, 1, 1], [], []>} : vector<2x32xf32>, vector<32x128xf32>, vector<2x128xf32> -> vector<2x128xf32>
    %572 = arith.addf %570, %571 : vector<2x128xf32>
    %573 = arith.negf %572 : vector<2x128xf32>
    %574 = math.exp %573 : vector<2x128xf32>
    %cst_179 = arith.constant 1.000000e+00 : f32
    %575 = vector.broadcast %cst_179 : f32 to vector<2x128xf32>
    %576 = arith.addf %575, %574 : vector<2x128xf32>
    %577 = arith.divf %575, %576 : vector<2x128xf32>
    %578 = math.tanh %572 : vector<2x128xf32>
    %579 = vector.extract_strided_slice %577 {offsets = [0, 0], sizes = [2, 32], strides = [1, 1]} : vector<2x128xf32> to vector<2x32xf32>
    %580 = vector.extract_strided_slice %577 {offsets = [0, 32], sizes = [2, 32], strides = [1, 1]} : vector<2x128xf32> to vector<2x32xf32>
    %581 = vector.extract_strided_slice %577 {offsets = [0, 64], sizes = [2, 32], strides = [1, 1]} : vector<2x128xf32> to vector<2x32xf32>
    %582 = vector.extract_strided_slice %578 {offsets = [0, 96], sizes = [2, 32], strides = [1, 1]} : vector<2x128xf32> to vector<2x32xf32>
    %583 = arith.mulf %580, %559 : vector<2x32xf32>
    %584 = arith.mulf %579, %582 : vector<2x32xf32>
    %585 = arith.addf %583, %584 : vector<2x32xf32>
    %586 = math.tanh %585 : vector<2x32xf32>
    %587 = arith.mulf %581, %586 : vector<2x32xf32>
    %588 = arith.index_cast %c7_i32_175 : i32 to index
    %c0_180 = arith.constant 0 : index
    %c0_181 = arith.constant 0 : index
    %589 = vector.load %arg1[%588, %c0_180, %c0_181] : memref<8x2x32xf32, #tpu.memory_space<vmem>>, vector<1x2x32xf32>
    %590 = vector.shape_cast %589 : vector<1x2x32xf32> to vector<2x32xf32>
    %cst_182 = arith.constant 1.000000e+00 : f32
    %591 = vector.broadcast %cst_182 : f32 to vector<2x32xf32>
    %592 = arith.subf %591, %590 : vector<2x32xf32>
    %593 = arith.mulf %590, %585 : vector<2x32xf32>
    %594 = arith.mulf %592, %559 : vector<2x32xf32>
    %595 = arith.addf %593, %594 : vector<2x32xf32>
    %596 = arith.mulf %590, %587 : vector<2x32xf32>
    %597 = arith.mulf %592, %562 : vector<2x32xf32>
    %598 = arith.addf %596, %597 : vector<2x32xf32>
    %599 = arith.mulf %590, %587 : vector<2x32xf32>
    %600 = arith.index_cast %c7_i32_175 : i32 to index
    %c0_183 = arith.constant 0 : index
    %c0_184 = arith.constant 0 : index
    %601 = vector.load %arg8[%600, %c0_183, %c0_184] : memref<8x2x32xf32, #tpu.memory_space<vmem>>, vector<1x2x32xf32>
    %602 = vector.shape_cast %601 : vector<1x2x32xf32> to vector<2x32xf32>
    %603 = vector.shape_cast %599 : vector<2x32xf32> to vector<1x2x32xf32>
    tpu.vector_store %arg8[%600, %c0_183, %c0_184], %603 {strides = array<i32>} : memref<8x2x32xf32, #tpu.memory_space<vmem>>, vector<1x2x32xf32>,
    %c8_i32_185 = arith.constant 8 : i32
    %c2 = arith.constant 2 : index
    %c0_186 = arith.constant 0 : index
    %c0_187 = arith.constant 0 : index
    %604 = vector.load %arg2[%c2, %c0_186, %c0_187] : memref<4x32x128xf32, #tpu.memory_space<vmem>>, vector<1x32x128xf32>
    %605 = vector.shape_cast %604 : vector<1x32x128xf32> to vector<32x128xf32>
    %c2_188 = arith.constant 2 : index
    %c0_189 = arith.constant 0 : index
    %c0_190 = arith.constant 0 : index
    %606 = vector.load %arg3[%c2_188, %c0_189, %c0_190] : memref<4x32x128xf32, #tpu.memory_space<vmem>>, vector<1x32x128xf32>
    %607 = vector.shape_cast %606 : vector<1x32x128xf32> to vector<32x128xf32>
    %c2_191 = arith.constant 2 : index
    %c0_192 = arith.constant 0 : index
    %c0_193 = arith.constant 0 : index
    %608 = vector.load %arg4[%c2_191, %c0_192, %c0_193] : memref<4x1x128xf32, #tpu.memory_space<vmem>>, vector<1x1x128xf32>
    %609 = vector.shape_cast %608 : vector<1x1x128xf32> to vector<1x128xf32>
    %c0_194 = arith.constant 0 : index
    %c0_195 = arith.constant 0 : index
    %c0_196 = arith.constant 0 : index
    %610 = vector.load %arg8[%c0_194, %c0_195, %c0_196] : memref<8x2x32xf32, #tpu.memory_space<vmem>>, vector<8x2x32xf32>
    %cst_197 = arith.constant dense<0.000000e+00> : vector<8x2x128xf32>
    %611 = tpu.matmul %610, %605, %cst_197 {dimension_numbers = #tpu.dot_dimension_numbers<[2], [0], [0, 1], [1], [0, 0, 0, 1, 1, 1], [], []>} : vector<8x2x32xf32>, vector<32x128xf32>, vector<8x2x128xf32> -> vector<8x2x128xf32>
    %612 = vector.shape_cast %609 : vector<1x128xf32> to vector<1x1x128xf32>
    %613 = vector.broadcast %612 : vector<1x1x128xf32> to vector<8x2x128xf32>
    %614 = arith.addf %611, %613 : vector<8x2x128xf32>
    %c0_198 = arith.constant 0 : index
    %c0_199 = arith.constant 0 : index
    %c0_200 = arith.constant 0 : index
    %615 = vector.load %arg9[%c0_198, %c0_199, %c0_200] : memref<8x2x128xf32, #tpu.memory_space<vmem>>, vector<8x2x128xf32>
    tpu.vector_store %arg9[%c0_198, %c0_199, %c0_200], %614 {strides = array<i32>} : memref<8x2x128xf32, #tpu.memory_space<vmem>>, vector<8x2x128xf32>,
    %cst_201 = arith.constant 0.000000e+00 : f32
    %616 = vector.broadcast %cst_201 : f32 to vector<2x32xf32>
    %cst_202 = arith.constant 0.000000e+00 : f32
    %617 = vector.broadcast %cst_202 : f32 to vector<2x32xf32>
    %c0_i32_203 = arith.constant 0 : i32
    %618 = arith.index_cast %c0_i32_203 : i32 to index
    %c0_204 = arith.constant 0 : index
    %c0_205 = arith.constant 0 : index
    %619 = vector.load %arg9[%618, %c0_204, %c0_205] : memref<8x2x128xf32, #tpu.memory_space<vmem>>, vector<1x2x128xf32>
    %620 = vector.shape_cast %619 : vector<1x2x128xf32> to vector<2x128xf32>
    %cst_206 = arith.constant dense<0.000000e+00> : vector<2x128xf32>
    %621 = tpu.matmul %616, %607, %cst_206 {dimension_numbers = #tpu.dot_dimension_numbers<[1], [0], [0], [1], [0, 0, 1, 1], [], []>} : vector<2x32xf32>, vector<32x128xf32>, vector<2x128xf32> -> vector<2x128xf32>
    %622 = arith.addf %620, %621 : vector<2x128xf32>
    %623 = arith.negf %622 : vector<2x128xf32>
    %624 = math.exp %623 : vector<2x128xf32>
    %cst_207 = arith.constant 1.000000e+00 : f32
    %625 = vector.broadcast %cst_207 : f32 to vector<2x128xf32>
    %626 = arith.addf %625, %624 : vector<2x128xf32>
    %627 = arith.divf %625, %626 : vector<2x128xf32>
    %628 = math.tanh %622 : vector<2x128xf32>
    %629 = vector.extract_strided_slice %627 {offsets = [0, 0], sizes = [2, 32], strides = [1, 1]} : vector<2x128xf32> to vector<2x32xf32>
    %630 = vector.extract_strided_slice %627 {offsets = [0, 32], sizes = [2, 32], strides = [1, 1]} : vector<2x128xf32> to vector<2x32xf32>
    %631 = vector.extract_strided_slice %627 {offsets = [0, 64], sizes = [2, 32], strides = [1, 1]} : vector<2x128xf32> to vector<2x32xf32>
    %632 = vector.extract_strided_slice %628 {offsets = [0, 96], sizes = [2, 32], strides = [1, 1]} : vector<2x128xf32> to vector<2x32xf32>
    %633 = arith.mulf %630, %617 : vector<2x32xf32>
    %634 = arith.mulf %629, %632 : vector<2x32xf32>
    %635 = arith.addf %633, %634 : vector<2x32xf32>
    %636 = math.tanh %635 : vector<2x32xf32>
    %637 = arith.mulf %631, %636 : vector<2x32xf32>
    %638 = arith.index_cast %c0_i32_203 : i32 to index
    %c0_208 = arith.constant 0 : index
    %c0_209 = arith.constant 0 : index
    %639 = vector.load %arg1[%638, %c0_208, %c0_209] : memref<8x2x32xf32, #tpu.memory_space<vmem>>, vector<1x2x32xf32>
    %640 = vector.shape_cast %639 : vector<1x2x32xf32> to vector<2x32xf32>
    %cst_210 = arith.constant 1.000000e+00 : f32
    %641 = vector.broadcast %cst_210 : f32 to vector<2x32xf32>
    %642 = arith.subf %641, %640 : vector<2x32xf32>
    %643 = arith.mulf %640, %635 : vector<2x32xf32>
    %644 = arith.mulf %642, %617 : vector<2x32xf32>
    %645 = arith.addf %643, %644 : vector<2x32xf32>
    %646 = arith.mulf %640, %637 : vector<2x32xf32>
    %647 = arith.mulf %642, %616 : vector<2x32xf32>
    %648 = arith.addf %646, %647 : vector<2x32xf32>
    %649 = arith.mulf %640, %637 : vector<2x32xf32>
    %650 = arith.index_cast %c0_i32_203 : i32 to index
    %c0_211 = arith.constant 0 : index
    %c0_212 = arith.constant 0 : index
    %651 = vector.load %arg8[%650, %c0_211, %c0_212] : memref<8x2x32xf32, #tpu.memory_space<vmem>>, vector<1x2x32xf32>
    %652 = vector.shape_cast %651 : vector<1x2x32xf32> to vector<2x32xf32>
    %653 = vector.shape_cast %649 : vector<2x32xf32> to vector<1x2x32xf32>
    tpu.vector_store %arg8[%650, %c0_211, %c0_212], %653 {strides = array<i32>} : memref<8x2x32xf32, #tpu.memory_space<vmem>>, vector<1x2x32xf32>,
    %c1_i32_213 = arith.constant 1 : i32
    %654 = arith.index_cast %c1_i32_213 : i32 to index
    %c0_214 = arith.constant 0 : index
    %c0_215 = arith.constant 0 : index
    %655 = vector.load %arg9[%654, %c0_214, %c0_215] : memref<8x2x128xf32, #tpu.memory_space<vmem>>, vector<1x2x128xf32>
    %656 = vector.shape_cast %655 : vector<1x2x128xf32> to vector<2x128xf32>
    %cst_216 = arith.constant dense<0.000000e+00> : vector<2x128xf32>
    %657 = tpu.matmul %648, %607, %cst_216 {dimension_numbers = #tpu.dot_dimension_numbers<[1], [0], [0], [1], [0, 0, 1, 1], [], []>} : vector<2x32xf32>, vector<32x128xf32>, vector<2x128xf32> -> vector<2x128xf32>
    %658 = arith.addf %656, %657 : vector<2x128xf32>
    %659 = arith.negf %658 : vector<2x128xf32>
    %660 = math.exp %659 : vector<2x128xf32>
    %cst_217 = arith.constant 1.000000e+00 : f32
    %661 = vector.broadcast %cst_217 : f32 to vector<2x128xf32>
    %662 = arith.addf %661, %660 : vector<2x128xf32>
    %663 = arith.divf %661, %662 : vector<2x128xf32>
    %664 = math.tanh %658 : vector<2x128xf32>
    %665 = vector.extract_strided_slice %663 {offsets = [0, 0], sizes = [2, 32], strides = [1, 1]} : vector<2x128xf32> to vector<2x32xf32>
    %666 = vector.extract_strided_slice %663 {offsets = [0, 32], sizes = [2, 32], strides = [1, 1]} : vector<2x128xf32> to vector<2x32xf32>
    %667 = vector.extract_strided_slice %663 {offsets = [0, 64], sizes = [2, 32], strides = [1, 1]} : vector<2x128xf32> to vector<2x32xf32>
    %668 = vector.extract_strided_slice %664 {offsets = [0, 96], sizes = [2, 32], strides = [1, 1]} : vector<2x128xf32> to vector<2x32xf32>
    %669 = arith.mulf %666, %645 : vector<2x32xf32>
    %670 = arith.mulf %665, %668 : vector<2x32xf32>
    %671 = arith.addf %669, %670 : vector<2x32xf32>
    %672 = math.tanh %671 : vector<2x32xf32>
    %673 = arith.mulf %667, %672 : vector<2x32xf32>
    %674 = arith.index_cast %c1_i32_213 : i32 to index
    %c0_218 = arith.constant 0 : index
    %c0_219 = arith.constant 0 : index
    %675 = vector.load %arg1[%674, %c0_218, %c0_219] : memref<8x2x32xf32, #tpu.memory_space<vmem>>, vector<1x2x32xf32>
    %676 = vector.shape_cast %675 : vector<1x2x32xf32> to vector<2x32xf32>
    %cst_220 = arith.constant 1.000000e+00 : f32
    %677 = vector.broadcast %cst_220 : f32 to vector<2x32xf32>
    %678 = arith.subf %677, %676 : vector<2x32xf32>
    %679 = arith.mulf %676, %671 : vector<2x32xf32>
    %680 = arith.mulf %678, %645 : vector<2x32xf32>
    %681 = arith.addf %679, %680 : vector<2x32xf32>
    %682 = arith.mulf %676, %673 : vector<2x32xf32>
    %683 = arith.mulf %678, %648 : vector<2x32xf32>
    %684 = arith.addf %682, %683 : vector<2x32xf32>
    %685 = arith.mulf %676, %673 : vector<2x32xf32>
    %686 = arith.index_cast %c1_i32_213 : i32 to index
    %c0_221 = arith.constant 0 : index
    %c0_222 = arith.constant 0 : index
    %687 = vector.load %arg8[%686, %c0_221, %c0_222] : memref<8x2x32xf32, #tpu.memory_space<vmem>>, vector<1x2x32xf32>
    %688 = vector.shape_cast %687 : vector<1x2x32xf32> to vector<2x32xf32>
    %689 = vector.shape_cast %685 : vector<2x32xf32> to vector<1x2x32xf32>
    tpu.vector_store %arg8[%686, %c0_221, %c0_222], %689 {strides = array<i32>} : memref<8x2x32xf32, #tpu.memory_space<vmem>>, vector<1x2x32xf32>,
    %c2_i32_223 = arith.constant 2 : i32
    %690 = arith.index_cast %c2_i32_223 : i32 to index
    %c0_224 = arith.constant 0 : index
    %c0_225 = arith.constant 0 : index
    %691 = vector.load %arg9[%690, %c0_224, %c0_225] : memref<8x2x128xf32, #tpu.memory_space<vmem>>, vector<1x2x128xf32>
    %692 = vector.shape_cast %691 : vector<1x2x128xf32> to vector<2x128xf32>
    %cst_226 = arith.constant dense<0.000000e+00> : vector<2x128xf32>
    %693 = tpu.matmul %684, %607, %cst_226 {dimension_numbers = #tpu.dot_dimension_numbers<[1], [0], [0], [1], [0, 0, 1, 1], [], []>} : vector<2x32xf32>, vector<32x128xf32>, vector<2x128xf32> -> vector<2x128xf32>
    %694 = arith.addf %692, %693 : vector<2x128xf32>
    %695 = arith.negf %694 : vector<2x128xf32>
    %696 = math.exp %695 : vector<2x128xf32>
    %cst_227 = arith.constant 1.000000e+00 : f32
    %697 = vector.broadcast %cst_227 : f32 to vector<2x128xf32>
    %698 = arith.addf %697, %696 : vector<2x128xf32>
    %699 = arith.divf %697, %698 : vector<2x128xf32>
    %700 = math.tanh %694 : vector<2x128xf32>
    %701 = vector.extract_strided_slice %699 {offsets = [0, 0], sizes = [2, 32], strides = [1, 1]} : vector<2x128xf32> to vector<2x32xf32>
    %702 = vector.extract_strided_slice %699 {offsets = [0, 32], sizes = [2, 32], strides = [1, 1]} : vector<2x128xf32> to vector<2x32xf32>
    %703 = vector.extract_strided_slice %699 {offsets = [0, 64], sizes = [2, 32], strides = [1, 1]} : vector<2x128xf32> to vector<2x32xf32>
    %704 = vector.extract_strided_slice %700 {offsets = [0, 96], sizes = [2, 32], strides = [1, 1]} : vector<2x128xf32> to vector<2x32xf32>
    %705 = arith.mulf %702, %681 : vector<2x32xf32>
    %706 = arith.mulf %701, %704 : vector<2x32xf32>
    %707 = arith.addf %705, %706 : vector<2x32xf32>
    %708 = math.tanh %707 : vector<2x32xf32>
    %709 = arith.mulf %703, %708 : vector<2x32xf32>
    %710 = arith.index_cast %c2_i32_223 : i32 to index
    %c0_228 = arith.constant 0 : index
    %c0_229 = arith.constant 0 : index
    %711 = vector.load %arg1[%710, %c0_228, %c0_229] : memref<8x2x32xf32, #tpu.memory_space<vmem>>, vector<1x2x32xf32>
    %712 = vector.shape_cast %711 : vector<1x2x32xf32> to vector<2x32xf32>
    %cst_230 = arith.constant 1.000000e+00 : f32
    %713 = vector.broadcast %cst_230 : f32 to vector<2x32xf32>
    %714 = arith.subf %713, %712 : vector<2x32xf32>
    %715 = arith.mulf %712, %707 : vector<2x32xf32>
    %716 = arith.mulf %714, %681 : vector<2x32xf32>
    %717 = arith.addf %715, %716 : vector<2x32xf32>
    %718 = arith.mulf %712, %709 : vector<2x32xf32>
    %719 = arith.mulf %714, %684 : vector<2x32xf32>
    %720 = arith.addf %718, %719 : vector<2x32xf32>
    %721 = arith.mulf %712, %709 : vector<2x32xf32>
    %722 = arith.index_cast %c2_i32_223 : i32 to index
    %c0_231 = arith.constant 0 : index
    %c0_232 = arith.constant 0 : index
    %723 = vector.load %arg8[%722, %c0_231, %c0_232] : memref<8x2x32xf32, #tpu.memory_space<vmem>>, vector<1x2x32xf32>
    %724 = vector.shape_cast %723 : vector<1x2x32xf32> to vector<2x32xf32>
    %725 = vector.shape_cast %721 : vector<2x32xf32> to vector<1x2x32xf32>
    tpu.vector_store %arg8[%722, %c0_231, %c0_232], %725 {strides = array<i32>} : memref<8x2x32xf32, #tpu.memory_space<vmem>>, vector<1x2x32xf32>,
    %c3_i32_233 = arith.constant 3 : i32
    %726 = arith.index_cast %c3_i32_233 : i32 to index
    %c0_234 = arith.constant 0 : index
    %c0_235 = arith.constant 0 : index
    %727 = vector.load %arg9[%726, %c0_234, %c0_235] : memref<8x2x128xf32, #tpu.memory_space<vmem>>, vector<1x2x128xf32>
    %728 = vector.shape_cast %727 : vector<1x2x128xf32> to vector<2x128xf32>
    %cst_236 = arith.constant dense<0.000000e+00> : vector<2x128xf32>
    %729 = tpu.matmul %720, %607, %cst_236 {dimension_numbers = #tpu.dot_dimension_numbers<[1], [0], [0], [1], [0, 0, 1, 1], [], []>} : vector<2x32xf32>, vector<32x128xf32>, vector<2x128xf32> -> vector<2x128xf32>
    %730 = arith.addf %728, %729 : vector<2x128xf32>
    %731 = arith.negf %730 : vector<2x128xf32>
    %732 = math.exp %731 : vector<2x128xf32>
    %cst_237 = arith.constant 1.000000e+00 : f32
    %733 = vector.broadcast %cst_237 : f32 to vector<2x128xf32>
    %734 = arith.addf %733, %732 : vector<2x128xf32>
    %735 = arith.divf %733, %734 : vector<2x128xf32>
    %736 = math.tanh %730 : vector<2x128xf32>
    %737 = vector.extract_strided_slice %735 {offsets = [0, 0], sizes = [2, 32], strides = [1, 1]} : vector<2x128xf32> to vector<2x32xf32>
    %738 = vector.extract_strided_slice %735 {offsets = [0, 32], sizes = [2, 32], strides = [1, 1]} : vector<2x128xf32> to vector<2x32xf32>
    %739 = vector.extract_strided_slice %735 {offsets = [0, 64], sizes = [2, 32], strides = [1, 1]} : vector<2x128xf32> to vector<2x32xf32>
    %740 = vector.extract_strided_slice %736 {offsets = [0, 96], sizes = [2, 32], strides = [1, 1]} : vector<2x128xf32> to vector<2x32xf32>
    %741 = arith.mulf %738, %717 : vector<2x32xf32>
    %742 = arith.mulf %737, %740 : vector<2x32xf32>
    %743 = arith.addf %741, %742 : vector<2x32xf32>
    %744 = math.tanh %743 : vector<2x32xf32>
    %745 = arith.mulf %739, %744 : vector<2x32xf32>
    %746 = arith.index_cast %c3_i32_233 : i32 to index
    %c0_238 = arith.constant 0 : index
    %c0_239 = arith.constant 0 : index
    %747 = vector.load %arg1[%746, %c0_238, %c0_239] : memref<8x2x32xf32, #tpu.memory_space<vmem>>, vector<1x2x32xf32>
    %748 = vector.shape_cast %747 : vector<1x2x32xf32> to vector<2x32xf32>
    %cst_240 = arith.constant 1.000000e+00 : f32
    %749 = vector.broadcast %cst_240 : f32 to vector<2x32xf32>
    %750 = arith.subf %749, %748 : vector<2x32xf32>
    %751 = arith.mulf %748, %743 : vector<2x32xf32>
    %752 = arith.mulf %750, %717 : vector<2x32xf32>
    %753 = arith.addf %751, %752 : vector<2x32xf32>
    %754 = arith.mulf %748, %745 : vector<2x32xf32>
    %755 = arith.mulf %750, %720 : vector<2x32xf32>
    %756 = arith.addf %754, %755 : vector<2x32xf32>
    %757 = arith.mulf %748, %745 : vector<2x32xf32>
    %758 = arith.index_cast %c3_i32_233 : i32 to index
    %c0_241 = arith.constant 0 : index
    %c0_242 = arith.constant 0 : index
    %759 = vector.load %arg8[%758, %c0_241, %c0_242] : memref<8x2x32xf32, #tpu.memory_space<vmem>>, vector<1x2x32xf32>
    %760 = vector.shape_cast %759 : vector<1x2x32xf32> to vector<2x32xf32>
    %761 = vector.shape_cast %757 : vector<2x32xf32> to vector<1x2x32xf32>
    tpu.vector_store %arg8[%758, %c0_241, %c0_242], %761 {strides = array<i32>} : memref<8x2x32xf32, #tpu.memory_space<vmem>>, vector<1x2x32xf32>,
    %c4_i32_243 = arith.constant 4 : i32
    %762 = arith.index_cast %c4_i32_243 : i32 to index
    %c0_244 = arith.constant 0 : index
    %c0_245 = arith.constant 0 : index
    %763 = vector.load %arg9[%762, %c0_244, %c0_245] : memref<8x2x128xf32, #tpu.memory_space<vmem>>, vector<1x2x128xf32>
    %764 = vector.shape_cast %763 : vector<1x2x128xf32> to vector<2x128xf32>
    %cst_246 = arith.constant dense<0.000000e+00> : vector<2x128xf32>
    %765 = tpu.matmul %756, %607, %cst_246 {dimension_numbers = #tpu.dot_dimension_numbers<[1], [0], [0], [1], [0, 0, 1, 1], [], []>} : vector<2x32xf32>, vector<32x128xf32>, vector<2x128xf32> -> vector<2x128xf32>
    %766 = arith.addf %764, %765 : vector<2x128xf32>
    %767 = arith.negf %766 : vector<2x128xf32>
    %768 = math.exp %767 : vector<2x128xf32>
    %cst_247 = arith.constant 1.000000e+00 : f32
    %769 = vector.broadcast %cst_247 : f32 to vector<2x128xf32>
    %770 = arith.addf %769, %768 : vector<2x128xf32>
    %771 = arith.divf %769, %770 : vector<2x128xf32>
    %772 = math.tanh %766 : vector<2x128xf32>
    %773 = vector.extract_strided_slice %771 {offsets = [0, 0], sizes = [2, 32], strides = [1, 1]} : vector<2x128xf32> to vector<2x32xf32>
    %774 = vector.extract_strided_slice %771 {offsets = [0, 32], sizes = [2, 32], strides = [1, 1]} : vector<2x128xf32> to vector<2x32xf32>
    %775 = vector.extract_strided_slice %771 {offsets = [0, 64], sizes = [2, 32], strides = [1, 1]} : vector<2x128xf32> to vector<2x32xf32>
    %776 = vector.extract_strided_slice %772 {offsets = [0, 96], sizes = [2, 32], strides = [1, 1]} : vector<2x128xf32> to vector<2x32xf32>
    %777 = arith.mulf %774, %753 : vector<2x32xf32>
    %778 = arith.mulf %773, %776 : vector<2x32xf32>
    %779 = arith.addf %777, %778 : vector<2x32xf32>
    %780 = math.tanh %779 : vector<2x32xf32>
    %781 = arith.mulf %775, %780 : vector<2x32xf32>
    %782 = arith.index_cast %c4_i32_243 : i32 to index
    %c0_248 = arith.constant 0 : index
    %c0_249 = arith.constant 0 : index
    %783 = vector.load %arg1[%782, %c0_248, %c0_249] : memref<8x2x32xf32, #tpu.memory_space<vmem>>, vector<1x2x32xf32>
    %784 = vector.shape_cast %783 : vector<1x2x32xf32> to vector<2x32xf32>
    %cst_250 = arith.constant 1.000000e+00 : f32
    %785 = vector.broadcast %cst_250 : f32 to vector<2x32xf32>
    %786 = arith.subf %785, %784 : vector<2x32xf32>
    %787 = arith.mulf %784, %779 : vector<2x32xf32>
    %788 = arith.mulf %786, %753 : vector<2x32xf32>
    %789 = arith.addf %787, %788 : vector<2x32xf32>
    %790 = arith.mulf %784, %781 : vector<2x32xf32>
    %791 = arith.mulf %786, %756 : vector<2x32xf32>
    %792 = arith.addf %790, %791 : vector<2x32xf32>
    %793 = arith.mulf %784, %781 : vector<2x32xf32>
    %794 = arith.index_cast %c4_i32_243 : i32 to index
    %c0_251 = arith.constant 0 : index
    %c0_252 = arith.constant 0 : index
    %795 = vector.load %arg8[%794, %c0_251, %c0_252] : memref<8x2x32xf32, #tpu.memory_space<vmem>>, vector<1x2x32xf32>
    %796 = vector.shape_cast %795 : vector<1x2x32xf32> to vector<2x32xf32>
    %797 = vector.shape_cast %793 : vector<2x32xf32> to vector<1x2x32xf32>
    tpu.vector_store %arg8[%794, %c0_251, %c0_252], %797 {strides = array<i32>} : memref<8x2x32xf32, #tpu.memory_space<vmem>>, vector<1x2x32xf32>,
    %c5_i32_253 = arith.constant 5 : i32
    %798 = arith.index_cast %c5_i32_253 : i32 to index
    %c0_254 = arith.constant 0 : index
    %c0_255 = arith.constant 0 : index
    %799 = vector.load %arg9[%798, %c0_254, %c0_255] : memref<8x2x128xf32, #tpu.memory_space<vmem>>, vector<1x2x128xf32>
    %800 = vector.shape_cast %799 : vector<1x2x128xf32> to vector<2x128xf32>
    %cst_256 = arith.constant dense<0.000000e+00> : vector<2x128xf32>
    %801 = tpu.matmul %792, %607, %cst_256 {dimension_numbers = #tpu.dot_dimension_numbers<[1], [0], [0], [1], [0, 0, 1, 1], [], []>} : vector<2x32xf32>, vector<32x128xf32>, vector<2x128xf32> -> vector<2x128xf32>
    %802 = arith.addf %800, %801 : vector<2x128xf32>
    %803 = arith.negf %802 : vector<2x128xf32>
    %804 = math.exp %803 : vector<2x128xf32>
    %cst_257 = arith.constant 1.000000e+00 : f32
    %805 = vector.broadcast %cst_257 : f32 to vector<2x128xf32>
    %806 = arith.addf %805, %804 : vector<2x128xf32>
    %807 = arith.divf %805, %806 : vector<2x128xf32>
    %808 = math.tanh %802 : vector<2x128xf32>
    %809 = vector.extract_strided_slice %807 {offsets = [0, 0], sizes = [2, 32], strides = [1, 1]} : vector<2x128xf32> to vector<2x32xf32>
    %810 = vector.extract_strided_slice %807 {offsets = [0, 32], sizes = [2, 32], strides = [1, 1]} : vector<2x128xf32> to vector<2x32xf32>
    %811 = vector.extract_strided_slice %807 {offsets = [0, 64], sizes = [2, 32], strides = [1, 1]} : vector<2x128xf32> to vector<2x32xf32>
    %812 = vector.extract_strided_slice %808 {offsets = [0, 96], sizes = [2, 32], strides = [1, 1]} : vector<2x128xf32> to vector<2x32xf32>
    %813 = arith.mulf %810, %789 : vector<2x32xf32>
    %814 = arith.mulf %809, %812 : vector<2x32xf32>
    %815 = arith.addf %813, %814 : vector<2x32xf32>
    %816 = math.tanh %815 : vector<2x32xf32>
    %817 = arith.mulf %811, %816 : vector<2x32xf32>
    %818 = arith.index_cast %c5_i32_253 : i32 to index
    %c0_258 = arith.constant 0 : index
    %c0_259 = arith.constant 0 : index
    %819 = vector.load %arg1[%818, %c0_258, %c0_259] : memref<8x2x32xf32, #tpu.memory_space<vmem>>, vector<1x2x32xf32>
    %820 = vector.shape_cast %819 : vector<1x2x32xf32> to vector<2x32xf32>
    %cst_260 = arith.constant 1.000000e+00 : f32
    %821 = vector.broadcast %cst_260 : f32 to vector<2x32xf32>
    %822 = arith.subf %821, %820 : vector<2x32xf32>
    %823 = arith.mulf %820, %815 : vector<2x32xf32>
    %824 = arith.mulf %822, %789 : vector<2x32xf32>
    %825 = arith.addf %823, %824 : vector<2x32xf32>
    %826 = arith.mulf %820, %817 : vector<2x32xf32>
    %827 = arith.mulf %822, %792 : vector<2x32xf32>
    %828 = arith.addf %826, %827 : vector<2x32xf32>
    %829 = arith.mulf %820, %817 : vector<2x32xf32>
    %830 = arith.index_cast %c5_i32_253 : i32 to index
    %c0_261 = arith.constant 0 : index
    %c0_262 = arith.constant 0 : index
    %831 = vector.load %arg8[%830, %c0_261, %c0_262] : memref<8x2x32xf32, #tpu.memory_space<vmem>>, vector<1x2x32xf32>
    %832 = vector.shape_cast %831 : vector<1x2x32xf32> to vector<2x32xf32>
    %833 = vector.shape_cast %829 : vector<2x32xf32> to vector<1x2x32xf32>
    tpu.vector_store %arg8[%830, %c0_261, %c0_262], %833 {strides = array<i32>} : memref<8x2x32xf32, #tpu.memory_space<vmem>>, vector<1x2x32xf32>,
    %c6_i32_263 = arith.constant 6 : i32
    %834 = arith.index_cast %c6_i32_263 : i32 to index
    %c0_264 = arith.constant 0 : index
    %c0_265 = arith.constant 0 : index
    %835 = vector.load %arg9[%834, %c0_264, %c0_265] : memref<8x2x128xf32, #tpu.memory_space<vmem>>, vector<1x2x128xf32>
    %836 = vector.shape_cast %835 : vector<1x2x128xf32> to vector<2x128xf32>
    %cst_266 = arith.constant dense<0.000000e+00> : vector<2x128xf32>
    %837 = tpu.matmul %828, %607, %cst_266 {dimension_numbers = #tpu.dot_dimension_numbers<[1], [0], [0], [1], [0, 0, 1, 1], [], []>} : vector<2x32xf32>, vector<32x128xf32>, vector<2x128xf32> -> vector<2x128xf32>
    %838 = arith.addf %836, %837 : vector<2x128xf32>
    %839 = arith.negf %838 : vector<2x128xf32>
    %840 = math.exp %839 : vector<2x128xf32>
    %cst_267 = arith.constant 1.000000e+00 : f32
    %841 = vector.broadcast %cst_267 : f32 to vector<2x128xf32>
    %842 = arith.addf %841, %840 : vector<2x128xf32>
    %843 = arith.divf %841, %842 : vector<2x128xf32>
    %844 = math.tanh %838 : vector<2x128xf32>
    %845 = vector.extract_strided_slice %843 {offsets = [0, 0], sizes = [2, 32], strides = [1, 1]} : vector<2x128xf32> to vector<2x32xf32>
    %846 = vector.extract_strided_slice %843 {offsets = [0, 32], sizes = [2, 32], strides = [1, 1]} : vector<2x128xf32> to vector<2x32xf32>
    %847 = vector.extract_strided_slice %843 {offsets = [0, 64], sizes = [2, 32], strides = [1, 1]} : vector<2x128xf32> to vector<2x32xf32>
    %848 = vector.extract_strided_slice %844 {offsets = [0, 96], sizes = [2, 32], strides = [1, 1]} : vector<2x128xf32> to vector<2x32xf32>
    %849 = arith.mulf %846, %825 : vector<2x32xf32>
    %850 = arith.mulf %845, %848 : vector<2x32xf32>
    %851 = arith.addf %849, %850 : vector<2x32xf32>
    %852 = math.tanh %851 : vector<2x32xf32>
    %853 = arith.mulf %847, %852 : vector<2x32xf32>
    %854 = arith.index_cast %c6_i32_263 : i32 to index
    %c0_268 = arith.constant 0 : index
    %c0_269 = arith.constant 0 : index
    %855 = vector.load %arg1[%854, %c0_268, %c0_269] : memref<8x2x32xf32, #tpu.memory_space<vmem>>, vector<1x2x32xf32>
    %856 = vector.shape_cast %855 : vector<1x2x32xf32> to vector<2x32xf32>
    %cst_270 = arith.constant 1.000000e+00 : f32
    %857 = vector.broadcast %cst_270 : f32 to vector<2x32xf32>
    %858 = arith.subf %857, %856 : vector<2x32xf32>
    %859 = arith.mulf %856, %851 : vector<2x32xf32>
    %860 = arith.mulf %858, %825 : vector<2x32xf32>
    %861 = arith.addf %859, %860 : vector<2x32xf32>
    %862 = arith.mulf %856, %853 : vector<2x32xf32>
    %863 = arith.mulf %858, %828 : vector<2x32xf32>
    %864 = arith.addf %862, %863 : vector<2x32xf32>
    %865 = arith.mulf %856, %853 : vector<2x32xf32>
    %866 = arith.index_cast %c6_i32_263 : i32 to index
    %c0_271 = arith.constant 0 : index
    %c0_272 = arith.constant 0 : index
    %867 = vector.load %arg8[%866, %c0_271, %c0_272] : memref<8x2x32xf32, #tpu.memory_space<vmem>>, vector<1x2x32xf32>
    %868 = vector.shape_cast %867 : vector<1x2x32xf32> to vector<2x32xf32>
    %869 = vector.shape_cast %865 : vector<2x32xf32> to vector<1x2x32xf32>
    tpu.vector_store %arg8[%866, %c0_271, %c0_272], %869 {strides = array<i32>} : memref<8x2x32xf32, #tpu.memory_space<vmem>>, vector<1x2x32xf32>,
    %c7_i32_273 = arith.constant 7 : i32
    %870 = arith.index_cast %c7_i32_273 : i32 to index
    %c0_274 = arith.constant 0 : index
    %c0_275 = arith.constant 0 : index
    %871 = vector.load %arg9[%870, %c0_274, %c0_275] : memref<8x2x128xf32, #tpu.memory_space<vmem>>, vector<1x2x128xf32>
    %872 = vector.shape_cast %871 : vector<1x2x128xf32> to vector<2x128xf32>
    %cst_276 = arith.constant dense<0.000000e+00> : vector<2x128xf32>
    %873 = tpu.matmul %864, %607, %cst_276 {dimension_numbers = #tpu.dot_dimension_numbers<[1], [0], [0], [1], [0, 0, 1, 1], [], []>} : vector<2x32xf32>, vector<32x128xf32>, vector<2x128xf32> -> vector<2x128xf32>
    %874 = arith.addf %872, %873 : vector<2x128xf32>
    %875 = arith.negf %874 : vector<2x128xf32>
    %876 = math.exp %875 : vector<2x128xf32>
    %cst_277 = arith.constant 1.000000e+00 : f32
    %877 = vector.broadcast %cst_277 : f32 to vector<2x128xf32>
    %878 = arith.addf %877, %876 : vector<2x128xf32>
    %879 = arith.divf %877, %878 : vector<2x128xf32>
    %880 = math.tanh %874 : vector<2x128xf32>
    %881 = vector.extract_strided_slice %879 {offsets = [0, 0], sizes = [2, 32], strides = [1, 1]} : vector<2x128xf32> to vector<2x32xf32>
    %882 = vector.extract_strided_slice %879 {offsets = [0, 32], sizes = [2, 32], strides = [1, 1]} : vector<2x128xf32> to vector<2x32xf32>
    %883 = vector.extract_strided_slice %879 {offsets = [0, 64], sizes = [2, 32], strides = [1, 1]} : vector<2x128xf32> to vector<2x32xf32>
    %884 = vector.extract_strided_slice %880 {offsets = [0, 96], sizes = [2, 32], strides = [1, 1]} : vector<2x128xf32> to vector<2x32xf32>
    %885 = arith.mulf %882, %861 : vector<2x32xf32>
    %886 = arith.mulf %881, %884 : vector<2x32xf32>
    %887 = arith.addf %885, %886 : vector<2x32xf32>
    %888 = math.tanh %887 : vector<2x32xf32>
    %889 = arith.mulf %883, %888 : vector<2x32xf32>
    %890 = arith.index_cast %c7_i32_273 : i32 to index
    %c0_278 = arith.constant 0 : index
    %c0_279 = arith.constant 0 : index
    %891 = vector.load %arg1[%890, %c0_278, %c0_279] : memref<8x2x32xf32, #tpu.memory_space<vmem>>, vector<1x2x32xf32>
    %892 = vector.shape_cast %891 : vector<1x2x32xf32> to vector<2x32xf32>
    %cst_280 = arith.constant 1.000000e+00 : f32
    %893 = vector.broadcast %cst_280 : f32 to vector<2x32xf32>
    %894 = arith.subf %893, %892 : vector<2x32xf32>
    %895 = arith.mulf %892, %887 : vector<2x32xf32>
    %896 = arith.mulf %894, %861 : vector<2x32xf32>
    %897 = arith.addf %895, %896 : vector<2x32xf32>
    %898 = arith.mulf %892, %889 : vector<2x32xf32>
    %899 = arith.mulf %894, %864 : vector<2x32xf32>
    %900 = arith.addf %898, %899 : vector<2x32xf32>
    %901 = arith.mulf %892, %889 : vector<2x32xf32>
    %902 = arith.index_cast %c7_i32_273 : i32 to index
    %c0_281 = arith.constant 0 : index
    %c0_282 = arith.constant 0 : index
    %903 = vector.load %arg8[%902, %c0_281, %c0_282] : memref<8x2x32xf32, #tpu.memory_space<vmem>>, vector<1x2x32xf32>
    %904 = vector.shape_cast %903 : vector<1x2x32xf32> to vector<2x32xf32>
    %905 = vector.shape_cast %901 : vector<2x32xf32> to vector<1x2x32xf32>
    tpu.vector_store %arg8[%902, %c0_281, %c0_282], %905 {strides = array<i32>} : memref<8x2x32xf32, #tpu.memory_space<vmem>>, vector<1x2x32xf32>,
    %c8_i32_283 = arith.constant 8 : i32
    %c3 = arith.constant 3 : index
    %c0_284 = arith.constant 0 : index
    %c0_285 = arith.constant 0 : index
    %906 = vector.load %arg2[%c3, %c0_284, %c0_285] : memref<4x32x128xf32, #tpu.memory_space<vmem>>, vector<1x32x128xf32>
    %907 = vector.shape_cast %906 : vector<1x32x128xf32> to vector<32x128xf32>
    %c3_286 = arith.constant 3 : index
    %c0_287 = arith.constant 0 : index
    %c0_288 = arith.constant 0 : index
    %908 = vector.load %arg3[%c3_286, %c0_287, %c0_288] : memref<4x32x128xf32, #tpu.memory_space<vmem>>, vector<1x32x128xf32>
    %909 = vector.shape_cast %908 : vector<1x32x128xf32> to vector<32x128xf32>
    %c3_289 = arith.constant 3 : index
    %c0_290 = arith.constant 0 : index
    %c0_291 = arith.constant 0 : index
    %910 = vector.load %arg4[%c3_289, %c0_290, %c0_291] : memref<4x1x128xf32, #tpu.memory_space<vmem>>, vector<1x1x128xf32>
    %911 = vector.shape_cast %910 : vector<1x1x128xf32> to vector<1x128xf32>
    %c0_292 = arith.constant 0 : index
    %c0_293 = arith.constant 0 : index
    %c0_294 = arith.constant 0 : index
    %912 = vector.load %arg8[%c0_292, %c0_293, %c0_294] : memref<8x2x32xf32, #tpu.memory_space<vmem>>, vector<8x2x32xf32>
    %cst_295 = arith.constant dense<0.000000e+00> : vector<8x2x128xf32>
    %913 = tpu.matmul %912, %907, %cst_295 {dimension_numbers = #tpu.dot_dimension_numbers<[2], [0], [0, 1], [1], [0, 0, 0, 1, 1, 1], [], []>} : vector<8x2x32xf32>, vector<32x128xf32>, vector<8x2x128xf32> -> vector<8x2x128xf32>
    %914 = vector.shape_cast %911 : vector<1x128xf32> to vector<1x1x128xf32>
    %915 = vector.broadcast %914 : vector<1x1x128xf32> to vector<8x2x128xf32>
    %916 = arith.addf %913, %915 : vector<8x2x128xf32>
    %c0_296 = arith.constant 0 : index
    %c0_297 = arith.constant 0 : index
    %c0_298 = arith.constant 0 : index
    %917 = vector.load %arg9[%c0_296, %c0_297, %c0_298] : memref<8x2x128xf32, #tpu.memory_space<vmem>>, vector<8x2x128xf32>
    tpu.vector_store %arg9[%c0_296, %c0_297, %c0_298], %916 {strides = array<i32>} : memref<8x2x128xf32, #tpu.memory_space<vmem>>, vector<8x2x128xf32>,
    %cst_299 = arith.constant 0.000000e+00 : f32
    %918 = vector.broadcast %cst_299 : f32 to vector<2x32xf32>
    %cst_300 = arith.constant 0.000000e+00 : f32
    %919 = vector.broadcast %cst_300 : f32 to vector<2x32xf32>
    %c0_i32_301 = arith.constant 0 : i32
    %920 = arith.index_cast %c0_i32_301 : i32 to index
    %c0_302 = arith.constant 0 : index
    %c0_303 = arith.constant 0 : index
    %921 = vector.load %arg9[%920, %c0_302, %c0_303] : memref<8x2x128xf32, #tpu.memory_space<vmem>>, vector<1x2x128xf32>
    %922 = vector.shape_cast %921 : vector<1x2x128xf32> to vector<2x128xf32>
    %cst_304 = arith.constant dense<0.000000e+00> : vector<2x128xf32>
    %923 = tpu.matmul %918, %909, %cst_304 {dimension_numbers = #tpu.dot_dimension_numbers<[1], [0], [0], [1], [0, 0, 1, 1], [], []>} : vector<2x32xf32>, vector<32x128xf32>, vector<2x128xf32> -> vector<2x128xf32>
    %924 = arith.addf %922, %923 : vector<2x128xf32>
    %925 = arith.negf %924 : vector<2x128xf32>
    %926 = math.exp %925 : vector<2x128xf32>
    %cst_305 = arith.constant 1.000000e+00 : f32
    %927 = vector.broadcast %cst_305 : f32 to vector<2x128xf32>
    %928 = arith.addf %927, %926 : vector<2x128xf32>
    %929 = arith.divf %927, %928 : vector<2x128xf32>
    %930 = math.tanh %924 : vector<2x128xf32>
    %931 = vector.extract_strided_slice %929 {offsets = [0, 0], sizes = [2, 32], strides = [1, 1]} : vector<2x128xf32> to vector<2x32xf32>
    %932 = vector.extract_strided_slice %929 {offsets = [0, 32], sizes = [2, 32], strides = [1, 1]} : vector<2x128xf32> to vector<2x32xf32>
    %933 = vector.extract_strided_slice %929 {offsets = [0, 64], sizes = [2, 32], strides = [1, 1]} : vector<2x128xf32> to vector<2x32xf32>
    %934 = vector.extract_strided_slice %930 {offsets = [0, 96], sizes = [2, 32], strides = [1, 1]} : vector<2x128xf32> to vector<2x32xf32>
    %935 = arith.mulf %932, %919 : vector<2x32xf32>
    %936 = arith.mulf %931, %934 : vector<2x32xf32>
    %937 = arith.addf %935, %936 : vector<2x32xf32>
    %938 = math.tanh %937 : vector<2x32xf32>
    %939 = arith.mulf %933, %938 : vector<2x32xf32>
    %940 = arith.index_cast %c0_i32_301 : i32 to index
    %c0_306 = arith.constant 0 : index
    %c0_307 = arith.constant 0 : index
    %941 = vector.load %arg1[%940, %c0_306, %c0_307] : memref<8x2x32xf32, #tpu.memory_space<vmem>>, vector<1x2x32xf32>
    %942 = vector.shape_cast %941 : vector<1x2x32xf32> to vector<2x32xf32>
    %cst_308 = arith.constant 1.000000e+00 : f32
    %943 = vector.broadcast %cst_308 : f32 to vector<2x32xf32>
    %944 = arith.subf %943, %942 : vector<2x32xf32>
    %945 = arith.mulf %942, %937 : vector<2x32xf32>
    %946 = arith.mulf %944, %919 : vector<2x32xf32>
    %947 = arith.addf %945, %946 : vector<2x32xf32>
    %948 = arith.mulf %942, %939 : vector<2x32xf32>
    %949 = arith.mulf %944, %918 : vector<2x32xf32>
    %950 = arith.addf %948, %949 : vector<2x32xf32>
    %951 = arith.mulf %942, %939 : vector<2x32xf32>
    %952 = arith.index_cast %c0_i32_301 : i32 to index
    %c0_309 = arith.constant 0 : index
    %c0_310 = arith.constant 0 : index
    %953 = vector.load %arg8[%952, %c0_309, %c0_310] : memref<8x2x32xf32, #tpu.memory_space<vmem>>, vector<1x2x32xf32>
    %954 = vector.shape_cast %953 : vector<1x2x32xf32> to vector<2x32xf32>
    %955 = vector.shape_cast %951 : vector<2x32xf32> to vector<1x2x32xf32>
    tpu.vector_store %arg8[%952, %c0_309, %c0_310], %955 {strides = array<i32>} : memref<8x2x32xf32, #tpu.memory_space<vmem>>, vector<1x2x32xf32>,
    %c1_i32_311 = arith.constant 1 : i32
    %956 = arith.index_cast %c1_i32_311 : i32 to index
    %c0_312 = arith.constant 0 : index
    %c0_313 = arith.constant 0 : index
    %957 = vector.load %arg9[%956, %c0_312, %c0_313] : memref<8x2x128xf32, #tpu.memory_space<vmem>>, vector<1x2x128xf32>
    %958 = vector.shape_cast %957 : vector<1x2x128xf32> to vector<2x128xf32>
    %cst_314 = arith.constant dense<0.000000e+00> : vector<2x128xf32>
    %959 = tpu.matmul %950, %909, %cst_314 {dimension_numbers = #tpu.dot_dimension_numbers<[1], [0], [0], [1], [0, 0, 1, 1], [], []>} : vector<2x32xf32>, vector<32x128xf32>, vector<2x128xf32> -> vector<2x128xf32>
    %960 = arith.addf %958, %959 : vector<2x128xf32>
    %961 = arith.negf %960 : vector<2x128xf32>
    %962 = math.exp %961 : vector<2x128xf32>
    %cst_315 = arith.constant 1.000000e+00 : f32
    %963 = vector.broadcast %cst_315 : f32 to vector<2x128xf32>
    %964 = arith.addf %963, %962 : vector<2x128xf32>
    %965 = arith.divf %963, %964 : vector<2x128xf32>
    %966 = math.tanh %960 : vector<2x128xf32>
    %967 = vector.extract_strided_slice %965 {offsets = [0, 0], sizes = [2, 32], strides = [1, 1]} : vector<2x128xf32> to vector<2x32xf32>
    %968 = vector.extract_strided_slice %965 {offsets = [0, 32], sizes = [2, 32], strides = [1, 1]} : vector<2x128xf32> to vector<2x32xf32>
    %969 = vector.extract_strided_slice %965 {offsets = [0, 64], sizes = [2, 32], strides = [1, 1]} : vector<2x128xf32> to vector<2x32xf32>
    %970 = vector.extract_strided_slice %966 {offsets = [0, 96], sizes = [2, 32], strides = [1, 1]} : vector<2x128xf32> to vector<2x32xf32>
    %971 = arith.mulf %968, %947 : vector<2x32xf32>
    %972 = arith.mulf %967, %970 : vector<2x32xf32>
    %973 = arith.addf %971, %972 : vector<2x32xf32>
    %974 = math.tanh %973 : vector<2x32xf32>
    %975 = arith.mulf %969, %974 : vector<2x32xf32>
    %976 = arith.index_cast %c1_i32_311 : i32 to index
    %c0_316 = arith.constant 0 : index
    %c0_317 = arith.constant 0 : index
    %977 = vector.load %arg1[%976, %c0_316, %c0_317] : memref<8x2x32xf32, #tpu.memory_space<vmem>>, vector<1x2x32xf32>
    %978 = vector.shape_cast %977 : vector<1x2x32xf32> to vector<2x32xf32>
    %cst_318 = arith.constant 1.000000e+00 : f32
    %979 = vector.broadcast %cst_318 : f32 to vector<2x32xf32>
    %980 = arith.subf %979, %978 : vector<2x32xf32>
    %981 = arith.mulf %978, %973 : vector<2x32xf32>
    %982 = arith.mulf %980, %947 : vector<2x32xf32>
    %983 = arith.addf %981, %982 : vector<2x32xf32>
    %984 = arith.mulf %978, %975 : vector<2x32xf32>
    %985 = arith.mulf %980, %950 : vector<2x32xf32>
    %986 = arith.addf %984, %985 : vector<2x32xf32>
    %987 = arith.mulf %978, %975 : vector<2x32xf32>
    %988 = arith.index_cast %c1_i32_311 : i32 to index
    %c0_319 = arith.constant 0 : index
    %c0_320 = arith.constant 0 : index
    %989 = vector.load %arg8[%988, %c0_319, %c0_320] : memref<8x2x32xf32, #tpu.memory_space<vmem>>, vector<1x2x32xf32>
    %990 = vector.shape_cast %989 : vector<1x2x32xf32> to vector<2x32xf32>
    %991 = vector.shape_cast %987 : vector<2x32xf32> to vector<1x2x32xf32>
    tpu.vector_store %arg8[%988, %c0_319, %c0_320], %991 {strides = array<i32>} : memref<8x2x32xf32, #tpu.memory_space<vmem>>, vector<1x2x32xf32>,
    %c2_i32_321 = arith.constant 2 : i32
    %992 = arith.index_cast %c2_i32_321 : i32 to index
    %c0_322 = arith.constant 0 : index
    %c0_323 = arith.constant 0 : index
    %993 = vector.load %arg9[%992, %c0_322, %c0_323] : memref<8x2x128xf32, #tpu.memory_space<vmem>>, vector<1x2x128xf32>
    %994 = vector.shape_cast %993 : vector<1x2x128xf32> to vector<2x128xf32>
    %cst_324 = arith.constant dense<0.000000e+00> : vector<2x128xf32>
    %995 = tpu.matmul %986, %909, %cst_324 {dimension_numbers = #tpu.dot_dimension_numbers<[1], [0], [0], [1], [0, 0, 1, 1], [], []>} : vector<2x32xf32>, vector<32x128xf32>, vector<2x128xf32> -> vector<2x128xf32>
    %996 = arith.addf %994, %995 : vector<2x128xf32>
    %997 = arith.negf %996 : vector<2x128xf32>
    %998 = math.exp %997 : vector<2x128xf32>
    %cst_325 = arith.constant 1.000000e+00 : f32
    %999 = vector.broadcast %cst_325 : f32 to vector<2x128xf32>
    %1000 = arith.addf %999, %998 : vector<2x128xf32>
    %1001 = arith.divf %999, %1000 : vector<2x128xf32>
    %1002 = math.tanh %996 : vector<2x128xf32>
    %1003 = vector.extract_strided_slice %1001 {offsets = [0, 0], sizes = [2, 32], strides = [1, 1]} : vector<2x128xf32> to vector<2x32xf32>
    %1004 = vector.extract_strided_slice %1001 {offsets = [0, 32], sizes = [2, 32], strides = [1, 1]} : vector<2x128xf32> to vector<2x32xf32>
    %1005 = vector.extract_strided_slice %1001 {offsets = [0, 64], sizes = [2, 32], strides = [1, 1]} : vector<2x128xf32> to vector<2x32xf32>
    %1006 = vector.extract_strided_slice %1002 {offsets = [0, 96], sizes = [2, 32], strides = [1, 1]} : vector<2x128xf32> to vector<2x32xf32>
    %1007 = arith.mulf %1004, %983 : vector<2x32xf32>
    %1008 = arith.mulf %1003, %1006 : vector<2x32xf32>
    %1009 = arith.addf %1007, %1008 : vector<2x32xf32>
    %1010 = math.tanh %1009 : vector<2x32xf32>
    %1011 = arith.mulf %1005, %1010 : vector<2x32xf32>
    %1012 = arith.index_cast %c2_i32_321 : i32 to index
    %c0_326 = arith.constant 0 : index
    %c0_327 = arith.constant 0 : index
    %1013 = vector.load %arg1[%1012, %c0_326, %c0_327] : memref<8x2x32xf32, #tpu.memory_space<vmem>>, vector<1x2x32xf32>
    %1014 = vector.shape_cast %1013 : vector<1x2x32xf32> to vector<2x32xf32>
    %cst_328 = arith.constant 1.000000e+00 : f32
    %1015 = vector.broadcast %cst_328 : f32 to vector<2x32xf32>
    %1016 = arith.subf %1015, %1014 : vector<2x32xf32>
    %1017 = arith.mulf %1014, %1009 : vector<2x32xf32>
    %1018 = arith.mulf %1016, %983 : vector<2x32xf32>
    %1019 = arith.addf %1017, %1018 : vector<2x32xf32>
    %1020 = arith.mulf %1014, %1011 : vector<2x32xf32>
    %1021 = arith.mulf %1016, %986 : vector<2x32xf32>
    %1022 = arith.addf %1020, %1021 : vector<2x32xf32>
    %1023 = arith.mulf %1014, %1011 : vector<2x32xf32>
    %1024 = arith.index_cast %c2_i32_321 : i32 to index
    %c0_329 = arith.constant 0 : index
    %c0_330 = arith.constant 0 : index
    %1025 = vector.load %arg8[%1024, %c0_329, %c0_330] : memref<8x2x32xf32, #tpu.memory_space<vmem>>, vector<1x2x32xf32>
    %1026 = vector.shape_cast %1025 : vector<1x2x32xf32> to vector<2x32xf32>
    %1027 = vector.shape_cast %1023 : vector<2x32xf32> to vector<1x2x32xf32>
    tpu.vector_store %arg8[%1024, %c0_329, %c0_330], %1027 {strides = array<i32>} : memref<8x2x32xf32, #tpu.memory_space<vmem>>, vector<1x2x32xf32>,
    %c3_i32_331 = arith.constant 3 : i32
    %1028 = arith.index_cast %c3_i32_331 : i32 to index
    %c0_332 = arith.constant 0 : index
    %c0_333 = arith.constant 0 : index
    %1029 = vector.load %arg9[%1028, %c0_332, %c0_333] : memref<8x2x128xf32, #tpu.memory_space<vmem>>, vector<1x2x128xf32>
    %1030 = vector.shape_cast %1029 : vector<1x2x128xf32> to vector<2x128xf32>
    %cst_334 = arith.constant dense<0.000000e+00> : vector<2x128xf32>
    %1031 = tpu.matmul %1022, %909, %cst_334 {dimension_numbers = #tpu.dot_dimension_numbers<[1], [0], [0], [1], [0, 0, 1, 1], [], []>} : vector<2x32xf32>, vector<32x128xf32>, vector<2x128xf32> -> vector<2x128xf32>
    %1032 = arith.addf %1030, %1031 : vector<2x128xf32>
    %1033 = arith.negf %1032 : vector<2x128xf32>
    %1034 = math.exp %1033 : vector<2x128xf32>
    %cst_335 = arith.constant 1.000000e+00 : f32
    %1035 = vector.broadcast %cst_335 : f32 to vector<2x128xf32>
    %1036 = arith.addf %1035, %1034 : vector<2x128xf32>
    %1037 = arith.divf %1035, %1036 : vector<2x128xf32>
    %1038 = math.tanh %1032 : vector<2x128xf32>
    %1039 = vector.extract_strided_slice %1037 {offsets = [0, 0], sizes = [2, 32], strides = [1, 1]} : vector<2x128xf32> to vector<2x32xf32>
    %1040 = vector.extract_strided_slice %1037 {offsets = [0, 32], sizes = [2, 32], strides = [1, 1]} : vector<2x128xf32> to vector<2x32xf32>
    %1041 = vector.extract_strided_slice %1037 {offsets = [0, 64], sizes = [2, 32], strides = [1, 1]} : vector<2x128xf32> to vector<2x32xf32>
    %1042 = vector.extract_strided_slice %1038 {offsets = [0, 96], sizes = [2, 32], strides = [1, 1]} : vector<2x128xf32> to vector<2x32xf32>
    %1043 = arith.mulf %1040, %1019 : vector<2x32xf32>
    %1044 = arith.mulf %1039, %1042 : vector<2x32xf32>
    %1045 = arith.addf %1043, %1044 : vector<2x32xf32>
    %1046 = math.tanh %1045 : vector<2x32xf32>
    %1047 = arith.mulf %1041, %1046 : vector<2x32xf32>
    %1048 = arith.index_cast %c3_i32_331 : i32 to index
    %c0_336 = arith.constant 0 : index
    %c0_337 = arith.constant 0 : index
    %1049 = vector.load %arg1[%1048, %c0_336, %c0_337] : memref<8x2x32xf32, #tpu.memory_space<vmem>>, vector<1x2x32xf32>
    %1050 = vector.shape_cast %1049 : vector<1x2x32xf32> to vector<2x32xf32>
    %cst_338 = arith.constant 1.000000e+00 : f32
    %1051 = vector.broadcast %cst_338 : f32 to vector<2x32xf32>
    %1052 = arith.subf %1051, %1050 : vector<2x32xf32>
    %1053 = arith.mulf %1050, %1045 : vector<2x32xf32>
    %1054 = arith.mulf %1052, %1019 : vector<2x32xf32>
    %1055 = arith.addf %1053, %1054 : vector<2x32xf32>
    %1056 = arith.mulf %1050, %1047 : vector<2x32xf32>
    %1057 = arith.mulf %1052, %1022 : vector<2x32xf32>
    %1058 = arith.addf %1056, %1057 : vector<2x32xf32>
    %1059 = arith.mulf %1050, %1047 : vector<2x32xf32>
    %1060 = arith.index_cast %c3_i32_331 : i32 to index
    %c0_339 = arith.constant 0 : index
    %c0_340 = arith.constant 0 : index
    %1061 = vector.load %arg8[%1060, %c0_339, %c0_340] : memref<8x2x32xf32, #tpu.memory_space<vmem>>, vector<1x2x32xf32>
    %1062 = vector.shape_cast %1061 : vector<1x2x32xf32> to vector<2x32xf32>
    %1063 = vector.shape_cast %1059 : vector<2x32xf32> to vector<1x2x32xf32>
    tpu.vector_store %arg8[%1060, %c0_339, %c0_340], %1063 {strides = array<i32>} : memref<8x2x32xf32, #tpu.memory_space<vmem>>, vector<1x2x32xf32>,
    %c4_i32_341 = arith.constant 4 : i32
    %1064 = arith.index_cast %c4_i32_341 : i32 to index
    %c0_342 = arith.constant 0 : index
    %c0_343 = arith.constant 0 : index
    %1065 = vector.load %arg9[%1064, %c0_342, %c0_343] : memref<8x2x128xf32, #tpu.memory_space<vmem>>, vector<1x2x128xf32>
    %1066 = vector.shape_cast %1065 : vector<1x2x128xf32> to vector<2x128xf32>
    %cst_344 = arith.constant dense<0.000000e+00> : vector<2x128xf32>
    %1067 = tpu.matmul %1058, %909, %cst_344 {dimension_numbers = #tpu.dot_dimension_numbers<[1], [0], [0], [1], [0, 0, 1, 1], [], []>} : vector<2x32xf32>, vector<32x128xf32>, vector<2x128xf32> -> vector<2x128xf32>
    %1068 = arith.addf %1066, %1067 : vector<2x128xf32>
    %1069 = arith.negf %1068 : vector<2x128xf32>
    %1070 = math.exp %1069 : vector<2x128xf32>
    %cst_345 = arith.constant 1.000000e+00 : f32
    %1071 = vector.broadcast %cst_345 : f32 to vector<2x128xf32>
    %1072 = arith.addf %1071, %1070 : vector<2x128xf32>
    %1073 = arith.divf %1071, %1072 : vector<2x128xf32>
    %1074 = math.tanh %1068 : vector<2x128xf32>
    %1075 = vector.extract_strided_slice %1073 {offsets = [0, 0], sizes = [2, 32], strides = [1, 1]} : vector<2x128xf32> to vector<2x32xf32>
    %1076 = vector.extract_strided_slice %1073 {offsets = [0, 32], sizes = [2, 32], strides = [1, 1]} : vector<2x128xf32> to vector<2x32xf32>
    %1077 = vector.extract_strided_slice %1073 {offsets = [0, 64], sizes = [2, 32], strides = [1, 1]} : vector<2x128xf32> to vector<2x32xf32>
    %1078 = vector.extract_strided_slice %1074 {offsets = [0, 96], sizes = [2, 32], strides = [1, 1]} : vector<2x128xf32> to vector<2x32xf32>
    %1079 = arith.mulf %1076, %1055 : vector<2x32xf32>
    %1080 = arith.mulf %1075, %1078 : vector<2x32xf32>
    %1081 = arith.addf %1079, %1080 : vector<2x32xf32>
    %1082 = math.tanh %1081 : vector<2x32xf32>
    %1083 = arith.mulf %1077, %1082 : vector<2x32xf32>
    %1084 = arith.index_cast %c4_i32_341 : i32 to index
    %c0_346 = arith.constant 0 : index
    %c0_347 = arith.constant 0 : index
    %1085 = vector.load %arg1[%1084, %c0_346, %c0_347] : memref<8x2x32xf32, #tpu.memory_space<vmem>>, vector<1x2x32xf32>
    %1086 = vector.shape_cast %1085 : vector<1x2x32xf32> to vector<2x32xf32>
    %cst_348 = arith.constant 1.000000e+00 : f32
    %1087 = vector.broadcast %cst_348 : f32 to vector<2x32xf32>
    %1088 = arith.subf %1087, %1086 : vector<2x32xf32>
    %1089 = arith.mulf %1086, %1081 : vector<2x32xf32>
    %1090 = arith.mulf %1088, %1055 : vector<2x32xf32>
    %1091 = arith.addf %1089, %1090 : vector<2x32xf32>
    %1092 = arith.mulf %1086, %1083 : vector<2x32xf32>
    %1093 = arith.mulf %1088, %1058 : vector<2x32xf32>
    %1094 = arith.addf %1092, %1093 : vector<2x32xf32>
    %1095 = arith.mulf %1086, %1083 : vector<2x32xf32>
    %1096 = arith.index_cast %c4_i32_341 : i32 to index
    %c0_349 = arith.constant 0 : index
    %c0_350 = arith.constant 0 : index
    %1097 = vector.load %arg8[%1096, %c0_349, %c0_350] : memref<8x2x32xf32, #tpu.memory_space<vmem>>, vector<1x2x32xf32>
    %1098 = vector.shape_cast %1097 : vector<1x2x32xf32> to vector<2x32xf32>
    %1099 = vector.shape_cast %1095 : vector<2x32xf32> to vector<1x2x32xf32>
    tpu.vector_store %arg8[%1096, %c0_349, %c0_350], %1099 {strides = array<i32>} : memref<8x2x32xf32, #tpu.memory_space<vmem>>, vector<1x2x32xf32>,
    %c5_i32_351 = arith.constant 5 : i32
    %1100 = arith.index_cast %c5_i32_351 : i32 to index
    %c0_352 = arith.constant 0 : index
    %c0_353 = arith.constant 0 : index
    %1101 = vector.load %arg9[%1100, %c0_352, %c0_353] : memref<8x2x128xf32, #tpu.memory_space<vmem>>, vector<1x2x128xf32>
    %1102 = vector.shape_cast %1101 : vector<1x2x128xf32> to vector<2x128xf32>
    %cst_354 = arith.constant dense<0.000000e+00> : vector<2x128xf32>
    %1103 = tpu.matmul %1094, %909, %cst_354 {dimension_numbers = #tpu.dot_dimension_numbers<[1], [0], [0], [1], [0, 0, 1, 1], [], []>} : vector<2x32xf32>, vector<32x128xf32>, vector<2x128xf32> -> vector<2x128xf32>
    %1104 = arith.addf %1102, %1103 : vector<2x128xf32>
    %1105 = arith.negf %1104 : vector<2x128xf32>
    %1106 = math.exp %1105 : vector<2x128xf32>
    %cst_355 = arith.constant 1.000000e+00 : f32
    %1107 = vector.broadcast %cst_355 : f32 to vector<2x128xf32>
    %1108 = arith.addf %1107, %1106 : vector<2x128xf32>
    %1109 = arith.divf %1107, %1108 : vector<2x128xf32>
    %1110 = math.tanh %1104 : vector<2x128xf32>
    %1111 = vector.extract_strided_slice %1109 {offsets = [0, 0], sizes = [2, 32], strides = [1, 1]} : vector<2x128xf32> to vector<2x32xf32>
    %1112 = vector.extract_strided_slice %1109 {offsets = [0, 32], sizes = [2, 32], strides = [1, 1]} : vector<2x128xf32> to vector<2x32xf32>
    %1113 = vector.extract_strided_slice %1109 {offsets = [0, 64], sizes = [2, 32], strides = [1, 1]} : vector<2x128xf32> to vector<2x32xf32>
    %1114 = vector.extract_strided_slice %1110 {offsets = [0, 96], sizes = [2, 32], strides = [1, 1]} : vector<2x128xf32> to vector<2x32xf32>
    %1115 = arith.mulf %1112, %1091 : vector<2x32xf32>
    %1116 = arith.mulf %1111, %1114 : vector<2x32xf32>
    %1117 = arith.addf %1115, %1116 : vector<2x32xf32>
    %1118 = math.tanh %1117 : vector<2x32xf32>
    %1119 = arith.mulf %1113, %1118 : vector<2x32xf32>
    %1120 = arith.index_cast %c5_i32_351 : i32 to index
    %c0_356 = arith.constant 0 : index
    %c0_357 = arith.constant 0 : index
    %1121 = vector.load %arg1[%1120, %c0_356, %c0_357] : memref<8x2x32xf32, #tpu.memory_space<vmem>>, vector<1x2x32xf32>
    %1122 = vector.shape_cast %1121 : vector<1x2x32xf32> to vector<2x32xf32>
    %cst_358 = arith.constant 1.000000e+00 : f32
    %1123 = vector.broadcast %cst_358 : f32 to vector<2x32xf32>
    %1124 = arith.subf %1123, %1122 : vector<2x32xf32>
    %1125 = arith.mulf %1122, %1117 : vector<2x32xf32>
    %1126 = arith.mulf %1124, %1091 : vector<2x32xf32>
    %1127 = arith.addf %1125, %1126 : vector<2x32xf32>
    %1128 = arith.mulf %1122, %1119 : vector<2x32xf32>
    %1129 = arith.mulf %1124, %1094 : vector<2x32xf32>
    %1130 = arith.addf %1128, %1129 : vector<2x32xf32>
    %1131 = arith.mulf %1122, %1119 : vector<2x32xf32>
    %1132 = arith.index_cast %c5_i32_351 : i32 to index
    %c0_359 = arith.constant 0 : index
    %c0_360 = arith.constant 0 : index
    %1133 = vector.load %arg8[%1132, %c0_359, %c0_360] : memref<8x2x32xf32, #tpu.memory_space<vmem>>, vector<1x2x32xf32>
    %1134 = vector.shape_cast %1133 : vector<1x2x32xf32> to vector<2x32xf32>
    %1135 = vector.shape_cast %1131 : vector<2x32xf32> to vector<1x2x32xf32>
    tpu.vector_store %arg8[%1132, %c0_359, %c0_360], %1135 {strides = array<i32>} : memref<8x2x32xf32, #tpu.memory_space<vmem>>, vector<1x2x32xf32>,
    %c6_i32_361 = arith.constant 6 : i32
    %1136 = arith.index_cast %c6_i32_361 : i32 to index
    %c0_362 = arith.constant 0 : index
    %c0_363 = arith.constant 0 : index
    %1137 = vector.load %arg9[%1136, %c0_362, %c0_363] : memref<8x2x128xf32, #tpu.memory_space<vmem>>, vector<1x2x128xf32>
    %1138 = vector.shape_cast %1137 : vector<1x2x128xf32> to vector<2x128xf32>
    %cst_364 = arith.constant dense<0.000000e+00> : vector<2x128xf32>
    %1139 = tpu.matmul %1130, %909, %cst_364 {dimension_numbers = #tpu.dot_dimension_numbers<[1], [0], [0], [1], [0, 0, 1, 1], [], []>} : vector<2x32xf32>, vector<32x128xf32>, vector<2x128xf32> -> vector<2x128xf32>
    %1140 = arith.addf %1138, %1139 : vector<2x128xf32>
    %1141 = arith.negf %1140 : vector<2x128xf32>
    %1142 = math.exp %1141 : vector<2x128xf32>
    %cst_365 = arith.constant 1.000000e+00 : f32
    %1143 = vector.broadcast %cst_365 : f32 to vector<2x128xf32>
    %1144 = arith.addf %1143, %1142 : vector<2x128xf32>
    %1145 = arith.divf %1143, %1144 : vector<2x128xf32>
    %1146 = math.tanh %1140 : vector<2x128xf32>
    %1147 = vector.extract_strided_slice %1145 {offsets = [0, 0], sizes = [2, 32], strides = [1, 1]} : vector<2x128xf32> to vector<2x32xf32>
    %1148 = vector.extract_strided_slice %1145 {offsets = [0, 32], sizes = [2, 32], strides = [1, 1]} : vector<2x128xf32> to vector<2x32xf32>
    %1149 = vector.extract_strided_slice %1145 {offsets = [0, 64], sizes = [2, 32], strides = [1, 1]} : vector<2x128xf32> to vector<2x32xf32>
    %1150 = vector.extract_strided_slice %1146 {offsets = [0, 96], sizes = [2, 32], strides = [1, 1]} : vector<2x128xf32> to vector<2x32xf32>
    %1151 = arith.mulf %1148, %1127 : vector<2x32xf32>
    %1152 = arith.mulf %1147, %1150 : vector<2x32xf32>
    %1153 = arith.addf %1151, %1152 : vector<2x32xf32>
    %1154 = math.tanh %1153 : vector<2x32xf32>
    %1155 = arith.mulf %1149, %1154 : vector<2x32xf32>
    %1156 = arith.index_cast %c6_i32_361 : i32 to index
    %c0_366 = arith.constant 0 : index
    %c0_367 = arith.constant 0 : index
    %1157 = vector.load %arg1[%1156, %c0_366, %c0_367] : memref<8x2x32xf32, #tpu.memory_space<vmem>>, vector<1x2x32xf32>
    %1158 = vector.shape_cast %1157 : vector<1x2x32xf32> to vector<2x32xf32>
    %cst_368 = arith.constant 1.000000e+00 : f32
    %1159 = vector.broadcast %cst_368 : f32 to vector<2x32xf32>
    %1160 = arith.subf %1159, %1158 : vector<2x32xf32>
    %1161 = arith.mulf %1158, %1153 : vector<2x32xf32>
    %1162 = arith.mulf %1160, %1127 : vector<2x32xf32>
    %1163 = arith.addf %1161, %1162 : vector<2x32xf32>
    %1164 = arith.mulf %1158, %1155 : vector<2x32xf32>
    %1165 = arith.mulf %1160, %1130 : vector<2x32xf32>
    %1166 = arith.addf %1164, %1165 : vector<2x32xf32>
    %1167 = arith.mulf %1158, %1155 : vector<2x32xf32>
    %1168 = arith.index_cast %c6_i32_361 : i32 to index
    %c0_369 = arith.constant 0 : index
    %c0_370 = arith.constant 0 : index
    %1169 = vector.load %arg8[%1168, %c0_369, %c0_370] : memref<8x2x32xf32, #tpu.memory_space<vmem>>, vector<1x2x32xf32>
    %1170 = vector.shape_cast %1169 : vector<1x2x32xf32> to vector<2x32xf32>
    %1171 = vector.shape_cast %1167 : vector<2x32xf32> to vector<1x2x32xf32>
    tpu.vector_store %arg8[%1168, %c0_369, %c0_370], %1171 {strides = array<i32>} : memref<8x2x32xf32, #tpu.memory_space<vmem>>, vector<1x2x32xf32>,
    %c7_i32_371 = arith.constant 7 : i32
    %1172 = arith.index_cast %c7_i32_371 : i32 to index
    %c0_372 = arith.constant 0 : index
    %c0_373 = arith.constant 0 : index
    %1173 = vector.load %arg9[%1172, %c0_372, %c0_373] : memref<8x2x128xf32, #tpu.memory_space<vmem>>, vector<1x2x128xf32>
    %1174 = vector.shape_cast %1173 : vector<1x2x128xf32> to vector<2x128xf32>
    %cst_374 = arith.constant dense<0.000000e+00> : vector<2x128xf32>
    %1175 = tpu.matmul %1166, %909, %cst_374 {dimension_numbers = #tpu.dot_dimension_numbers<[1], [0], [0], [1], [0, 0, 1, 1], [], []>} : vector<2x32xf32>, vector<32x128xf32>, vector<2x128xf32> -> vector<2x128xf32>
    %1176 = arith.addf %1174, %1175 : vector<2x128xf32>
    %1177 = arith.negf %1176 : vector<2x128xf32>
    %1178 = math.exp %1177 : vector<2x128xf32>
    %cst_375 = arith.constant 1.000000e+00 : f32
    %1179 = vector.broadcast %cst_375 : f32 to vector<2x128xf32>
    %1180 = arith.addf %1179, %1178 : vector<2x128xf32>
    %1181 = arith.divf %1179, %1180 : vector<2x128xf32>
    %1182 = math.tanh %1176 : vector<2x128xf32>
    %1183 = vector.extract_strided_slice %1181 {offsets = [0, 0], sizes = [2, 32], strides = [1, 1]} : vector<2x128xf32> to vector<2x32xf32>
    %1184 = vector.extract_strided_slice %1181 {offsets = [0, 32], sizes = [2, 32], strides = [1, 1]} : vector<2x128xf32> to vector<2x32xf32>
    %1185 = vector.extract_strided_slice %1181 {offsets = [0, 64], sizes = [2, 32], strides = [1, 1]} : vector<2x128xf32> to vector<2x32xf32>
    %1186 = vector.extract_strided_slice %1182 {offsets = [0, 96], sizes = [2, 32], strides = [1, 1]} : vector<2x128xf32> to vector<2x32xf32>
    %1187 = arith.mulf %1184, %1163 : vector<2x32xf32>
    %1188 = arith.mulf %1183, %1186 : vector<2x32xf32>
    %1189 = arith.addf %1187, %1188 : vector<2x32xf32>
    %1190 = math.tanh %1189 : vector<2x32xf32>
    %1191 = arith.mulf %1185, %1190 : vector<2x32xf32>
    %1192 = arith.index_cast %c7_i32_371 : i32 to index
    %c0_376 = arith.constant 0 : index
    %c0_377 = arith.constant 0 : index
    %1193 = vector.load %arg1[%1192, %c0_376, %c0_377] : memref<8x2x32xf32, #tpu.memory_space<vmem>>, vector<1x2x32xf32>
    %1194 = vector.shape_cast %1193 : vector<1x2x32xf32> to vector<2x32xf32>
    %cst_378 = arith.constant 1.000000e+00 : f32
    %1195 = vector.broadcast %cst_378 : f32 to vector<2x32xf32>
    %1196 = arith.subf %1195, %1194 : vector<2x32xf32>
    %1197 = arith.mulf %1194, %1189 : vector<2x32xf32>
    %1198 = arith.mulf %1196, %1163 : vector<2x32xf32>
    %1199 = arith.addf %1197, %1198 : vector<2x32xf32>
    %1200 = arith.mulf %1194, %1191 : vector<2x32xf32>
    %1201 = arith.mulf %1196, %1166 : vector<2x32xf32>
    %1202 = arith.addf %1200, %1201 : vector<2x32xf32>
    %1203 = arith.mulf %1194, %1191 : vector<2x32xf32>
    %1204 = arith.index_cast %c7_i32_371 : i32 to index
    %c0_379 = arith.constant 0 : index
    %c0_380 = arith.constant 0 : index
    %1205 = vector.load %arg8[%1204, %c0_379, %c0_380] : memref<8x2x32xf32, #tpu.memory_space<vmem>>, vector<1x2x32xf32>
    %1206 = vector.shape_cast %1205 : vector<1x2x32xf32> to vector<2x32xf32>
    %1207 = vector.shape_cast %1203 : vector<2x32xf32> to vector<1x2x32xf32>
    tpu.vector_store %arg8[%1204, %c0_379, %c0_380], %1207 {strides = array<i32>} : memref<8x2x32xf32, #tpu.memory_space<vmem>>, vector<1x2x32xf32>,
    %c8_i32_381 = arith.constant 8 : i32
    %c0_382 = arith.constant 0 : index
    %c0_383 = arith.constant 0 : index
    %c0_384 = arith.constant 0 : index
    %1208 = vector.load %arg8[%c0_382, %c0_383, %c0_384] : memref<8x2x32xf32, #tpu.memory_space<vmem>>, vector<8x2x32xf32>
    %c0_385 = arith.constant 0 : index
    %c0_386 = arith.constant 0 : index
    %1209 = vector.load %arg5[%c0_385, %c0_386] : memref<1x32xf32, #tpu.memory_space<vmem>>, vector<1x32xf32>
    %1210 = vector.shape_cast %1209 : vector<1x32xf32> to vector<1x1x32xf32>
    %1211 = vector.broadcast %1210 : vector<1x1x32xf32> to vector<8x2x32xf32>
    %1212 = arith.mulf %1208, %1211 : vector<8x2x32xf32>
    %cst_387 = arith.constant dense<0.000000e+00> : vector<8x2xf32>
    %1213 = vector.multi_reduction <add>, %1212, %cst_387 [2] : vector<8x2x32xf32> to vector<8x2xf32>
    %c0_388 = arith.constant 0 : index
    %1214 = memref.load %arg6[%c0_388] : memref<1xf32, #tpu.memory_space<smem>>
    %1215 = vector.broadcast %1214 : f32 to vector<8x2xf32>
    %1216 = arith.addf %1213, %1215 : vector<8x2xf32>
    %c0_389 = arith.constant 0 : index
    %c0_390 = arith.constant 0 : index
    %1217 = vector.load %arg7[%c0_389, %c0_390] : memref<8x2xf32, #tpu.memory_space<vmem>>, vector<8x2xf32>
    tpu.vector_store %arg7[%c0_389, %c0_390], %1216 {strides = array<i32>} : memref<8x2xf32, #tpu.memory_space<vmem>>, vector<8x2xf32>,
    return
  }
}

</mosaic_0001>

<bundles_post_ra>
// kernel: tpu_custom_call.1
= control target key start
LH: loop header
LB: loop body
LE: loop exit
PB: predicated region body
PF: predicated region fallthrough
CT: control target
= control target key end

     0   :  { %13 = vsyncpa [#allocation6], 0  ;;  %s6738_s0 = inlined_call_operand.hbm [shape: f32[8,2,32], index: 0, kind: input, shape index: {}]   ;;  %s6739_s1 = inlined_call_operand.hbm [shape: f32[8,2,32], index: 1, kind: input, shape index: {}]   ;;  %s6740_s2 = inlined_call_operand.hbm [shape: f32[4,32,128], index: 2, kind: input, shape index: {}]   ;;  %s6741_s3 = inlined_call_operand.hbm [shape: f32[4,32,128], index: 3, kind: input, shape index: {}]   ;;  %s6742_s4 = inlined_call_operand.vmem [shape: f32[4,1,128], index: 4, kind: input, shape index: {}]   ;;  %s6743_s5 = inlined_call_operand.vmem [shape: f32[1,32], index: 5, kind: input, shape index: {}]   ;;  %s6744_s6 = inlined_call_operand.<no memory space> [shape: f32[1], index: 6, kind: input, shape index: {}]   ;;  %s6745_s7 = inlined_call_operand.vmem [shape: f32[8,2], index: 7, kind: output, shape index: {}]  }
   0x1   :  { %14 = vsyncpa [#allocation8], 0 }
   0x2   :  { %15 = vsyncpa [#allocation11], 0  ;;  %s6088_s24 = smov [#allocation7]   ;;  %s6089_s26 = smov [#allocation5]  }
   0x3   :  { %s33_s25 = sshll.u32 %s6088_s24, 4  ;;  %s21_s27 = sshll.u32 %s6089_s26, 4  ;;  %s34_s25 = int_to_ptr.vmem [resolvable:$true] %s33_s25  ;;  %s6142_s27 = int_to_ptr.vmem [resolvable:$true] %s21_s27 }
   0x4   :  { %s5994_s30 = scalar_lea.hbm %s6739_s1, 256 }
   0x5   :  { %p5995_p0 = scmp.ne.s32.totalorder %s6739_s1, %s5994_s30  ;;  %p5998_p1 = scmp.lt.u32.totalorder %s5994_s30, %s6739_s1 }
   0x7   :  { %p6000_p2 = pnand %p5998_p1, %p5995_p0 }
   0x9   :  { %6003 = shalt.err (!%p6000_p2)
}
   0xa   :  { %s6004_s12 = scalar_lea.vmem %s34_s25, 256  ;;  %p6009_p4 = scmp.lt.s32.totalorder %s34_s25, %s34_s25 }
   0xb   :  { %p6005_p3 = scmp.ne.s32.totalorder %s34_s25, %s6004_s12  ;;  %p6010_p5 = scmp.lt.s32.totalorder %s6004_s12, %s6004_s12 }
   0xd   :  { %p6011_p6 = por %p6010_p5, %p6009_p4 }
   0xf   :  { %p6012_p7 = pnand %p6011_p6, %p6005_p3 }
  0x11   :  { %6015 = shalt.err (!%p6012_p7)
}
  0x12   :  { %s6090_s13 = smov 32   ;;  %s6091_s14 = smov 2  }
  0x13   :  { %39 = dma.hbm_to_vmem [thread:$0]  %s6739_s1, 256, %s34_s25, [#allocation8], %s6090_s13, %s6090_s13, %s6091_s14  }
  0x14   :  { %s6016_s19 = scalar_lea.hbm %s6738_s0, 256 }
  0x15   :  { %p6017_p8 = scmp.ne.s32.totalorder %s6738_s0, %s6016_s19  ;;  %p6020_p9 = scmp.lt.u32.totalorder %s6016_s19, %s6738_s0 }
  0x17   :  { %p6022_p10 = pnand %p6020_p9, %p6017_p8 }
  0x19   :  { %6025 = shalt.err (!%p6022_p10)
}
  0x1a   :  { %s6026_s24 = scalar_lea.vmem %s6142_s27, 256  ;;  %p6031_p12 = scmp.lt.s32.totalorder %s6142_s27, %s6142_s27 }
  0x1b   :  { %p6027_p11 = scmp.ne.s32.totalorder %s6142_s27, %s6026_s24  ;;  %p6032_p13 = scmp.lt.s32.totalorder %s6026_s24, %s6026_s24 }
  0x1d   :  { %p6033_p0 = por %p6032_p13, %p6031_p12 }
  0x1f   :  { %p6034_p1 = pnand %p6033_p0, %p6027_p11 }
  0x21   :  { %6037 = shalt.err (!%p6034_p1)
}
  0x22   :  { %27 = dma.hbm_to_vmem [thread:$0]  %s6738_s0, 256, %s6142_s27, [#allocation6], %s6090_s13, %s6090_s13, %s6091_s14  }
  0x23   :  { %s6092_s26 = smov [#allocation9]   ;;  %s6038_s8 = scalar_lea.hbm %s6740_s2, 2048 }
  0x24   :  { %s45_s28 = sshll.u32 %s6092_s26, 4  ;;  %p6039_p2 = scmp.ne.s32.totalorder %s6740_s2, %s6038_s8  ;;  %s46_s28 = int_to_ptr.vmem [resolvable:$true] %s45_s28 }
  0x25   :  { %p6042_p3 = scmp.lt.u32.totalorder %s6038_s8, %s6740_s2 }
  0x27   :  { %p6044_p4 = pnand %p6042_p3, %p6039_p2 }
  0x29   :  { %6047 = shalt.err (!%p6044_p4)
}
  0x2a   :  { %s6048_s15 = scalar_lea.vmem %s46_s28, 2048  ;;  %p6053_p6 = scmp.lt.s32.totalorder %s46_s28, %s46_s28 }
  0x2b   :  { %p6049_p5 = scmp.ne.s32.totalorder %s46_s28, %s6048_s15  ;;  %p6054_p7 = scmp.lt.s32.totalorder %s6048_s15, %s6048_s15 }
  0x2d   :  { %p6055_p8 = por %p6054_p7, %p6053_p6 }
  0x2f   :  { %p6056_p9 = pnand %p6055_p8, %p6049_p5 }
  0x31   :  { %6059 = shalt.err (!%p6056_p9)
}
  0x32   :  { %s6093_s0 = smov 128   ;;  %s6094_s27 = smov 8  }
  0x33   :  { %51 = dma.hbm_to_vmem [thread:$0]  %s6740_s2, 2048, %s46_s28, [#allocation8], %s6093_s0, %s6093_s0, %s6094_s27  }
  0x34   :  { %s6095_s17 = smov [#allocation10]   ;;  %s6060_s21 = scalar_lea.hbm %s6741_s3, 2048 }
  0x35   :  { %s57_s18 = sshll.u32 %s6095_s17, 4  ;;  %p6061_p10 = scmp.ne.s32.totalorder %s6741_s3, %s6060_s21  ;;  %s58_s18 = int_to_ptr.vmem [resolvable:$true] %s57_s18 }
  0x36   :  { %p6064_p11 = scmp.lt.u32.totalorder %s6060_s21, %s6741_s3 }
  0x38   :  { %p6066_p12 = pnand %p6064_p11, %p6061_p10 }
  0x3a   :  { %6069 = shalt.err (!%p6066_p12)
}
  0x3b   :  { %s6070_s25 = scalar_lea.vmem %s58_s18, 2048  ;;  %p6075_p0 = scmp.lt.s32.totalorder %s58_s18, %s58_s18 }
  0x3c   :  { %p6071_p13 = scmp.ne.s32.totalorder %s58_s18, %s6070_s25  ;;  %p6076_p1 = scmp.lt.s32.totalorder %s6070_s25, %s6070_s25 }
  0x3e   :  { %p6077_p2 = por %p6076_p1, %p6075_p0 }
  0x40   :  { %p6078_p3 = pnand %p6077_p2, %p6071_p13 }
  0x42   :  { %6081 = shalt.err (!%p6078_p3)
}
  0x43   :  { %63 = dma.hbm_to_vmem [thread:$0]  %s6741_s3, 2048, %s58_s18, [#allocation11], %s6093_s0, %s6093_s0, %s6094_s27  }
  0x44   :  { %6082 = dma.done.wait [#allocation6], 256  }
  0x45   :  { %6083 = vsyncadd [#allocation6], 4294967040 }
  0x46   :  { %6084 = dma.done.wait [#allocation8], 2304  }
  0x47   :  { %6085 = vsyncadd [#allocation8], 4294964992 }
  0x48   :  { %6086 = dma.done.wait [#allocation11], 2048  }
  0x49   :  { %6087 = vsyncadd [#allocation11], 4294965248  ;;  %v117_v0 = vlaneseq  ;;  %v6096_v1 = vmov 1983009808   ;;  %v6097_v3 = vmov 0.0|0.0   ;;  %vm6098_vm0 = vmmov 0  }
  0x4a   :  { %v115_v2 = vunpack.c.l.s4 %v6096_v1  ;;  %5508 = vmatprep.subr.bf16.mxu1 %v6097_v3  ;;  %v6099_v4 = vmov 0.0   ;;  %v82_v7 = vld [vmem:[#allocation9] sm:$0xff]  ;;  %v83_v8 = vld [vmem:[#allocation9 + $0x8] sm:$0xff]  ;;  %v84_v9 = vld [vmem:[#allocation9 + $0x10] sm:$0xff]  ;;  %vm156_vm1 = vcmask 261120   ;;  %s6100_s29 = smov 96  }
  0x4b   :  { %5123 = vmatprep.mubr.msk.f32.mxu1 %vm6098_vm0, %v6099_v4  ;;  %v6205_v6 = vshrl.u32 %v117_v0, 7  ;;  %v5500_v11 = vpack.c.bf16 %v83_v8, %v82_v7  ;;  %v85_v12 = vld [vmem:[#allocation9 + $0x18] sm:$0xff]  ;;  %v91_v13 = vld [vmem:[#allocation5] sm:$0x3]  ;;  %v92_v14 = vld [vmem:[#allocation5 + $0x2] sm:$0x3] }
  0x4c   :  { %v116_v5 = vunpack.c.0.s8 %v115_v2  ;;  %v5504_v15 = vpack.c.bf16 %v85_v12, %v84_v9  ;;  %v93_v16 = vld [vmem:[#allocation5 + $0x4] sm:$0x3]  ;;  %v94_v17 = vld [vmem:[#allocation5 + $0x6] sm:$0x3]  ;;  %v112_v18 = vcombine.low %v91_v13, %v92_v14  ;;  %v95_v19 = vld [vmem:[#allocation5 + $0x8] sm:$0x3] }
  0x4d   :  { %5501 = vmatprep.subr.bf16.mxu0 %v5500_v11  ;;  %v113_v20 = vcombine.low %v93_v16, %v94_v17  ;;  %v96_v21 = vld [vmem:[#allocation5 + $0xa] sm:$0x3]  ;;  %v97_v22 = vld [vmem:[#allocation5 + $0xc] sm:$0x3]  ;;  %v98_v23 = vld [vmem:[#allocation5 + $0xe] sm:$0x3] }
  0x4e   :  { %v6208_v10 = vsub.s32 %v116_v5, %v6205_v6  ;;  %5503 = vmatpush3.bf16.msra.mxu0 %v5500_v11  ;;  %v129_v25 = vcombine.low %v95_v19, %v96_v21  ;;  %v130_v26 = vcombine.low %v97_v22, %v98_v23  ;;  %v86_v27 = vld [vmem:[#allocation10] sm:$0xff]  ;;  %v87_v28 = vld [vmem:[#allocation10 + $0x8] sm:$0xff]  ;;  %v88_v29 = vld [vmem:[#allocation10 + $0x10] sm:$0xff]  ;;  %s6101_s30 = smov 64   ;;  %vm402_vm2 = vcmask 254976  }
  0x4f   :  { %5505 = vmatprep.subr.bf16.mxu0 %v5504_v15  ;;  %v6212_v31 = vpack.c.bf16 %v87_v28, %v86_v27  ;;  %v89_v32 = vld [vmem:[#allocation10 + $0x18] sm:$0xff]  ;;  %v4828_v38 = vld [vmem:[%s6742_s4] ss:$0 sm:$0xff]  ;;  %v387_v12 = vld [vmem:[#allocation7] sm:$0x3]  ;;  %vm4804_vm3 = vcmask 1041409  }
  0x50   :  { %v120_v24 = vrot.slane %v112_v18, %v6208_v10  ;;  %v127_v30 = vrot.slane %v113_v20, %v6208_v10  ;;  %v137_v33 = vrot.slane %v129_v25, %v6208_v10  ;;  %v144_v34 = vrot.slane %v130_v26, %v6208_v10 }
  0x51   :  { %5510 = vmatpush3.bf16.msra.mxu1 %v6212_v31  ;;  %v6217_v36 = vpack.c.bf16 %v89_v32, %v88_v29  ;;  %v146_v39 = vcombine.low %v4828_v38, %v4828_v38  ;;  %v388_v13 = vsub.f32 1.0, %v387_v12  ;;  %vm4806_vm4 = vcmask 1042434  }
  0x52   :  { %v128_v35 = vcombine.low %v120_v24, %v127_v30  ;;  %5507 = vmatpush3.bf16.msra.mxu0 %v5504_v15  ;;  %v145_v37 = vcombine.low %v137_v33, %v144_v34  ;;  %5511 = vmatprep.subr.bf16.mxu1 %v6097_v3  ;;  %vm4808_vm5 = vcmask 1043459   ;;  %vm4810_vm6 = vcmask 1044484  }
  0x53   :  { %5514 = vmatprep.subr.bf16.mxu0 %v6097_v3  ;;  %v153_v40 = vrot.slane %v146_v39, %v6208_v10  ;;  %v394_v14 = vmul.f32 0.0, %v388_v13  ;;  %vm4812_vm7 = vcmask 1045509   ;;  %vm4814_vm8 = vcmask 1046534  }
  0x54   :  { %5112 = vmatprep.mubr.msk.f32.mxu0 %vm156_vm1, %v128_v35  ;;  %vm4816_vm9 = vcmask 1047559   ;;  %vm4819_vm10 = vcmask 15360  }
  0x55   :  { %5113 = vmatmul.mubr.msk.f32.vlgmr.msra.gmra.mrb[0].mxu0 %vm156_vm1, %v145_v37  ;;  %5513 = vmatpush3.bf16.msra.mxu1 %v6217_v36  ;;  %v154_v41 = vcombine.low %v153_v40, %v153_v40 }
  0x56   :  { %5516 = vmatpush3.bf16.msra.mxu0 %v6212_v31  ;;  %5134 = vmatprep.mubr.msk.f32.mxu0 %vm6098_vm0, %v6099_v4 }
  0x57   :  { %5517 = vmatprep.subr.bf16.mxu0 %v6097_v3  ;;  %5520 = vmatprep.subr.bf16.mxu1 %v6097_v3 }
  0x58   :  { %5124 = vmatmul.mubr.f32.vlgmr.msra.gmra.mrb[0].mxu1 %v6099_v4 }
  0x59   :  { %5522 = vmatpush3.bf16.msra.mxu1 %v6212_v31  ;;  %5145 = vmatprep.mubr.msk.f32.mxu1 %vm6098_vm0, %v6099_v4 }
  0x5a   :  { %5519 = vmatpush3.bf16.msra.mxu0 %v6217_v36  ;;  %5523 = vmatprep.subr.bf16.mxu1 %v6097_v3 }
  0x5b   :  { %5526 = vmatprep.subr.bf16.mxu0 %v6097_v3 }
  0x5d   :  { %5525 = vmatpush3.bf16.msra.mxu1 %v6217_v36 }
  0x5e   :  { %5532 = vmatprep.subr.bf16.mxu1 %v6097_v3 }
 0x128   :  { %v5114_v42 = vpop.f32.mrb[0].mxu0 }
 0x129   :  { %v233_v43 = vadd.f32 %v5114_v42, %v154_v41  ;;  %v227_v44 = vpop.f32.mrb[1].mxu0 }
 0x12a   :  { %v228_v45 = vadd.f32 %v227_v44, %v154_v41  ;;  %v509_v41 = vld [vmem:[#allocation7 + $0x2] sm:$0x3] }
 0x12b   :  { %v255_v46 = vcombine.high %v233_v43, %v233_v43  ;;  %v262_v47 = vrot.slane %v233_v43, %v6208_v10  ;;  %4833 = vst.sshfl [vmem:[#allocation3 + $0x8] sm:$0x3 pattern:$0x76325410] %v233_v43  ;;  %v358_v48 = vpop.f32.mrb[0].mxu1  ;;  %v510_v44 = vsub.f32 1.0, %v509_v41 }
 0x12c   :  { %v238_v49 = vcombine.high %v228_v45, %v228_v45  ;;  %v245_v50 = vrot.slane %v228_v45, %v6208_v10  ;;  %4831 = vst.sshfl [vmem:[#allocation3] sm:$0x3 pattern:$0x76325410] %v228_v45  ;;  %v5125_v51 = vpop.f32.mrb[1].mxu1 }
 0x12d   :  { %v269_v52 = vrot.slane %v255_v46, %v6208_v10  ;;  %v270_v53 = vcombine.high %v262_v47, %v262_v47  ;;  %4834 = vst.sshfl [vmem:[#allocation3 + $0xc] sm:$0x3 pattern:$0x76325410] %v255_v46 }
 0x12e   :  { %v252_v54 = vrot.slane %v238_v49, %v6208_v10  ;;  %v253_v55 = vcombine.high %v245_v50, %v245_v50  ;;  %4832 = vst.sshfl [vmem:[#allocation3 + $0x4] sm:$0x3 pattern:$0x76325410] %v238_v49 }
 0x12f   :  { %v271_v56 = vcombine.high %v269_v52, %v269_v52  ;;  %285 = vst [vmem:[#allocation3 + $0xa] sm:$0x3] %v270_v53 }
 0x130   :  { %v254_v57 = vcombine.high %v252_v54, %v252_v54  ;;  %281 = vst [vmem:[#allocation3 + $0x2] sm:$0x3] %v253_v55 }
 0x131   :  { %287 = vst [vmem:[#allocation3 + $0xe] sm:$0x3] %v271_v56 }
 0x132   :  { %283 = vst [vmem:[#allocation3 + $0x6] sm:$0x3] %v254_v57 }
 0x133   :  { %v288_v58 = vld [vmem:[#allocation3] sm:$0x3] }
 0x134   :  { %v362_v59 = vadd.f32 %v358_v48, %v288_v58 }
 0x135   :  { %v528_v53 = vld [vmem:[#allocation3 + $0x4] sm:$0x3] }
 0x136   :  { %5738 = vtanh.f32 %v362_v59  ;;  %v4835_v61 = vmul.f32 -1.442695, %v362_v59 }
 0x137   :  { %v405_v23 = vld [vmem:[#allocation3 + $0x2] sm:$0x3] }
 0x138   :  { %5740 = vpow2.f32 %v4835_v61 }
 0x140   :  { %v5739_v60 = vpop.eup %5738 }
 0x141   :  { %372 = vrot.lane.b32.xlu0 %v5739_v60, %s6090_s13 }
 0x142   :  { %v5741_v62 = vpop.eup %5740 }
 0x143   :  { %v366_v63 = vadd.f32 1.0, %v5741_v62 }
 0x145   :  { %5742 = vrcp.f32 %v366_v63 }
 0x14f   :  { %v5743_v1 = vpop.eup %5742 }
 0x150   :  { %v370_v7 = vmul.f32 0.0, %v5743_v1 }
 0x1b3   :  { %v373_v2 = vpop.permute.xlu0 %372 }
 0x1b4   :  { %v375_v5 = vmul.f32 %v5743_v1, %v373_v2 }
 0x1b6   :  { %377 = vrot.lane.b32.xlu0 %v375_v5, %s6090_s13 }
 0x228   :  { %v378_v8 = vpop.permute.xlu0 %377 }
 0x229   :  { %v380_v9 = vadd.f32 %v378_v8, %v370_v7 }
 0x22b   :  { %390 = vrot.lane.b32.xlu0 %v380_v9, %s6100_s29  ;;  %5744 = vtanh.f32 %v380_v9  ;;  %v632_v9 = vld [vmem:[#allocation7 + $0x4] sm:$0x3] }
 0x22c   :  { %v633_v13 = vsub.f32 1.0, %v632_v9 }
 0x235   :  { %v5745_v11 = vpop.eup %5744 }
 0x236   :  { %383 = vrot.lane.b32.xlu1 %v5745_v11, %s6090_s13 }
 0x29d   :  { %v391_v15 = vpop.permute.xlu0 %390 }
 0x29e   :  { %v393_v16 = vmul.f32 %v391_v15, %v387_v12 }
 0x2a0   :  { %v395_v17 = vadd.f32 %v394_v14, %v393_v16 }
 0x2a2   :  { %488 = vrot.lane.b32.xlu0 %v395_v17, %s6090_s13  ;;  %v516_v47 = vmul.f32 %v510_v44, %v395_v17 }
 0x2a8   :  { %v384_v18 = vpop.permute.xlu1 %383 }
 0x2a9   :  { %v386_v19 = vmul.f32 %v5743_v1, %v384_v18 }
 0x2ab   :  { %397 = vrot.lane.b32.xlu1 %v386_v19, %s6101_s30 }
 0x314   :  { %v489_v35 = vpop.permute.xlu0 %488 }
 0x31d   :  { %v398_v20 = vpop.permute.xlu1 %397 }
 0x31e   :  { %v400_v21 = vmul.f32 %v398_v20, %v387_v12 }
 0x320   :  { %v401_v22 = vadd.f32 %v400_v21, %v394_v14  ;;  %403 = vst.msk [vmem:[#allocation2] sm:$0x3] %vm402_vm2, %v400_v21 }
 0x322   :  { %5135 = vmatmul.mubr.msk.f32.vlgmr.msra.gmra.mrb[2].mxu0 %vm156_vm1, %v401_v22  ;;  %v523_v50 = vmul.f32 %v510_v44, %v401_v22  ;;  %v651_v22 = vld [vmem:[#allocation3 + $0x6] sm:$0x3] }
 0x323   :  { %5528 = vmatpush3.bf16.msra.mxu0 %v6212_v31  ;;  %5156 = vmatprep.mubr.msk.f32.mxu0 %vm6098_vm0, %v6099_v4 }
 0x324   :  { %5529 = vmatprep.subr.bf16.mxu0 %v6097_v3 }
 0x327   :  { %5531 = vmatpush3.bf16.msra.mxu0 %v6217_v36 }
 0x328   :  { %5538 = vmatprep.subr.bf16.mxu0 %v6097_v3 }
 0x3f5   :  { %v475_v24 = vpop.f32.mrb[2].mxu0 }
 0x3f6   :  { %v479_v25 = vadd.f32 %v475_v24, %v405_v23  ;;  %v5136_v26 = vpop.f32.mrb[3].mxu0 }
 0x3f8   :  { %5746 = vtanh.f32 %v479_v25  ;;  %v4837_v28 = vmul.f32 -1.442695, %v479_v25 }
 0x3fa   :  { %5748 = vpow2.f32 %v4837_v28 }
 0x402   :  { %v5747_v27 = vpop.eup %5746 }
 0x403   :  { %493 = vrot.lane.b32.xlu1 %v5747_v27, %s6090_s13 }
 0x404   :  { %v5749_v29 = vpop.eup %5748 }
 0x405   :  { %v483_v30 = vadd.f32 1.0, %v5749_v29 }
 0x407   :  { %5750 = vrcp.f32 %v483_v30 }
 0x411   :  { %v5751_v32 = vpop.eup %5750 }
 0x412   :  { %v491_v37 = vmul.f32 %v5751_v32, %v489_v35 }
 0x475   :  { %v494_v33 = vpop.permute.xlu1 %493 }
 0x476   :  { %v496_v34 = vmul.f32 %v5751_v32, %v494_v33 }
 0x478   :  { %498 = vrot.lane.b32.xlu1 %v496_v34, %s6090_s13 }
 0x4ea   :  { %v499_v38 = vpop.permute.xlu1 %498 }
 0x4eb   :  { %v501_v39 = vadd.f32 %v499_v38, %v491_v37 }
 0x4ed   :  { %5752 = vtanh.f32 %v501_v39 }
 0x4f7   :  { %v5753_v40 = vpop.eup %5752 }
 0x4f8   :  { %504 = vrot.lane.b32.xlu0 %v5753_v40, %s6090_s13  ;;  %v755_v40 = vld [vmem:[#allocation7 + $0x6] sm:$0x3] }
 0x4fc   :  { %512 = vrot.lane.b32.xlu0 %v501_v39, %s6100_s29 }
 0x56a   :  { %v505_v42 = vpop.permute.xlu0 %504 }
 0x56b   :  { %v507_v43 = vmul.f32 %v5751_v32, %v505_v42 }
 0x56d   :  { %519 = vrot.lane.b32.xlu1 %v507_v43, %s6101_s30  ;;  %v756_v43 = vsub.f32 1.0, %v755_v40 }
 0x56e   :  { %v513_v45 = vpop.permute.xlu0 %512 }
 0x56f   :  { %v515_v46 = vmul.f32 %v513_v45, %v509_v41 }
 0x571   :  { %v517_v48 = vadd.f32 %v516_v47, %v515_v46 }
 0x573   :  { %611 = vrot.lane.b32.xlu0 %v517_v48, %s6090_s13  ;;  %v639_v16 = vmul.f32 %v633_v13, %v517_v48 }
 0x5df   :  { %v520_v49 = vpop.permute.xlu1 %519 }
 0x5e0   :  { %v522_v51 = vmul.f32 %v520_v49, %v509_v41 }
 0x5e2   :  { %v524_v52 = vadd.f32 %v523_v50, %v522_v51  ;;  %526 = vst.msk [vmem:[#allocation2 + $0x2] sm:$0x3] %vm402_vm2, %v522_v51 }
 0x5e4   :  { %5146 = vmatmul.mubr.msk.f32.vlgmr.msra.gmra.mrb[2].mxu1 %vm156_vm1, %v524_v52  ;;  %v646_v19 = vmul.f32 %v633_v13, %v524_v52  ;;  %v774_v52 = vld [vmem:[#allocation3 + $0x8] sm:$0x3] }
 0x5e5   :  { %5534 = vmatpush3.bf16.msra.mxu1 %v6212_v31  ;;  %5167 = vmatprep.mubr.msk.f32.mxu1 %vm6098_vm0, %v6099_v4  ;;  %v612_v1 = vpop.permute.xlu0 %611 }
 0x5e6   :  { %5535 = vmatprep.subr.bf16.mxu1 %v6097_v3 }
 0x5e9   :  { %5537 = vmatpush3.bf16.msra.mxu1 %v6217_v36 }
 0x5ea   :  { %5544 = vmatprep.subr.bf16.mxu1 %v6097_v3 }
 0x6b7   :  { %v598_v54 = vpop.f32.mrb[2].mxu1 }
 0x6b8   :  { %v602_v55 = vadd.f32 %v598_v54, %v528_v53  ;;  %v5147_v56 = vpop.f32.mrb[3].mxu1 }
 0x6ba   :  { %5754 = vtanh.f32 %v602_v55  ;;  %v4839_v58 = vmul.f32 -1.442695, %v602_v55 }
 0x6bc   :  { %5756 = vpow2.f32 %v4839_v58 }
 0x6c4   :  { %v5755_v57 = vpop.eup %5754 }
 0x6c5   :  { %616 = vrot.lane.b32.xlu1 %v5755_v57, %s6090_s13 }
 0x6c6   :  { %v5757_v59 = vpop.eup %5756 }
 0x6c7   :  { %v606_v60 = vadd.f32 1.0, %v5757_v59 }
 0x6c9   :  { %5758 = vrcp.f32 %v606_v60 }
 0x6d3   :  { %v5759_v61 = vpop.eup %5758 }
 0x6d4   :  { %v614_v2 = vmul.f32 %v5759_v61, %v612_v1 }
 0x737   :  { %v617_v62 = vpop.permute.xlu1 %616 }
 0x738   :  { %v619_v63 = vmul.f32 %v5759_v61, %v617_v62 }
 0x73a   :  { %621 = vrot.lane.b32.xlu1 %v619_v63, %s6090_s13 }
 0x7ac   :  { %v622_v5 = vpop.permute.xlu1 %621 }
 0x7ad   :  { %v624_v7 = vadd.f32 %v622_v5, %v614_v2 }
 0x7af   :  { %5760 = vtanh.f32 %v624_v7 }
 0x7b9   :  { %v5761_v8 = vpop.eup %5760 }
 0x7ba   :  { %627 = vrot.lane.b32.xlu0 %v5761_v8, %s6090_s13  ;;  %v878_v8 = vld [vmem:[#allocation7 + $0x8] sm:$0x3] }
 0x7be   :  { %635 = vrot.lane.b32.xlu0 %v624_v7, %s6100_s29 }
 0x82c   :  { %v628_v11 = vpop.permute.xlu0 %627 }
 0x82d   :  { %v630_v12 = vmul.f32 %v5759_v61, %v628_v11 }
 0x82f   :  { %642 = vrot.lane.b32.xlu1 %v630_v12, %s6101_s30  ;;  %v879_v12 = vsub.f32 1.0, %v878_v8 }
 0x830   :  { %v636_v14 = vpop.permute.xlu0 %635 }
 0x831   :  { %v638_v15 = vmul.f32 %v636_v14, %v632_v9 }
 0x833   :  { %v640_v17 = vadd.f32 %v639_v16, %v638_v15 }
 0x835   :  { %734 = vrot.lane.b32.xlu0 %v640_v17, %s6090_s13  ;;  %v762_v46 = vmul.f32 %v756_v43, %v640_v17 }
 0x8a1   :  { %v643_v18 = vpop.permute.xlu1 %642 }
 0x8a2   :  { %v645_v20 = vmul.f32 %v643_v18, %v632_v9 }
 0x8a4   :  { %v647_v21 = vadd.f32 %v646_v19, %v645_v20  ;;  %649 = vst.msk [vmem:[#allocation2 + $0x4] sm:$0x3] %vm402_vm2, %v645_v20 }
 0x8a6   :  { %5157 = vmatmul.mubr.msk.f32.vlgmr.msra.gmra.mrb[4].mxu0 %vm156_vm1, %v647_v21  ;;  %v769_v49 = vmul.f32 %v756_v43, %v647_v21  ;;  %v897_v21 = vld [vmem:[#allocation3 + $0xa] sm:$0x3] }
 0x8a7   :  { %5540 = vmatpush3.bf16.msra.mxu0 %v6212_v31  ;;  %5178 = vmatprep.mubr.msk.f32.mxu0 %vm6098_vm0, %v6099_v4  ;;  %v735_v34 = vpop.permute.xlu0 %734 }
 0x8a8   :  { %5541 = vmatprep.subr.bf16.mxu0 %v6097_v3 }
 0x8ab   :  { %5543 = vmatpush3.bf16.msra.mxu0 %v6217_v36 }
 0x8ac   :  { %5550 = vmatprep.subr.bf16.mxu0 %v6097_v3 }
 0x979   :  { %v721_v23 = vpop.f32.mrb[4].mxu0 }
 0x97a   :  { %v725_v24 = vadd.f32 %v721_v23, %v651_v22  ;;  %v5158_v25 = vpop.f32.mrb[5].mxu0 }
 0x97c   :  { %5762 = vtanh.f32 %v725_v24  ;;  %v4841_v27 = vmul.f32 -1.442695, %v725_v24 }
 0x97e   :  { %5764 = vpow2.f32 %v4841_v27 }
 0x986   :  { %v5763_v26 = vpop.eup %5762 }
 0x987   :  { %739 = vrot.lane.b32.xlu1 %v5763_v26, %s6090_s13 }
 0x988   :  { %v5765_v28 = vpop.eup %5764 }
 0x989   :  { %v729_v29 = vadd.f32 1.0, %v5765_v28 }
 0x98b   :  { %5766 = vrcp.f32 %v729_v29 }
 0x995   :  { %v5767_v30 = vpop.eup %5766 }
 0x996   :  { %v737_v35 = vmul.f32 %v5767_v30, %v735_v34 }
 0x9f9   :  { %v740_v32 = vpop.permute.xlu1 %739 }
 0x9fa   :  { %v742_v33 = vmul.f32 %v5767_v30, %v740_v32 }
 0x9fc   :  { %744 = vrot.lane.b32.xlu1 %v742_v33, %s6090_s13 }
 0xa6e   :  { %v745_v37 = vpop.permute.xlu1 %744 }
 0xa6f   :  { %v747_v38 = vadd.f32 %v745_v37, %v737_v35  ;;  %v1001_v37 = vld [vmem:[#allocation7 + $0xa] sm:$0x3] }
 0xa71   :  { %5768 = vtanh.f32 %v747_v38 }
 0xa7b   :  { %v5769_v39 = vpop.eup %5768 }
 0xa7c   :  { %750 = vrot.lane.b32.xlu0 %v5769_v39, %s6090_s13 }
 0xa80   :  { %758 = vrot.lane.b32.xlu0 %v747_v38, %s6100_s29 }
 0xaee   :  { %v751_v41 = vpop.permute.xlu0 %750 }
 0xaef   :  { %v753_v42 = vmul.f32 %v5767_v30, %v751_v41 }
 0xaf1   :  { %765 = vrot.lane.b32.xlu1 %v753_v42, %s6101_s30 }
 0xaf2   :  { %v759_v44 = vpop.permute.xlu0 %758 }
 0xaf3   :  { %v761_v45 = vmul.f32 %v759_v44, %v755_v40 }
 0xaf5   :  { %v763_v47 = vadd.f32 %v762_v46, %v761_v45  ;;  %v1268_v46 = vld [vmem:[#allocation2 + $0x2] sm:$0x3] }
 0xaf7   :  { %857 = vrot.lane.b32.xlu0 %v763_v47, %s6090_s13  ;;  %v885_v15 = vmul.f32 %v879_v12, %v763_v47  ;;  %v1269_v47 = vld [vmem:[#allocation2 + $0x4] sm:$0x3] }
 0xb63   :  { %v766_v48 = vpop.permute.xlu1 %765 }
 0xb64   :  { %v768_v50 = vmul.f32 %v766_v48, %v755_v40  ;;  %v1002_v40 = vsub.f32 1.0, %v1001_v37 }
 0xb66   :  { %v770_v51 = vadd.f32 %v769_v49, %v768_v50  ;;  %772 = vst.msk [vmem:[#allocation2 + $0x6] sm:$0x3] %vm402_vm2, %v768_v50  ;;  %v1267_v49 = vld [vmem:[#allocation2] sm:$0x3] }
 0xb67   :  { %v1288_v50 = vcombine.low %v1267_v49, %v1268_v46 }
 0xb68   :  { %5168 = vmatmul.mubr.msk.f32.vlgmr.msra.gmra.mrb[4].mxu1 %vm156_vm1, %v770_v51  ;;  %v892_v18 = vmul.f32 %v879_v12, %v770_v51 }
 0xb69   :  { %5546 = vmatpush3.bf16.msra.mxu1 %v6212_v31  ;;  %5189 = vmatprep.mubr.msk.f32.mxu1 %vm6098_vm0, %v6099_v4  ;;  %v858_v63 = vpop.permute.xlu0 %857 }
 0xb6a   :  { %5547 = vmatprep.subr.bf16.mxu1 %v6097_v3 }
 0xb6d   :  { %5549 = vmatpush3.bf16.msra.mxu1 %v6217_v36  ;;  %v1270_v45 = vld [vmem:[#allocation2 + $0x6] sm:$0x3] }
 0xb6e   :  { %v1289_v48 = vcombine.low %v1269_v47, %v1270_v45  ;;  %v1258_v45 = vld [vmem:[#allocation9 + $0x30] sm:$0xff]  ;;  %v1259_v47 = vld [vmem:[#allocation9 + $0x38] sm:$0xff] }
 0xc3b   :  { %v844_v53 = vpop.f32.mrb[4].mxu1 }
 0xc3c   :  { %v848_v54 = vadd.f32 %v844_v53, %v774_v52  ;;  %v5169_v55 = vpop.f32.mrb[5].mxu1  ;;  %v1303_v52 = vrot.slane %v1289_v48, %v6208_v10  ;;  %v5560_v48 = vpack.c.bf16 %v1259_v47, %v1258_v45 }
 0xc3d   :  { %v1296_v55 = vrot.slane %v1288_v50, %v6208_v10 }
 0xc3e   :  { %5770 = vtanh.f32 %v848_v54  ;;  %v4843_v57 = vmul.f32 -1.442695, %v848_v54 }
 0xc40   :  { %5772 = vpow2.f32 %v4843_v57  ;;  %v1304_v57 = vcombine.low %v1296_v55, %v1303_v52  ;;  %v1262_v52 = vld [vmem:[#allocation10 + $0x28] sm:$0xff]  ;;  %v1264_v55 = vld [vmem:[#allocation10 + $0x38] sm:$0xff] }
 0xc48   :  { %v5771_v56 = vpop.eup %5770 }
 0xc49   :  { %862 = vrot.lane.b32.xlu1 %v5771_v56, %s6090_s13 }
 0xc4a   :  { %v5773_v58 = vpop.eup %5772 }
 0xc4b   :  { %v852_v59 = vadd.f32 1.0, %v5773_v58  ;;  %v1020_v58 = vld [vmem:[#allocation3 + $0xc] sm:$0x3] }
 0xc4d   :  { %5774 = vrcp.f32 %v852_v59 }
 0xc57   :  { %v5775_v60 = vpop.eup %5774 }
 0xc58   :  { %v860_v1 = vmul.f32 %v5775_v60, %v858_v63 }
 0xcbb   :  { %v863_v61 = vpop.permute.xlu1 %862 }
 0xcbc   :  { %v865_v62 = vmul.f32 %v5775_v60, %v863_v61 }
 0xcbe   :  { %867 = vrot.lane.b32.xlu1 %v865_v62, %s6090_s13 }
 0xd30   :  { %v868_v2 = vpop.permute.xlu1 %867 }
 0xd31   :  { %v870_v5 = vadd.f32 %v868_v2, %v860_v1 }
 0xd33   :  { %5776 = vtanh.f32 %v870_v5 }
 0xd3d   :  { %v5777_v7 = vpop.eup %5776 }
 0xd3e   :  { %873 = vrot.lane.b32.xlu0 %v5777_v7, %s6090_s13 }
 0xd42   :  { %881 = vrot.lane.b32.xlu0 %v870_v5, %s6100_s29 }
 0xdb0   :  { %v874_v9 = vpop.permute.xlu0 %873 }
 0xdb1   :  { %v876_v11 = vmul.f32 %v5775_v60, %v874_v9 }
 0xdb3   :  { %888 = vrot.lane.b32.xlu1 %v876_v11, %s6101_s30 }
 0xdb4   :  { %v882_v13 = vpop.permute.xlu0 %881 }
 0xdb5   :  { %v884_v14 = vmul.f32 %v882_v13, %v878_v8 }
 0xdb7   :  { %v886_v16 = vadd.f32 %v885_v15, %v884_v14  ;;  %v1124_v15 = vld [vmem:[#allocation7 + $0xc] sm:$0x3] }
 0xdb9   :  { %980 = vrot.lane.b32.xlu0 %v886_v16, %s6090_s13  ;;  %v1008_v43 = vmul.f32 %v1002_v40, %v886_v16 }
 0xe25   :  { %v889_v17 = vpop.permute.xlu1 %888 }
 0xe26   :  { %v891_v19 = vmul.f32 %v889_v17, %v878_v8 }
 0xe28   :  { %v893_v20 = vadd.f32 %v892_v18, %v891_v19  ;;  %895 = vst.msk [vmem:[#allocation2 + $0x8] sm:$0x3] %vm402_vm2, %v891_v19  ;;  %v1125_v18 = vsub.f32 1.0, %v1124_v15 }
 0xe2a   :  { %5179 = vmatmul.mubr.msk.f32.vlgmr.msra.gmra.mrb[6].mxu0 %vm156_vm1, %v893_v20  ;;  %v1015_v53 = vmul.f32 %v1002_v40, %v893_v20 }
 0xe2b   :  { %5552 = vmatpush3.bf16.msra.mxu0 %v6212_v31  ;;  %5200 = vmatprep.mubr.msk.f32.mxu0 %vm6098_vm0, %v6099_v4 }
 0xe2c   :  { %5553 = vmatprep.subr.bf16.mxu0 %v6097_v3 }
 0xe2f   :  { %5555 = vmatpush3.bf16.msra.mxu0 %v6217_v36  ;;  %v981_v36 = vpop.permute.xlu0 %980 }
 0xe30   :  { %5564 = vmatprep.subr.bf16.mxu0 %v6097_v3 }
 0xefd   :  { %v967_v22 = vpop.f32.mrb[6].mxu0 }
 0xefe   :  { %v971_v23 = vadd.f32 %v967_v22, %v897_v21  ;;  %v5180_v24 = vpop.f32.mrb[7].mxu0 }
 0xf00   :  { %5778 = vtanh.f32 %v971_v23  ;;  %v4845_v26 = vmul.f32 -1.442695, %v971_v23 }
 0xf02   :  { %5780 = vpow2.f32 %v4845_v26 }
 0xf0a   :  { %v5779_v25 = vpop.eup %5778 }
 0xf0b   :  { %985 = vrot.lane.b32.xlu1 %v5779_v25, %s6090_s13 }
 0xf0c   :  { %v5781_v31 = vpop.eup %5780 }
 0xf0d   :  { %v975_v27 = vadd.f32 1.0, %v5781_v31  ;;  %v1143_v31 = vld [vmem:[#allocation3 + $0xe] sm:$0x3] }
 0xf0f   :  { %5782 = vrcp.f32 %v975_v27 }
 0xf19   :  { %v5783_v28 = vpop.eup %5782 }
 0xf1a   :  { %v983_v32 = vmul.f32 %v5783_v28, %v981_v36 }
 0xf7d   :  { %v986_v29 = vpop.permute.xlu1 %985 }
 0xf7e   :  { %v988_v30 = vmul.f32 %v5783_v28, %v986_v29 }
 0xf80   :  { %990 = vrot.lane.b32.xlu1 %v988_v30, %s6090_s13 }
 0xff2   :  { %v991_v33 = vpop.permute.xlu1 %990 }
 0xff3   :  { %v993_v34 = vadd.f32 %v991_v33, %v983_v32 }
 0xff5   :  { %5784 = vtanh.f32 %v993_v34 }
 0xfff   :  { %v5785_v35 = vpop.eup %5784 }
0x1000   :  { %996 = vrot.lane.b32.xlu0 %v5785_v35, %s6090_s13 }
0x1004   :  { %1004 = vrot.lane.b32.xlu0 %v993_v34, %s6100_s29 }
0x1072   :  { %v997_v38 = vpop.permute.xlu0 %996 }
0x1073   :  { %v999_v39 = vmul.f32 %v5783_v28, %v997_v38 }
0x1075   :  { %1011 = vrot.lane.b32.xlu1 %v999_v39, %s6101_s30 }
0x1076   :  { %v1005_v41 = vpop.permute.xlu0 %1004 }
0x1077   :  { %v1007_v42 = vmul.f32 %v1005_v41, %v1001_v37 }
0x1079   :  { %v1009_v44 = vadd.f32 %v1008_v43, %v1007_v42  ;;  %v1256_v43 = vld [vmem:[#allocation9 + $0x20] sm:$0xff] }
0x107b   :  { %1103 = vrot.lane.b32.xlu0 %v1009_v44, %s6090_s13  ;;  %v1131_v21 = vmul.f32 %v1125_v18, %v1009_v44  ;;  %v1257_v44 = vld [vmem:[#allocation9 + $0x28] sm:$0xff] }
0x107c   :  { %v5556_v46 = vpack.c.bf16 %v1257_v44, %v1256_v43  ;;  %v1559_v43 = vld [vmem:[#allocation7] sm:$0x3] }
0x107d   :  { %v1560_v44 = vsub.f32 1.0, %v1559_v43 }
0x107e   :  { %5557 = vmatprep.subr.bf16.mxu1 %v5556_v46 }
0x107f   :  { %v1566_v47 = vmul.f32 0.0, %v1560_v44 }
0x10e7   :  { %v1012_v51 = vpop.permute.xlu1 %1011 }
0x10e8   :  { %v1014_v54 = vmul.f32 %v1012_v51, %v1001_v37  ;;  %v1261_v51 = vld [vmem:[#allocation10 + $0x20] sm:$0xff] }
0x10ea   :  { %v1016_v56 = vadd.f32 %v1015_v53, %v1014_v54  ;;  %1018 = vst.msk [vmem:[#allocation2 + $0xa] sm:$0x3] %vm402_vm2, %v1014_v54  ;;  %v1263_v53 = vld [vmem:[#allocation10 + $0x30] sm:$0xff]  ;;  %v6341_v54 = vpack.c.bf16 %v1262_v52, %v1261_v51 }
0x10ec   :  { %5190 = vmatmul.mubr.msk.f32.vlgmr.msra.gmra.mrb[6].mxu1 %vm156_vm1, %v1016_v56  ;;  %v1138_v24 = vmul.f32 %v1125_v18, %v1016_v56  ;;  %v6344_v56 = vpack.c.bf16 %v1264_v55, %v1263_v53 }
0x10ed   :  { %5211 = vmatprep.mubr.msk.f32.mxu1 %vm156_vm1, %v1304_v57  ;;  %v1104_v9 = vpop.permute.xlu0 %1103  ;;  %5559 = vmatpush3.bf16.msra.mxu1 %v5556_v46  ;;  %v1247_v57 = vld [vmem:[#allocation7 + $0xe] sm:$0x3] }
0x10ee   :  { %5561 = vmatprep.subr.bf16.mxu1 %v5560_v48 }
0x10f1   :  { %5563 = vmatpush3.bf16.msra.mxu1 %v5560_v48 }
0x10f2   :  { %5570 = vmatprep.subr.bf16.mxu1 %v6097_v3 }
0x11bf   :  { %v1090_v59 = vpop.f32.mrb[6].mxu1 }
0x11c0   :  { %v1094_v60 = vadd.f32 %v1090_v59, %v1020_v58  ;;  %v5191_v61 = vpop.f32.mrb[7].mxu1 }
0x11c1   :  { %v1271_v61 = vld [vmem:[#allocation2 + $0x8] sm:$0x3] }
0x11c2   :  { %5786 = vtanh.f32 %v1094_v60  ;;  %v4847_v63 = vmul.f32 -1.442695, %v1094_v60  ;;  %v1272_v60 = vld [vmem:[#allocation2 + $0xa] sm:$0x3] }
0x11c4   :  { %5788 = vpow2.f32 %v4847_v63 }
0x11cc   :  { %v5787_v62 = vpop.eup %5786 }
0x11cd   :  { %1108 = vrot.lane.b32.xlu1 %v5787_v62, %s6090_s13  ;;  %v1305_v62 = vcombine.low %v1271_v61, %v1272_v60 }
0x11ce   :  { %v5789_v1 = vpop.eup %5788 }
0x11cf   :  { %v1098_v2 = vadd.f32 1.0, %v5789_v1 }
0x11d1   :  { %5790 = vrcp.f32 %v1098_v2 }
0x11db   :  { %v5791_v5 = vpop.eup %5790 }
0x11dc   :  { %v1106_v11 = vmul.f32 %v5791_v5, %v1104_v9 }
0x123f   :  { %v1109_v7 = vpop.permute.xlu1 %1108 }
0x1240   :  { %v1111_v8 = vmul.f32 %v5791_v5, %v1109_v7 }
0x1242   :  { %1113 = vrot.lane.b32.xlu1 %v1111_v8, %s6090_s13 }
0x12b4   :  { %v1114_v12 = vpop.permute.xlu1 %1113 }
0x12b5   :  { %v1116_v13 = vadd.f32 %v1114_v12, %v1106_v11  ;;  %v4851_v12 = vld [vmem:[%s6742_s4 + $0x1] ss:$0 sm:$0xff] }
0x12b7   :  { %5792 = vtanh.f32 %v1116_v13 }
0x12c1   :  { %v5793_v14 = vpop.eup %5792 }
0x12c2   :  { %1119 = vrot.lane.b32.xlu0 %v5793_v14, %s6090_s13 }
0x12c6   :  { %1127 = vrot.lane.b32.xlu0 %v1116_v13, %s6100_s29  ;;  %v1322_v13 = vcombine.low %v4851_v12, %v4851_v12 }
0x12c8   :  { %v1329_v14 = vrot.slane %v1322_v13, %v6208_v10  ;;  %v1678_v13 = vld [vmem:[#allocation7 + $0x2] sm:$0x3] }
0x1334   :  { %v1120_v16 = vpop.permute.xlu0 %1119 }
0x1335   :  { %v1122_v17 = vmul.f32 %v5791_v5, %v1120_v16  ;;  %v1313_v5 = vrot.slane %v1305_v62, %v6208_v10 }
0x1337   :  { %1134 = vrot.lane.b32.xlu1 %v1122_v17, %s6101_s30 }
0x1338   :  { %v1128_v19 = vpop.permute.xlu0 %1127 }
0x1339   :  { %v1130_v20 = vmul.f32 %v1128_v19, %v1124_v15 }
0x133b   :  { %v1132_v22 = vadd.f32 %v1131_v21, %v1130_v20 }
0x133d   :  { %1226 = vrot.lane.b32.xlu0 %v1132_v22, %s6090_s13 }
0x13a9   :  { %v1135_v23 = vpop.permute.xlu1 %1134 }
0x13aa   :  { %v1137_v25 = vmul.f32 %v1135_v23, %v1124_v15  ;;  %v1330_v15 = vcombine.low %v1329_v14, %v1329_v14 }
0x13ac   :  { %v1139_v26 = vadd.f32 %v1138_v24, %v1137_v25  ;;  %1141 = vst.msk [vmem:[#allocation2 + $0xc] sm:$0x3] %vm402_vm2, %v1137_v25 }
0x13ae   :  { %5201 = vmatmul.mubr.msk.f32.vlgmr.msra.gmra.mrb[8].mxu0 %vm156_vm1, %v1139_v26 }
0x13af   :  { %5222 = vmatprep.mubr.msk.f32.mxu0 %vm6098_vm0, %v6099_v4  ;;  %v1227_v38 = vpop.permute.xlu0 %1226  ;;  %5566 = vmatpush3.bf16.msra.mxu0 %v6341_v54 }
0x13b0   :  { %5567 = vmatprep.subr.bf16.mxu0 %v6097_v3 }
0x13b3   :  { %5569 = vmatpush3.bf16.msra.mxu0 %v6344_v56  ;;  %v1273_v63 = vld [vmem:[#allocation2 + $0xc] sm:$0x3] }
0x13b4   :  { %5576 = vmatprep.subr.bf16.mxu0 %v6097_v3 }
0x13b6   :  { %5223 = vmatmul.mubr.f32.vlgmr.msra.gmra.mrb[10].mxu0 %v6099_v4 }
0x13b7   :  { %5578 = vmatpush3.bf16.msra.mxu0 %v6341_v54  ;;  %5244 = vmatprep.mubr.msk.f32.mxu0 %vm6098_vm0, %v6099_v4 }
0x13b8   :  { %5579 = vmatprep.subr.bf16.mxu0 %v6097_v3 }
0x13bb   :  { %5581 = vmatpush3.bf16.msra.mxu0 %v6344_v56 }
0x13bc   :  { %5588 = vmatprep.subr.bf16.mxu0 %v6097_v3 }
0x1481   :  { %v1213_v27 = vpop.f32.mrb[8].mxu0 }
0x1482   :  { %v1217_v28 = vadd.f32 %v1213_v27, %v1143_v31  ;;  %v5202_v29 = vpop.f32.mrb[9].mxu0 }
0x1484   :  { %5794 = vtanh.f32 %v1217_v28  ;;  %v4849_v36 = vmul.f32 -1.442695, %v1217_v28 }
0x1486   :  { %5796 = vpow2.f32 %v4849_v36 }
0x1489   :  { %v1530_v9 = vpop.f32.mrb[10].mxu0 }
0x148a   :  { %v5224_v11 = vpop.f32.mrb[11].mxu0 }
0x148e   :  { %v5795_v30 = vpop.eup %5794 }
0x148f   :  { %1231 = vrot.lane.b32.xlu1 %v5795_v30, %s6090_s13 }
0x1490   :  { %v5797_v32 = vpop.eup %5796 }
0x1491   :  { %v1221_v33 = vadd.f32 1.0, %v5797_v32 }
0x1493   :  { %5798 = vrcp.f32 %v1221_v33 }
0x149d   :  { %v5799_v34 = vpop.eup %5798 }
0x149e   :  { %v1229_v39 = vmul.f32 %v5799_v34, %v1227_v38 }
0x1501   :  { %v1232_v35 = vpop.permute.xlu1 %1231 }
0x1502   :  { %v1234_v37 = vmul.f32 %v5799_v34, %v1232_v35 }
0x1504   :  { %1236 = vrot.lane.b32.xlu1 %v1234_v37, %s6090_s13 }
0x1576   :  { %v1237_v40 = vpop.permute.xlu1 %1236 }
0x1577   :  { %v1239_v41 = vadd.f32 %v1237_v40, %v1229_v39 }
0x1579   :  { %5800 = vtanh.f32 %v1239_v41 }
0x1583   :  { %v5801_v42 = vpop.eup %5800 }
0x1584   :  { %1242 = vrot.lane.b32.xlu0 %v5801_v42, %s6090_s13 }
0x15f6   :  { %v1243_v49 = vpop.permute.xlu0 %1242 }
0x15f7   :  { %v1245_v50 = vmul.f32 %v5799_v34, %v1243_v49 }
0x15f9   :  { %1249 = vrot.lane.b32.xlu1 %v1245_v50, %s6101_s30 }
0x166b   :  { %v1250_v58 = vpop.permute.xlu1 %1249 }
0x166c   :  { %v1252_v59 = vmul.f32 %v1250_v58, %v1247_v57 }
0x166e   :  { %1254 = vst.msk [vmem:[#allocation2 + $0xe] sm:$0x3] %vm402_vm2, %v1252_v59 }
0x1675   :  { %v1274_v1 = vld [vmem:[#allocation2 + $0xe] sm:$0x3] }
0x1676   :  { %v1306_v2 = vcombine.low %v1273_v63, %v1274_v1 }
0x1678   :  { %v1320_v7 = vrot.slane %v1306_v2, %v6208_v10 }
0x167a   :  { %v1321_v8 = vcombine.low %v1313_v5, %v1320_v7 }
0x167c   :  { %5212 = vmatmul.mubr.msk.f32.vlgmr.msra.gmra.mrb[8].mxu1 %vm156_vm1, %v1321_v8 }
0x167d   :  { %5572 = vmatpush3.bf16.msra.mxu1 %v6341_v54  ;;  %5233 = vmatprep.mubr.msk.f32.mxu1 %vm6098_vm0, %v6099_v4 }
0x167e   :  { %5573 = vmatprep.subr.bf16.mxu1 %v6097_v3 }
0x1681   :  { %5575 = vmatpush3.bf16.msra.mxu1 %v6344_v56 }
0x1682   :  { %5582 = vmatprep.subr.bf16.mxu1 %v6097_v3 }
0x174f   :  { %v5213_v16 = vpop.f32.mrb[8].mxu1 }
0x1750   :  { %v1408_v17 = vadd.f32 %v5213_v16, %v1330_v15  ;;  %v1402_v18 = vpop.f32.mrb[9].mxu1  ;;  %v1679_v16 = vsub.f32 1.0, %v1678_v13 }
0x1751   :  { %v1403_v19 = vadd.f32 %v1402_v18, %v1330_v15 }
0x1752   :  { %v1430_v20 = vcombine.high %v1408_v17, %v1408_v17  ;;  %v1437_v21 = vrot.slane %v1408_v17, %v6208_v10  ;;  %4856 = vst.sshfl [vmem:[#allocation3 + $0x8] sm:$0x3 pattern:$0x76325410] %v1408_v17 }
0x1753   :  { %v1413_v22 = vcombine.high %v1403_v19, %v1403_v19  ;;  %v1420_v23 = vrot.slane %v1403_v19, %v6208_v10  ;;  %4854 = vst.sshfl [vmem:[#allocation3] sm:$0x3 pattern:$0x76325410] %v1403_v19 }
0x1754   :  { %v1444_v24 = vrot.slane %v1430_v20, %v6208_v10  ;;  %v1445_v25 = vcombine.high %v1437_v21, %v1437_v21  ;;  %4857 = vst.sshfl [vmem:[#allocation3 + $0xc] sm:$0x3 pattern:$0x76325410] %v1430_v20 }
0x1755   :  { %v1427_v26 = vrot.slane %v1413_v22, %v6208_v10  ;;  %v1428_v31 = vcombine.high %v1420_v23, %v1420_v23  ;;  %4855 = vst.sshfl [vmem:[#allocation3 + $0x4] sm:$0x3 pattern:$0x76325410] %v1413_v22 }
0x1756   :  { %v1446_v27 = vcombine.high %v1444_v24, %v1444_v24  ;;  %1460 = vst [vmem:[#allocation3 + $0xa] sm:$0x3] %v1445_v25 }
0x1757   :  { %v1429_v28 = vcombine.high %v1427_v26, %v1427_v26  ;;  %1456 = vst [vmem:[#allocation3 + $0x2] sm:$0x3] %v1428_v31 }
0x1758   :  { %1462 = vst [vmem:[#allocation3 + $0xe] sm:$0x3] %v1446_v27 }
0x1759   :  { %1458 = vst [vmem:[#allocation3 + $0x6] sm:$0x3] %v1429_v28 }
0x175a   :  { %v1463_v29 = vld [vmem:[#allocation3] sm:$0x3] }
0x175b   :  { %v1534_v30 = vadd.f32 %v1530_v9, %v1463_v29 }
0x175c   :  { %v1695_v25 = vld [vmem:[#allocation3 + $0x4] sm:$0x3] }
0x175d   :  { %5802 = vtanh.f32 %v1534_v30  ;;  %v4858_v32 = vmul.f32 -1.442695, %v1534_v30 }
0x175e   :  { %v1575_v55 = vld [vmem:[#allocation3 + $0x2] sm:$0x3] }
0x175f   :  { %5804 = vpow2.f32 %v4858_v32 }
0x1767   :  { %v5803_v36 = vpop.eup %5802 }
0x1768   :  { %1544 = vrot.lane.b32.xlu0 %v5803_v36, %s6090_s13 }
0x1769   :  { %v5805_v33 = vpop.eup %5804 }
0x176a   :  { %v1538_v34 = vadd.f32 1.0, %v5805_v33 }
0x176c   :  { %5806 = vrcp.f32 %v1538_v34 }
0x1776   :  { %v5807_v35 = vpop.eup %5806 }
0x1777   :  { %v1542_v39 = vmul.f32 0.0, %v5807_v35 }
0x17da   :  { %v1545_v37 = vpop.permute.xlu0 %1544 }
0x17db   :  { %v1547_v38 = vmul.f32 %v5807_v35, %v1545_v37 }
0x17dd   :  { %1549 = vrot.lane.b32.xlu1 %v1547_v38, %s6090_s13 }
0x184f   :  { %v1550_v40 = vpop.permute.xlu1 %1549 }
0x1850   :  { %v1552_v41 = vadd.f32 %v1550_v40, %v1542_v39 }
0x1852   :  { %5808 = vtanh.f32 %v1552_v41 }
0x185c   :  { %v5809_v42 = vpop.eup %5808 }
0x185d   :  { %1555 = vrot.lane.b32.xlu0 %v5809_v42, %s6090_s13 }
0x1861   :  { %1562 = vrot.lane.b32.xlu0 %v1552_v41, %s6100_s29  ;;  %v1798_v41 = vld [vmem:[#allocation7 + $0x4] sm:$0x3] }
0x1862   :  { %v1799_v44 = vsub.f32 1.0, %v1798_v41 }
0x18cf   :  { %v1556_v45 = vpop.permute.xlu0 %1555 }
0x18d0   :  { %v1558_v46 = vmul.f32 %v5807_v35, %v1556_v45 }
0x18d2   :  { %1569 = vrot.lane.b32.xlu1 %v1558_v46, %s6101_s30 }
0x18d3   :  { %v1563_v48 = vpop.permute.xlu0 %1562 }
0x18d4   :  { %v1565_v49 = vmul.f32 %v1563_v48, %v1559_v43 }
0x18d6   :  { %v1567_v50 = vadd.f32 %v1566_v47, %v1565_v49 }
0x18d8   :  { %1658 = vrot.lane.b32.xlu0 %v1567_v50, %s6090_s13  ;;  %v1685_v19 = vmul.f32 %v1679_v16, %v1567_v50 }
0x1944   :  { %v1570_v51 = vpop.permute.xlu1 %1569 }
0x1945   :  { %v1572_v52 = vmul.f32 %v1570_v51, %v1559_v43 }
0x1947   :  { %v1573_v53 = vadd.f32 %v1572_v52, %v1566_v47  ;;  %1574 = vst.msk [vmem:[#allocation2] sm:$0x3] %vm402_vm2, %v1572_v52 }
0x1949   :  { %5234 = vmatmul.mubr.msk.f32.vlgmr.msra.gmra.mrb[10].mxu1 %vm156_vm1, %v1573_v53  ;;  %v1692_v22 = vmul.f32 %v1679_v16, %v1573_v53  ;;  %v1815_v53 = vld [vmem:[#allocation3 + $0x6] sm:$0x3] }
0x194a   :  { %5584 = vmatpush3.bf16.msra.mxu1 %v6341_v54  ;;  %5255 = vmatprep.mubr.msk.f32.mxu1 %vm6098_vm0, %v6099_v4  ;;  %v1659_v7 = vpop.permute.xlu0 %1658 }
0x194b   :  { %5585 = vmatprep.subr.bf16.mxu1 %v6097_v3 }
0x194e   :  { %5587 = vmatpush3.bf16.msra.mxu1 %v6344_v56 }
0x194f   :  { %5594 = vmatprep.subr.bf16.mxu1 %v6097_v3 }
0x1a1c   :  { %v1645_v57 = vpop.f32.mrb[10].mxu1 }
0x1a1d   :  { %v1649_v58 = vadd.f32 %v1645_v57, %v1575_v55  ;;  %v5235_v59 = vpop.f32.mrb[11].mxu1 }
0x1a1f   :  { %5810 = vtanh.f32 %v1649_v58  ;;  %v4860_v61 = vmul.f32 -1.442695, %v1649_v58 }
0x1a21   :  { %5812 = vpow2.f32 %v4860_v61 }
0x1a29   :  { %v5811_v60 = vpop.eup %5810 }
0x1a2a   :  { %1663 = vrot.lane.b32.xlu1 %v5811_v60, %s6090_s13 }
0x1a2b   :  { %v5813_v62 = vpop.eup %5812 }
0x1a2c   :  { %v1653_v63 = vadd.f32 1.0, %v5813_v62 }
0x1a2e   :  { %5814 = vrcp.f32 %v1653_v63 }
0x1a38   :  { %v5815_v1 = vpop.eup %5814 }
0x1a39   :  { %v1661_v8 = vmul.f32 %v5815_v1, %v1659_v7 }
0x1a9c   :  { %v1664_v2 = vpop.permute.xlu1 %1663 }
0x1a9d   :  { %v1666_v5 = vmul.f32 %v5815_v1, %v1664_v2 }
0x1a9f   :  { %1668 = vrot.lane.b32.xlu1 %v1666_v5, %s6090_s13 }
0x1b11   :  { %v1669_v9 = vpop.permute.xlu1 %1668 }
0x1b12   :  { %v1671_v11 = vadd.f32 %v1669_v9, %v1661_v8 }
0x1b14   :  { %5816 = vtanh.f32 %v1671_v11 }
0x1b1e   :  { %v5817_v12 = vpop.eup %5816 }
0x1b1f   :  { %1674 = vrot.lane.b32.xlu0 %v5817_v12, %s6090_s13  ;;  %v1918_v12 = vld [vmem:[#allocation7 + $0x6] sm:$0x3] }
0x1b23   :  { %1681 = vrot.lane.b32.xlu0 %v1671_v11, %s6100_s29 }
0x1b91   :  { %v1675_v14 = vpop.permute.xlu0 %1674 }
0x1b92   :  { %v1677_v15 = vmul.f32 %v5815_v1, %v1675_v14 }
0x1b94   :  { %1688 = vrot.lane.b32.xlu1 %v1677_v15, %s6101_s30  ;;  %v1919_v15 = vsub.f32 1.0, %v1918_v12 }
0x1b95   :  { %v1682_v17 = vpop.permute.xlu0 %1681 }
0x1b96   :  { %v1684_v18 = vmul.f32 %v1682_v17, %v1678_v13 }
0x1b98   :  { %v1686_v20 = vadd.f32 %v1685_v19, %v1684_v18 }
0x1b9a   :  { %1778 = vrot.lane.b32.xlu0 %v1686_v20, %s6090_s13  ;;  %v1805_v47 = vmul.f32 %v1799_v44, %v1686_v20 }
0x1c06   :  { %v1689_v21 = vpop.permute.xlu1 %1688 }
0x1c07   :  { %v1691_v23 = vmul.f32 %v1689_v21, %v1678_v13 }
0x1c09   :  { %v1693_v24 = vadd.f32 %v1692_v22, %v1691_v23  ;;  %1694 = vst.msk [vmem:[#allocation2 + $0x2] sm:$0x3] %vm402_vm2, %v1691_v23 }
0x1c0b   :  { %5245 = vmatmul.mubr.msk.f32.vlgmr.msra.gmra.mrb[12].mxu0 %vm156_vm1, %v1693_v24  ;;  %v1812_v50 = vmul.f32 %v1799_v44, %v1693_v24  ;;  %v1935_v24 = vld [vmem:[#allocation3 + $0x8] sm:$0x3] }
0x1c0c   :  { %5590 = vmatpush3.bf16.msra.mxu0 %v6341_v54  ;;  %5266 = vmatprep.mubr.msk.f32.mxu0 %vm6098_vm0, %v6099_v4  ;;  %v1779_v35 = vpop.permute.xlu0 %1778 }
0x1c0d   :  { %5591 = vmatprep.subr.bf16.mxu0 %v6097_v3 }
0x1c10   :  { %5593 = vmatpush3.bf16.msra.mxu0 %v6344_v56 }
0x1c11   :  { %5600 = vmatprep.subr.bf16.mxu0 %v6097_v3 }
0x1cde   :  { %v1765_v26 = vpop.f32.mrb[12].mxu0 }
0x1cdf   :  { %v1769_v31 = vadd.f32 %v1765_v26, %v1695_v25  ;;  %v5246_v27 = vpop.f32.mrb[13].mxu0 }
0x1ce1   :  { %5818 = vtanh.f32 %v1769_v31  ;;  %v4862_v29 = vmul.f32 -1.442695, %v1769_v31 }
0x1ce3   :  { %5820 = vpow2.f32 %v4862_v29 }
0x1ceb   :  { %v5819_v28 = vpop.eup %5818 }
0x1cec   :  { %1783 = vrot.lane.b32.xlu1 %v5819_v28, %s6090_s13 }
0x1ced   :  { %v5821_v30 = vpop.eup %5820 }
0x1cee   :  { %v1773_v36 = vadd.f32 1.0, %v5821_v30 }
0x1cf0   :  { %5822 = vrcp.f32 %v1773_v36 }
0x1cfa   :  { %v5823_v32 = vpop.eup %5822 }
0x1cfb   :  { %v1781_v37 = vmul.f32 %v5823_v32, %v1779_v35 }
0x1d5e   :  { %v1784_v33 = vpop.permute.xlu1 %1783 }
0x1d5f   :  { %v1786_v34 = vmul.f32 %v5823_v32, %v1784_v33 }
0x1d61   :  { %1788 = vrot.lane.b32.xlu1 %v1786_v34, %s6090_s13 }
0x1dd3   :  { %v1789_v38 = vpop.permute.xlu1 %1788 }
0x1dd4   :  { %v1791_v39 = vadd.f32 %v1789_v38, %v1781_v37 }
0x1dd6   :  { %5824 = vtanh.f32 %v1791_v39 }
0x1de0   :  { %v5825_v40 = vpop.eup %5824 }
0x1de1   :  { %1794 = vrot.lane.b32.xlu0 %v5825_v40, %s6090_s13  ;;  %v2038_v40 = vld [vmem:[#allocation7 + $0x8] sm:$0x3] }
0x1de5   :  { %1801 = vrot.lane.b32.xlu0 %v1791_v39, %s6100_s29 }
0x1e53   :  { %v1795_v42 = vpop.permute.xlu0 %1794 }
0x1e54   :  { %v1797_v43 = vmul.f32 %v5823_v32, %v1795_v42 }
0x1e56   :  { %1808 = vrot.lane.b32.xlu1 %v1797_v43, %s6101_s30  ;;  %v2039_v43 = vsub.f32 1.0, %v2038_v40 }
0x1e57   :  { %v1802_v45 = vpop.permute.xlu0 %1801 }
0x1e58   :  { %v1804_v46 = vmul.f32 %v1802_v45, %v1798_v41 }
0x1e5a   :  { %v1806_v48 = vadd.f32 %v1805_v47, %v1804_v46 }
0x1e5c   :  { %1898 = vrot.lane.b32.xlu0 %v1806_v48, %s6090_s13  ;;  %v1925_v18 = vmul.f32 %v1919_v15, %v1806_v48 }
0x1ec8   :  { %v1809_v49 = vpop.permute.xlu1 %1808 }
0x1ec9   :  { %v1811_v51 = vmul.f32 %v1809_v49, %v1798_v41 }
0x1ecb   :  { %v1813_v52 = vadd.f32 %v1812_v50, %v1811_v51  ;;  %1814 = vst.msk [vmem:[#allocation2 + $0x4] sm:$0x3] %vm402_vm2, %v1811_v51 }
0x1ecd   :  { %5256 = vmatmul.mubr.msk.f32.vlgmr.msra.gmra.mrb[12].mxu1 %vm156_vm1, %v1813_v52  ;;  %v1932_v21 = vmul.f32 %v1919_v15, %v1813_v52  ;;  %v2055_v52 = vld [vmem:[#allocation3 + $0xa] sm:$0x3] }
0x1ece   :  { %5596 = vmatpush3.bf16.msra.mxu1 %v6341_v54  ;;  %5277 = vmatprep.mubr.msk.f32.mxu1 %vm6098_vm0, %v6099_v4  ;;  %v1899_v5 = vpop.permute.xlu0 %1898 }
0x1ecf   :  { %5597 = vmatprep.subr.bf16.mxu1 %v6097_v3 }
0x1ed2   :  { %5599 = vmatpush3.bf16.msra.mxu1 %v6344_v56 }
0x1ed3   :  { %5606 = vmatprep.subr.bf16.mxu1 %v6097_v3 }
0x1fa0   :  { %v1885_v55 = vpop.f32.mrb[12].mxu1 }
0x1fa1   :  { %v1889_v57 = vadd.f32 %v1885_v55, %v1815_v53  ;;  %v5257_v58 = vpop.f32.mrb[13].mxu1 }
0x1fa3   :  { %5826 = vtanh.f32 %v1889_v57  ;;  %v4864_v60 = vmul.f32 -1.442695, %v1889_v57 }
0x1fa5   :  { %5828 = vpow2.f32 %v4864_v60 }
0x1fad   :  { %v5827_v59 = vpop.eup %5826 }
0x1fae   :  { %1903 = vrot.lane.b32.xlu1 %v5827_v59, %s6090_s13 }
0x1faf   :  { %v5829_v61 = vpop.eup %5828 }
0x1fb0   :  { %v1893_v62 = vadd.f32 1.0, %v5829_v61 }
0x1fb2   :  { %5830 = vrcp.f32 %v1893_v62 }
0x1fbc   :  { %v5831_v63 = vpop.eup %5830 }
0x1fbd   :  { %v1901_v7 = vmul.f32 %v5831_v63, %v1899_v5 }
0x2020   :  { %v1904_v1 = vpop.permute.xlu1 %1903 }
0x2021   :  { %v1906_v2 = vmul.f32 %v5831_v63, %v1904_v1 }
0x2023   :  { %1908 = vrot.lane.b32.xlu1 %v1906_v2, %s6090_s13 }
0x2095   :  { %v1909_v8 = vpop.permute.xlu1 %1908 }
0x2096   :  { %v1911_v9 = vadd.f32 %v1909_v8, %v1901_v7  ;;  %v2158_v8 = vld [vmem:[#allocation7 + $0xa] sm:$0x3] }
0x2098   :  { %5832 = vtanh.f32 %v1911_v9 }
0x20a2   :  { %v5833_v11 = vpop.eup %5832 }
0x20a3   :  { %1914 = vrot.lane.b32.xlu0 %v5833_v11, %s6090_s13 }
0x20a7   :  { %1921 = vrot.lane.b32.xlu0 %v1911_v9, %s6100_s29 }
0x2115   :  { %v1915_v13 = vpop.permute.xlu0 %1914 }
0x2116   :  { %v1917_v14 = vmul.f32 %v5831_v63, %v1915_v13 }
0x2118   :  { %1928 = vrot.lane.b32.xlu1 %v1917_v14, %s6101_s30 }
0x2119   :  { %v1922_v16 = vpop.permute.xlu0 %1921 }
0x211a   :  { %v1924_v17 = vmul.f32 %v1922_v16, %v1918_v12 }
0x211c   :  { %v1926_v19 = vadd.f32 %v1925_v18, %v1924_v17  ;;  %v2418_v18 = vld [vmem:[#allocation2 + $0x2] sm:$0x3] }
0x211e   :  { %2018 = vrot.lane.b32.xlu0 %v1926_v19, %s6090_s13  ;;  %v2045_v46 = vmul.f32 %v2039_v43, %v1926_v19  ;;  %v2419_v19 = vld [vmem:[#allocation2 + $0x4] sm:$0x3] }
0x218a   :  { %v1929_v20 = vpop.permute.xlu1 %1928 }
0x218b   :  { %v1931_v22 = vmul.f32 %v1929_v20, %v1918_v12  ;;  %v2159_v12 = vsub.f32 1.0, %v2158_v8 }
0x218d   :  { %v1933_v23 = vadd.f32 %v1932_v21, %v1931_v22  ;;  %1934 = vst.msk [vmem:[#allocation2 + $0x6] sm:$0x3] %vm402_vm2, %v1931_v22  ;;  %v2417_v21 = vld [vmem:[#allocation2] sm:$0x3] }
0x218e   :  { %v2438_v22 = vcombine.low %v2417_v21, %v2418_v18 }
0x218f   :  { %5267 = vmatmul.mubr.msk.f32.vlgmr.msra.gmra.mrb[14].mxu0 %vm156_vm1, %v1933_v23  ;;  %v2052_v49 = vmul.f32 %v2039_v43, %v1933_v23 }
0x2190   :  { %5602 = vmatpush3.bf16.msra.mxu0 %v6341_v54  ;;  %5288 = vmatprep.mubr.msk.f32.mxu0 %vm6098_vm0, %v6099_v4  ;;  %v2019_v34 = vpop.permute.xlu0 %2018 }
0x2191   :  { %5603 = vmatprep.subr.bf16.mxu0 %v6097_v3 }
0x2194   :  { %5605 = vmatpush3.bf16.msra.mxu0 %v6344_v56  ;;  %v2420_v17 = vld [vmem:[#allocation2 + $0x6] sm:$0x3] }
0x2195   :  { %v2439_v20 = vcombine.low %v2419_v19, %v2420_v17  ;;  %v2408_v17 = vld [vmem:[#allocation9 + $0x50] sm:$0xff]  ;;  %v2409_v19 = vld [vmem:[#allocation9 + $0x58] sm:$0xff] }
0x2262   :  { %v2005_v25 = vpop.f32.mrb[14].mxu0 }
0x2263   :  { %v2009_v26 = vadd.f32 %v2005_v25, %v1935_v24  ;;  %v5268_v31 = vpop.f32.mrb[15].mxu0  ;;  %v2453_v24 = vrot.slane %v2439_v20, %v6208_v10  ;;  %v5616_v20 = vpack.c.bf16 %v2409_v19, %v2408_v17 }
0x2264   :  { %v2446_v31 = vrot.slane %v2438_v22, %v6208_v10 }
0x2265   :  { %5834 = vtanh.f32 %v2009_v26  ;;  %v4866_v28 = vmul.f32 -1.442695, %v2009_v26 }
0x2267   :  { %5836 = vpow2.f32 %v4866_v28  ;;  %v2454_v28 = vcombine.low %v2446_v31, %v2453_v24  ;;  %v2412_v24 = vld [vmem:[#allocation10 + $0x48] sm:$0xff]  ;;  %v2414_v31 = vld [vmem:[#allocation10 + $0x58] sm:$0xff] }
0x226f   :  { %v5835_v27 = vpop.eup %5834 }
0x2270   :  { %2023 = vrot.lane.b32.xlu1 %v5835_v27, %s6090_s13 }
0x2271   :  { %v5837_v29 = vpop.eup %5836 }
0x2272   :  { %v2013_v30 = vadd.f32 1.0, %v5837_v29  ;;  %v2175_v29 = vld [vmem:[#allocation3 + $0xc] sm:$0x3] }
0x2274   :  { %5838 = vrcp.f32 %v2013_v30 }
0x227e   :  { %v5839_v36 = vpop.eup %5838 }
0x227f   :  { %v2021_v35 = vmul.f32 %v5839_v36, %v2019_v34 }
0x22e2   :  { %v2024_v32 = vpop.permute.xlu1 %2023 }
0x22e3   :  { %v2026_v33 = vmul.f32 %v5839_v36, %v2024_v32 }
0x22e5   :  { %2028 = vrot.lane.b32.xlu1 %v2026_v33, %s6090_s13 }
0x2357   :  { %v2029_v37 = vpop.permute.xlu1 %2028 }
0x2358   :  { %v2031_v38 = vadd.f32 %v2029_v37, %v2021_v35 }
0x235a   :  { %5840 = vtanh.f32 %v2031_v38 }
0x2364   :  { %v5841_v39 = vpop.eup %5840 }
0x2365   :  { %2034 = vrot.lane.b32.xlu0 %v5841_v39, %s6090_s13 }
0x2369   :  { %2041 = vrot.lane.b32.xlu0 %v2031_v38, %s6100_s29 }
0x23d7   :  { %v2035_v41 = vpop.permute.xlu0 %2034 }
0x23d8   :  { %v2037_v42 = vmul.f32 %v5839_v36, %v2035_v41 }
0x23da   :  { %2048 = vrot.lane.b32.xlu1 %v2037_v42, %s6101_s30 }
0x23db   :  { %v2042_v44 = vpop.permute.xlu0 %2041 }
0x23dc   :  { %v2044_v45 = vmul.f32 %v2042_v44, %v2038_v40 }
0x23de   :  { %v2046_v47 = vadd.f32 %v2045_v46, %v2044_v45  ;;  %v2278_v46 = vld [vmem:[#allocation7 + $0xc] sm:$0x3] }
0x23e0   :  { %2138 = vrot.lane.b32.xlu0 %v2046_v47, %s6090_s13  ;;  %v2165_v15 = vmul.f32 %v2159_v12, %v2046_v47 }
0x244c   :  { %v2049_v48 = vpop.permute.xlu1 %2048 }
0x244d   :  { %v2051_v50 = vmul.f32 %v2049_v48, %v2038_v40 }
0x244f   :  { %v2053_v51 = vadd.f32 %v2052_v49, %v2051_v50  ;;  %2054 = vst.msk [vmem:[#allocation2 + $0x8] sm:$0x3] %vm402_vm2, %v2051_v50  ;;  %v2279_v49 = vsub.f32 1.0, %v2278_v46 }
0x2451   :  { %5278 = vmatmul.mubr.msk.f32.vlgmr.msra.gmra.mrb[14].mxu1 %vm156_vm1, %v2053_v51  ;;  %v2172_v25 = vmul.f32 %v2159_v12, %v2053_v51 }
0x2452   :  { %5608 = vmatpush3.bf16.msra.mxu1 %v6341_v54  ;;  %5299 = vmatprep.mubr.msk.f32.mxu1 %vm6098_vm0, %v6099_v4 }
0x2453   :  { %5609 = vmatprep.subr.bf16.mxu1 %v6097_v3 }
0x2456   :  { %5611 = vmatpush3.bf16.msra.mxu1 %v6344_v56  ;;  %v2139_v56 = vpop.permute.xlu0 %2138 }
0x2457   :  { %5620 = vmatprep.subr.bf16.mxu1 %v6097_v3 }
0x2524   :  { %v2125_v53 = vpop.f32.mrb[14].mxu1 }
0x2525   :  { %v2129_v55 = vadd.f32 %v2125_v53, %v2055_v52  ;;  %v5279_v57 = vpop.f32.mrb[15].mxu1 }
0x2527   :  { %5842 = vtanh.f32 %v2129_v55  ;;  %v4868_v59 = vmul.f32 -1.442695, %v2129_v55 }
0x2529   :  { %5844 = vpow2.f32 %v4868_v59 }
0x2531   :  { %v5843_v58 = vpop.eup %5842 }
0x2532   :  { %2143 = vrot.lane.b32.xlu1 %v5843_v58, %s6090_s13 }
0x2533   :  { %v5845_v54 = vpop.eup %5844 }
0x2534   :  { %v2133_v60 = vadd.f32 1.0, %v5845_v54  ;;  %v2295_v54 = vld [vmem:[#allocation3 + $0xe] sm:$0x3] }
0x2536   :  { %5846 = vrcp.f32 %v2133_v60 }
0x2540   :  { %v5847_v61 = vpop.eup %5846 }
0x2541   :  { %v2141_v1 = vmul.f32 %v5847_v61, %v2139_v56 }
0x25a4   :  { %v2144_v62 = vpop.permute.xlu1 %2143 }
0x25a5   :  { %v2146_v63 = vmul.f32 %v5847_v61, %v2144_v62 }
0x25a7   :  { %2148 = vrot.lane.b32.xlu1 %v2146_v63, %s6090_s13 }
0x2619   :  { %v2149_v2 = vpop.permute.xlu1 %2148 }
0x261a   :  { %v2151_v5 = vadd.f32 %v2149_v2, %v2141_v1 }
0x261c   :  { %5848 = vtanh.f32 %v2151_v5 }
0x2626   :  { %v5849_v7 = vpop.eup %5848 }
0x2627   :  { %2154 = vrot.lane.b32.xlu0 %v5849_v7, %s6090_s13 }
0x262b   :  { %2161 = vrot.lane.b32.xlu0 %v2151_v5, %s6100_s29 }
0x2699   :  { %v2155_v9 = vpop.permute.xlu0 %2154 }
0x269a   :  { %v2157_v11 = vmul.f32 %v5847_v61, %v2155_v9 }
0x269c   :  { %2168 = vrot.lane.b32.xlu1 %v2157_v11, %s6101_s30 }
0x269d   :  { %v2162_v13 = vpop.permute.xlu0 %2161 }
0x269e   :  { %v2164_v14 = vmul.f32 %v2162_v13, %v2158_v8 }
0x26a0   :  { %v2166_v16 = vadd.f32 %v2165_v15, %v2164_v14  ;;  %v2406_v15 = vld [vmem:[#allocation9 + $0x40] sm:$0xff] }
0x26a2   :  { %2258 = vrot.lane.b32.xlu0 %v2166_v16, %s6090_s13  ;;  %v2285_v52 = vmul.f32 %v2279_v49, %v2166_v16  ;;  %v2407_v16 = vld [vmem:[#allocation9 + $0x48] sm:$0xff] }
0x26a3   :  { %v5612_v18 = vpack.c.bf16 %v2407_v16, %v2406_v15  ;;  %v2709_v15 = vld [vmem:[#allocation7] sm:$0x3] }
0x26a4   :  { %v2710_v16 = vsub.f32 1.0, %v2709_v15 }
0x26a5   :  { %5613 = vmatprep.subr.bf16.mxu0 %v5612_v18 }
0x26a6   :  { %v2716_v19 = vmul.f32 0.0, %v2710_v16 }
0x270e   :  { %v2169_v23 = vpop.permute.xlu1 %2168 }
0x270f   :  { %v2171_v26 = vmul.f32 %v2169_v23, %v2158_v8  ;;  %v2411_v23 = vld [vmem:[#allocation10 + $0x40] sm:$0xff] }
0x2711   :  { %v2173_v27 = vadd.f32 %v2172_v25, %v2171_v26  ;;  %2174 = vst.msk [vmem:[#allocation2 + $0xa] sm:$0x3] %vm402_vm2, %v2171_v26  ;;  %v2413_v25 = vld [vmem:[#allocation10 + $0x50] sm:$0xff]  ;;  %v6469_v26 = vpack.c.bf16 %v2412_v24, %v2411_v23 }
0x2713   :  { %5289 = vmatmul.mubr.msk.f32.vlgmr.msra.gmra.mrb[16].mxu0 %vm156_vm1, %v2173_v27  ;;  %v2292_v57 = vmul.f32 %v2279_v49, %v2173_v27  ;;  %v6472_v27 = vpack.c.bf16 %v2414_v31, %v2413_v25 }
0x2714   :  { %5310 = vmatprep.mubr.msk.f32.mxu0 %vm156_vm1, %v2454_v28  ;;  %v2259_v41 = vpop.permute.xlu0 %2258  ;;  %5615 = vmatpush3.bf16.msra.mxu0 %v5612_v18  ;;  %v2398_v28 = vld [vmem:[#allocation7 + $0xe] sm:$0x3] }
0x2715   :  { %5617 = vmatprep.subr.bf16.mxu0 %v5616_v20 }
0x2718   :  { %5619 = vmatpush3.bf16.msra.mxu0 %v5616_v20 }
0x2719   :  { %5626 = vmatprep.subr.bf16.mxu0 %v6097_v3 }
0x27e6   :  { %v2245_v30 = vpop.f32.mrb[16].mxu0 }
0x27e7   :  { %v2249_v36 = vadd.f32 %v2245_v30, %v2175_v29  ;;  %v5290_v32 = vpop.f32.mrb[17].mxu0 }
0x27e8   :  { %v2421_v32 = vld [vmem:[#allocation2 + $0x8] sm:$0x3] }
0x27e9   :  { %5850 = vtanh.f32 %v2249_v36  ;;  %v4870_v34 = vmul.f32 -1.442695, %v2249_v36  ;;  %v2422_v36 = vld [vmem:[#allocation2 + $0xa] sm:$0x3] }
0x27eb   :  { %5852 = vpow2.f32 %v4870_v34 }
0x27f3   :  { %v5851_v33 = vpop.eup %5850 }
0x27f4   :  { %2263 = vrot.lane.b32.xlu1 %v5851_v33, %s6090_s13  ;;  %v2455_v33 = vcombine.low %v2421_v32, %v2422_v36 }
0x27f5   :  { %v5853_v35 = vpop.eup %5852 }
0x27f6   :  { %v2253_v37 = vadd.f32 1.0, %v5853_v35 }
0x27f8   :  { %5854 = vrcp.f32 %v2253_v37 }
0x2802   :  { %v5855_v38 = vpop.eup %5854 }
0x2803   :  { %v2261_v42 = vmul.f32 %v5855_v38, %v2259_v41 }
0x2866   :  { %v2264_v39 = vpop.permute.xlu1 %2263 }
0x2867   :  { %v2266_v40 = vmul.f32 %v5855_v38, %v2264_v39 }
0x2869   :  { %2268 = vrot.lane.b32.xlu1 %v2266_v40, %s6090_s13 }
0x28db   :  { %v2269_v43 = vpop.permute.xlu1 %2268 }
0x28dc   :  { %v2271_v44 = vadd.f32 %v2269_v43, %v2261_v42  ;;  %v4874_v43 = vld [vmem:[%s6742_s4 + $0x2] ss:$0 sm:$0xff] }
0x28de   :  { %5856 = vtanh.f32 %v2271_v44 }
0x28e8   :  { %v5857_v45 = vpop.eup %5856 }
0x28e9   :  { %2274 = vrot.lane.b32.xlu0 %v5857_v45, %s6090_s13 }
0x28ed   :  { %2281 = vrot.lane.b32.xlu0 %v2271_v44, %s6100_s29  ;;  %v2472_v44 = vcombine.low %v4874_v43, %v4874_v43 }
0x28ef   :  { %v2479_v45 = vrot.slane %v2472_v44, %v6208_v10  ;;  %v2828_v44 = vld [vmem:[#allocation7 + $0x2] sm:$0x3] }
0x295b   :  { %v2275_v47 = vpop.permute.xlu0 %2274 }
0x295c   :  { %v2277_v48 = vmul.f32 %v5855_v38, %v2275_v47  ;;  %v2463_v38 = vrot.slane %v2455_v33, %v6208_v10 }
0x295e   :  { %2288 = vrot.lane.b32.xlu1 %v2277_v48, %s6101_s30 }
0x295f   :  { %v2282_v50 = vpop.permute.xlu0 %2281 }
0x2960   :  { %v2284_v51 = vmul.f32 %v2282_v50, %v2278_v46 }
0x2962   :  { %v2286_v53 = vadd.f32 %v2285_v52, %v2284_v51 }
0x2964   :  { %2378 = vrot.lane.b32.xlu0 %v2286_v53, %s6090_s13 }
0x29d0   :  { %v2289_v55 = vpop.permute.xlu1 %2288 }
0x29d1   :  { %v2291_v58 = vmul.f32 %v2289_v55, %v2278_v46  ;;  %v2480_v46 = vcombine.low %v2479_v45, %v2479_v45 }
0x29d3   :  { %v2293_v59 = vadd.f32 %v2292_v57, %v2291_v58  ;;  %2294 = vst.msk [vmem:[#allocation2 + $0xc] sm:$0x3] %vm402_vm2, %v2291_v58 }
0x29d5   :  { %5300 = vmatmul.mubr.msk.f32.vlgmr.msra.gmra.mrb[16].mxu1 %vm156_vm1, %v2293_v59 }
0x29d6   :  { %5321 = vmatprep.mubr.msk.f32.mxu1 %vm6098_vm0, %v6099_v4  ;;  %v2379_v9 = vpop.permute.xlu0 %2378  ;;  %5622 = vmatpush3.bf16.msra.mxu1 %v6469_v26 }
0x29d7   :  { %5623 = vmatprep.subr.bf16.mxu1 %v6097_v3 }
0x29da   :  { %5625 = vmatpush3.bf16.msra.mxu1 %v6472_v27  ;;  %v2423_v34 = vld [vmem:[#allocation2 + $0xc] sm:$0x3] }
0x29db   :  { %5632 = vmatprep.subr.bf16.mxu1 %v6097_v3 }
0x29dd   :  { %5322 = vmatmul.mubr.f32.vlgmr.msra.gmra.mrb[18].mxu1 %v6099_v4 }
0x29de   :  { %5634 = vmatpush3.bf16.msra.mxu1 %v6469_v26  ;;  %5343 = vmatprep.mubr.msk.f32.mxu1 %vm6098_vm0, %v6099_v4 }
0x29df   :  { %5635 = vmatprep.subr.bf16.mxu1 %v6097_v3 }
0x29e2   :  { %5637 = vmatpush3.bf16.msra.mxu1 %v6472_v27 }
0x29e3   :  { %5644 = vmatprep.subr.bf16.mxu1 %v6097_v3 }
0x2aa8   :  { %v2365_v60 = vpop.f32.mrb[16].mxu1 }
0x2aa9   :  { %v2369_v61 = vadd.f32 %v2365_v60, %v2295_v54  ;;  %v5301_v62 = vpop.f32.mrb[17].mxu1 }
0x2aab   :  { %5858 = vtanh.f32 %v2369_v61  ;;  %v4872_v56 = vmul.f32 -1.442695, %v2369_v61 }
0x2aad   :  { %5860 = vpow2.f32 %v4872_v56 }
0x2ab0   :  { %v2680_v41 = vpop.f32.mrb[18].mxu1 }
0x2ab1   :  { %v5323_v42 = vpop.f32.mrb[19].mxu1 }
0x2ab5   :  { %v5859_v63 = vpop.eup %5858 }
0x2ab6   :  { %2383 = vrot.lane.b32.xlu1 %v5859_v63, %s6090_s13 }
0x2ab7   :  { %v5861_v1 = vpop.eup %5860 }
0x2ab8   :  { %v2373_v2 = vadd.f32 1.0, %v5861_v1 }
0x2aba   :  { %5862 = vrcp.f32 %v2373_v2 }
0x2ac4   :  { %v5863_v5 = vpop.eup %5862 }
0x2ac5   :  { %v2381_v11 = vmul.f32 %v5863_v5, %v2379_v9 }
0x2b28   :  { %v2384_v7 = vpop.permute.xlu1 %2383 }
0x2b29   :  { %v2386_v8 = vmul.f32 %v5863_v5, %v2384_v7 }
0x2b2b   :  { %2388 = vrot.lane.b32.xlu1 %v2386_v8, %s6090_s13 }
0x2b9d   :  { %v2389_v12 = vpop.permute.xlu1 %2388 }
0x2b9e   :  { %v2391_v13 = vadd.f32 %v2389_v12, %v2381_v11 }
0x2ba0   :  { %5864 = vtanh.f32 %v2391_v13 }
0x2baa   :  { %v5865_v14 = vpop.eup %5864 }
0x2bab   :  { %2394 = vrot.lane.b32.xlu0 %v5865_v14, %s6090_s13 }
0x2c1d   :  { %v2395_v21 = vpop.permute.xlu0 %2394 }
0x2c1e   :  { %v2397_v22 = vmul.f32 %v5863_v5, %v2395_v21 }
0x2c20   :  { %2400 = vrot.lane.b32.xlu1 %v2397_v22, %s6101_s30 }
0x2c92   :  { %v2401_v29 = vpop.permute.xlu1 %2400 }
0x2c93   :  { %v2403_v30 = vmul.f32 %v2401_v29, %v2398_v28 }
0x2c95   :  { %2404 = vst.msk [vmem:[#allocation2 + $0xe] sm:$0x3] %vm402_vm2, %v2403_v30 }
0x2c9c   :  { %v2424_v35 = vld [vmem:[#allocation2 + $0xe] sm:$0x3] }
0x2c9d   :  { %v2456_v37 = vcombine.low %v2423_v34, %v2424_v35 }
0x2c9f   :  { %v2470_v39 = vrot.slane %v2456_v37, %v6208_v10 }
0x2ca1   :  { %v2471_v40 = vcombine.low %v2463_v38, %v2470_v39 }
0x2ca3   :  { %5311 = vmatmul.mubr.msk.f32.vlgmr.msra.gmra.mrb[18].mxu0 %vm156_vm1, %v2471_v40 }
0x2ca4   :  { %5628 = vmatpush3.bf16.msra.mxu0 %v6469_v26  ;;  %5332 = vmatprep.mubr.msk.f32.mxu0 %vm6098_vm0, %v6099_v4 }
0x2ca5   :  { %5629 = vmatprep.subr.bf16.mxu0 %v6097_v3 }
0x2ca8   :  { %5631 = vmatpush3.bf16.msra.mxu0 %v6472_v27 }
0x2ca9   :  { %5638 = vmatprep.subr.bf16.mxu0 %v6097_v3 }
0x2d76   :  { %v5312_v47 = vpop.f32.mrb[18].mxu0 }
0x2d77   :  { %v2558_v48 = vadd.f32 %v5312_v47, %v2480_v46  ;;  %v2552_v49 = vpop.f32.mrb[19].mxu0  ;;  %v2829_v47 = vsub.f32 1.0, %v2828_v44 }
0x2d78   :  { %v2553_v50 = vadd.f32 %v2552_v49, %v2480_v46 }
0x2d79   :  { %v2580_v51 = vcombine.high %v2558_v48, %v2558_v48  ;;  %v2587_v52 = vrot.slane %v2558_v48, %v6208_v10  ;;  %4879 = vst.sshfl [vmem:[#allocation3 + $0x8] sm:$0x3 pattern:$0x76325410] %v2558_v48 }
0x2d7a   :  { %v2563_v53 = vcombine.high %v2553_v50, %v2553_v50  ;;  %v2570_v55 = vrot.slane %v2553_v50, %v6208_v10  ;;  %4877 = vst.sshfl [vmem:[#allocation3] sm:$0x3 pattern:$0x76325410] %v2553_v50 }
0x2d7b   :  { %v2594_v57 = vrot.slane %v2580_v51, %v6208_v10  ;;  %v2595_v58 = vcombine.high %v2587_v52, %v2587_v52  ;;  %4880 = vst.sshfl [vmem:[#allocation3 + $0xc] sm:$0x3 pattern:$0x76325410] %v2580_v51 }
0x2d7c   :  { %v2577_v59 = vrot.slane %v2563_v53, %v6208_v10  ;;  %v2578_v54 = vcombine.high %v2570_v55, %v2570_v55  ;;  %4878 = vst.sshfl [vmem:[#allocation3 + $0x4] sm:$0x3 pattern:$0x76325410] %v2563_v53 }
0x2d7d   :  { %v2596_v60 = vcombine.high %v2594_v57, %v2594_v57  ;;  %2610 = vst [vmem:[#allocation3 + $0xa] sm:$0x3] %v2595_v58 }
0x2d7e   :  { %v2579_v61 = vcombine.high %v2577_v59, %v2577_v59  ;;  %2606 = vst [vmem:[#allocation3 + $0x2] sm:$0x3] %v2578_v54 }
0x2d7f   :  { %2612 = vst [vmem:[#allocation3 + $0xe] sm:$0x3] %v2596_v60 }
0x2d80   :  { %2608 = vst [vmem:[#allocation3 + $0x6] sm:$0x3] %v2579_v61 }
0x2d81   :  { %v2613_v62 = vld [vmem:[#allocation3] sm:$0x3] }
0x2d82   :  { %v2684_v63 = vadd.f32 %v2680_v41, %v2613_v62 }
0x2d83   :  { %v2845_v58 = vld [vmem:[#allocation3 + $0x4] sm:$0x3] }
0x2d84   :  { %5866 = vtanh.f32 %v2684_v63  ;;  %v4881_v1 = vmul.f32 -1.442695, %v2684_v63 }
0x2d85   :  { %v2725_v31 = vld [vmem:[#allocation3 + $0x2] sm:$0x3] }
0x2d86   :  { %5868 = vpow2.f32 %v4881_v1 }
0x2d8e   :  { %v5867_v56 = vpop.eup %5866 }
0x2d8f   :  { %2694 = vrot.lane.b32.xlu0 %v5867_v56, %s6090_s13 }
0x2d90   :  { %v5869_v2 = vpop.eup %5868 }
0x2d91   :  { %v2688_v5 = vadd.f32 1.0, %v5869_v2 }
0x2d93   :  { %5870 = vrcp.f32 %v2688_v5 }
0x2d9d   :  { %v5871_v7 = vpop.eup %5870 }
0x2d9e   :  { %v2692_v11 = vmul.f32 0.0, %v5871_v7 }
0x2e01   :  { %v2695_v8 = vpop.permute.xlu0 %2694 }
0x2e02   :  { %v2697_v9 = vmul.f32 %v5871_v7, %v2695_v8 }
0x2e04   :  { %2699 = vrot.lane.b32.xlu1 %v2697_v9, %s6090_s13 }
0x2e76   :  { %v2700_v12 = vpop.permute.xlu1 %2699 }
0x2e77   :  { %v2702_v13 = vadd.f32 %v2700_v12, %v2692_v11 }
0x2e79   :  { %5872 = vtanh.f32 %v2702_v13 }
0x2e83   :  { %v5873_v14 = vpop.eup %5872 }
0x2e84   :  { %2705 = vrot.lane.b32.xlu0 %v5873_v14, %s6090_s13 }
0x2e88   :  { %2712 = vrot.lane.b32.xlu0 %v2702_v13, %s6100_s29  ;;  %v2948_v13 = vld [vmem:[#allocation7 + $0x4] sm:$0x3] }
0x2e89   :  { %v2949_v16 = vsub.f32 1.0, %v2948_v13 }
0x2ef6   :  { %v2706_v17 = vpop.permute.xlu0 %2705 }
0x2ef7   :  { %v2708_v18 = vmul.f32 %v5871_v7, %v2706_v17 }
0x2ef9   :  { %2719 = vrot.lane.b32.xlu1 %v2708_v18, %s6101_s30 }
0x2efa   :  { %v2713_v20 = vpop.permute.xlu0 %2712 }
0x2efb   :  { %v2715_v21 = vmul.f32 %v2713_v20, %v2709_v15 }
0x2efd   :  { %v2717_v22 = vadd.f32 %v2716_v19, %v2715_v21 }
0x2eff   :  { %2808 = vrot.lane.b32.xlu0 %v2717_v22, %s6090_s13  ;;  %v2835_v49 = vmul.f32 %v2829_v47, %v2717_v22 }
0x2f6b   :  { %v2720_v23 = vpop.permute.xlu1 %2719 }
0x2f6c   :  { %v2722_v24 = vmul.f32 %v2720_v23, %v2709_v15 }
0x2f6e   :  { %v2723_v25 = vadd.f32 %v2722_v24, %v2716_v19  ;;  %2724 = vst.msk [vmem:[#allocation2] sm:$0x3] %vm402_vm2, %v2722_v24 }
0x2f70   :  { %5333 = vmatmul.mubr.msk.f32.vlgmr.msra.gmra.mrb[20].mxu0 %vm156_vm1, %v2723_v25  ;;  %v2842_v53 = vmul.f32 %v2829_v47, %v2723_v25  ;;  %v2965_v25 = vld [vmem:[#allocation3 + $0x6] sm:$0x3] }
0x2f71   :  { %5640 = vmatpush3.bf16.msra.mxu0 %v6469_v26  ;;  %5354 = vmatprep.mubr.msk.f32.mxu0 %vm6098_vm0, %v6099_v4  ;;  %v2809_v39 = vpop.permute.xlu0 %2808 }
0x2f72   :  { %5641 = vmatprep.subr.bf16.mxu0 %v6097_v3 }
0x2f75   :  { %5643 = vmatpush3.bf16.msra.mxu0 %v6472_v27 }
0x2f76   :  { %5650 = vmatprep.subr.bf16.mxu0 %v6097_v3 }
0x3043   :  { %v2795_v28 = vpop.f32.mrb[20].mxu0 }
0x3044   :  { %v2799_v29 = vadd.f32 %v2795_v28, %v2725_v31  ;;  %v5334_v30 = vpop.f32.mrb[21].mxu0 }
0x3046   :  { %5874 = vtanh.f32 %v2799_v29  ;;  %v4883_v32 = vmul.f32 -1.442695, %v2799_v29 }
0x3048   :  { %5876 = vpow2.f32 %v4883_v32 }
0x3050   :  { %v5875_v36 = vpop.eup %5874 }
0x3051   :  { %2813 = vrot.lane.b32.xlu1 %v5875_v36, %s6090_s13 }
0x3052   :  { %v5877_v33 = vpop.eup %5876 }
0x3053   :  { %v2803_v34 = vadd.f32 1.0, %v5877_v33 }
0x3055   :  { %5878 = vrcp.f32 %v2803_v34 }
0x305f   :  { %v5879_v35 = vpop.eup %5878 }
0x3060   :  { %v2811_v40 = vmul.f32 %v5879_v35, %v2809_v39 }
0x30c3   :  { %v2814_v37 = vpop.permute.xlu1 %2813 }
0x30c4   :  { %v2816_v38 = vmul.f32 %v5879_v35, %v2814_v37 }
0x30c6   :  { %2818 = vrot.lane.b32.xlu1 %v2816_v38, %s6090_s13 }
0x3138   :  { %v2819_v41 = vpop.permute.xlu1 %2818 }
0x3139   :  { %v2821_v42 = vadd.f32 %v2819_v41, %v2811_v40 }
0x313b   :  { %5880 = vtanh.f32 %v2821_v42 }
0x3145   :  { %v5881_v43 = vpop.eup %5880 }
0x3146   :  { %2824 = vrot.lane.b32.xlu0 %v5881_v43, %s6090_s13  ;;  %v3068_v43 = vld [vmem:[#allocation7 + $0x6] sm:$0x3] }
0x314a   :  { %2831 = vrot.lane.b32.xlu0 %v2821_v42, %s6100_s29 }
0x31b8   :  { %v2825_v45 = vpop.permute.xlu0 %2824 }
0x31b9   :  { %v2827_v46 = vmul.f32 %v5879_v35, %v2825_v45 }
0x31bb   :  { %2838 = vrot.lane.b32.xlu1 %v2827_v46, %s6101_s30  ;;  %v3069_v46 = vsub.f32 1.0, %v3068_v43 }
0x31bc   :  { %v2832_v48 = vpop.permute.xlu0 %2831 }
0x31bd   :  { %v2834_v50 = vmul.f32 %v2832_v48, %v2828_v44 }
0x31bf   :  { %v2836_v51 = vadd.f32 %v2835_v49, %v2834_v50 }
0x31c1   :  { %2928 = vrot.lane.b32.xlu0 %v2836_v51, %s6090_s13  ;;  %v2955_v18 = vmul.f32 %v2949_v16, %v2836_v51 }
0x322d   :  { %v2839_v52 = vpop.permute.xlu1 %2838 }
0x322e   :  { %v2841_v55 = vmul.f32 %v2839_v52, %v2828_v44 }
0x3230   :  { %v2843_v57 = vadd.f32 %v2842_v53, %v2841_v55  ;;  %2844 = vst.msk [vmem:[#allocation2 + $0x2] sm:$0x3] %vm402_vm2, %v2841_v55 }
0x3232   :  { %5344 = vmatmul.mubr.msk.f32.vlgmr.msra.gmra.mrb[20].mxu1 %vm156_vm1, %v2843_v57  ;;  %v2962_v22 = vmul.f32 %v2949_v16, %v2843_v57  ;;  %v3085_v57 = vld [vmem:[#allocation3 + $0x8] sm:$0x3] }
0x3233   :  { %5646 = vmatpush3.bf16.msra.mxu1 %v6469_v26  ;;  %5365 = vmatprep.mubr.msk.f32.mxu1 %vm6098_vm0, %v6099_v4  ;;  %v2929_v7 = vpop.permute.xlu0 %2928 }
0x3234   :  { %5647 = vmatprep.subr.bf16.mxu1 %v6097_v3 }
0x3237   :  { %5649 = vmatpush3.bf16.msra.mxu1 %v6472_v27 }
0x3238   :  { %5656 = vmatprep.subr.bf16.mxu1 %v6097_v3 }
0x3305   :  { %v2915_v59 = vpop.f32.mrb[20].mxu1 }
0x3306   :  { %v2919_v54 = vadd.f32 %v2915_v59, %v2845_v58  ;;  %v5345_v60 = vpop.f32.mrb[21].mxu1 }
0x3308   :  { %5882 = vtanh.f32 %v2919_v54  ;;  %v4885_v62 = vmul.f32 -1.442695, %v2919_v54 }
0x330a   :  { %5884 = vpow2.f32 %v4885_v62 }
0x3312   :  { %v5883_v61 = vpop.eup %5882 }
0x3313   :  { %2933 = vrot.lane.b32.xlu1 %v5883_v61, %s6090_s13 }
0x3314   :  { %v5885_v63 = vpop.eup %5884 }
0x3315   :  { %v2923_v56 = vadd.f32 1.0, %v5885_v63 }
0x3317   :  { %5886 = vrcp.f32 %v2923_v56 }
0x3321   :  { %v5887_v1 = vpop.eup %5886 }
0x3322   :  { %v2931_v8 = vmul.f32 %v5887_v1, %v2929_v7 }
0x3385   :  { %v2934_v2 = vpop.permute.xlu1 %2933 }
0x3386   :  { %v2936_v5 = vmul.f32 %v5887_v1, %v2934_v2 }
0x3388   :  { %2938 = vrot.lane.b32.xlu1 %v2936_v5, %s6090_s13 }
0x33fa   :  { %v2939_v9 = vpop.permute.xlu1 %2938 }
0x33fb   :  { %v2941_v11 = vadd.f32 %v2939_v9, %v2931_v8 }
0x33fd   :  { %5888 = vtanh.f32 %v2941_v11 }
0x3407   :  { %v5889_v12 = vpop.eup %5888 }
0x3408   :  { %2944 = vrot.lane.b32.xlu0 %v5889_v12, %s6090_s13  ;;  %v3188_v12 = vld [vmem:[#allocation7 + $0x8] sm:$0x3] }
0x340c   :  { %2951 = vrot.lane.b32.xlu0 %v2941_v11, %s6100_s29 }
0x347a   :  { %v2945_v14 = vpop.permute.xlu0 %2944 }
0x347b   :  { %v2947_v15 = vmul.f32 %v5887_v1, %v2945_v14 }
0x347d   :  { %2958 = vrot.lane.b32.xlu1 %v2947_v15, %s6101_s30  ;;  %v3189_v15 = vsub.f32 1.0, %v3188_v12 }
0x347e   :  { %v2952_v17 = vpop.permute.xlu0 %2951 }
0x347f   :  { %v2954_v19 = vmul.f32 %v2952_v17, %v2948_v13 }
0x3481   :  { %v2956_v20 = vadd.f32 %v2955_v18, %v2954_v19 }
0x3483   :  { %3048 = vrot.lane.b32.xlu0 %v2956_v20, %s6090_s13  ;;  %v3075_v48 = vmul.f32 %v3069_v46, %v2956_v20 }
0x34ef   :  { %v2959_v21 = vpop.permute.xlu1 %2958 }
0x34f0   :  { %v2961_v23 = vmul.f32 %v2959_v21, %v2948_v13 }
0x34f2   :  { %v2963_v24 = vadd.f32 %v2962_v22, %v2961_v23  ;;  %2964 = vst.msk [vmem:[#allocation2 + $0x4] sm:$0x3] %vm402_vm2, %v2961_v23 }
0x34f4   :  { %5355 = vmatmul.mubr.msk.f32.vlgmr.msra.gmra.mrb[22].mxu0 %vm156_vm1, %v2963_v24  ;;  %v3082_v52 = vmul.f32 %v3069_v46, %v2963_v24  ;;  %v3205_v24 = vld [vmem:[#allocation3 + $0xa] sm:$0x3] }
0x34f5   :  { %5652 = vmatpush3.bf16.msra.mxu0 %v6469_v26  ;;  %5376 = vmatprep.mubr.msk.f32.mxu0 %vm6098_vm0, %v6099_v4  ;;  %v3049_v38 = vpop.permute.xlu0 %3048 }
0x34f6   :  { %5653 = vmatprep.subr.bf16.mxu0 %v6097_v3 }
0x34f9   :  { %5655 = vmatpush3.bf16.msra.mxu0 %v6472_v27 }
0x34fa   :  { %5662 = vmatprep.subr.bf16.mxu0 %v6097_v3 }
0x35c7   :  { %v3035_v31 = vpop.f32.mrb[22].mxu0 }
0x35c8   :  { %v3039_v28 = vadd.f32 %v3035_v31, %v2965_v25  ;;  %v5356_v29 = vpop.f32.mrb[23].mxu0 }
0x35ca   :  { %5890 = vtanh.f32 %v3039_v28  ;;  %v4887_v36 = vmul.f32 -1.442695, %v3039_v28 }
0x35cc   :  { %5892 = vpow2.f32 %v4887_v36 }
0x35d4   :  { %v5891_v30 = vpop.eup %5890 }
0x35d5   :  { %3053 = vrot.lane.b32.xlu1 %v5891_v30, %s6090_s13 }
0x35d6   :  { %v5893_v32 = vpop.eup %5892 }
0x35d7   :  { %v3043_v33 = vadd.f32 1.0, %v5893_v32 }
0x35d9   :  { %5894 = vrcp.f32 %v3043_v33 }
0x35e3   :  { %v5895_v34 = vpop.eup %5894 }
0x35e4   :  { %v3051_v39 = vmul.f32 %v5895_v34, %v3049_v38 }
0x3647   :  { %v3054_v35 = vpop.permute.xlu1 %3053 }
0x3648   :  { %v3056_v37 = vmul.f32 %v5895_v34, %v3054_v35 }
0x364a   :  { %3058 = vrot.lane.b32.xlu1 %v3056_v37, %s6090_s13 }
0x36bc   :  { %v3059_v40 = vpop.permute.xlu1 %3058 }
0x36bd   :  { %v3061_v41 = vadd.f32 %v3059_v40, %v3051_v39  ;;  %v3308_v40 = vld [vmem:[#allocation7 + $0xa] sm:$0x3] }
0x36bf   :  { %5896 = vtanh.f32 %v3061_v41 }
0x36c9   :  { %v5897_v42 = vpop.eup %5896 }
0x36ca   :  { %3064 = vrot.lane.b32.xlu0 %v5897_v42, %s6090_s13 }
0x36ce   :  { %3071 = vrot.lane.b32.xlu0 %v3061_v41, %s6100_s29 }
0x373c   :  { %v3065_v44 = vpop.permute.xlu0 %3064 }
0x373d   :  { %v3067_v45 = vmul.f32 %v5895_v34, %v3065_v44 }
0x373f   :  { %3078 = vrot.lane.b32.xlu1 %v3067_v45, %s6101_s30 }
0x3740   :  { %v3072_v47 = vpop.permute.xlu0 %3071 }
0x3741   :  { %v3074_v49 = vmul.f32 %v3072_v47, %v3068_v43 }
0x3743   :  { %v3076_v50 = vadd.f32 %v3075_v48, %v3074_v49  ;;  %v3568_v49 = vld [vmem:[#allocation2 + $0x2] sm:$0x3] }
0x3745   :  { %3168 = vrot.lane.b32.xlu0 %v3076_v50, %s6090_s13  ;;  %v3195_v18 = vmul.f32 %v3189_v15, %v3076_v50  ;;  %v3569_v50 = vld [vmem:[#allocation2 + $0x4] sm:$0x3] }
0x37b1   :  { %v3079_v51 = vpop.permute.xlu1 %3078 }
0x37b2   :  { %v3081_v53 = vmul.f32 %v3079_v51, %v3068_v43  ;;  %v3309_v43 = vsub.f32 1.0, %v3308_v40 }
0x37b4   :  { %v3083_v55 = vadd.f32 %v3082_v52, %v3081_v53  ;;  %3084 = vst.msk [vmem:[#allocation2 + $0x6] sm:$0x3] %vm402_vm2, %v3081_v53  ;;  %v3567_v52 = vld [vmem:[#allocation2] sm:$0x3] }
0x37b5   :  { %v3588_v53 = vcombine.low %v3567_v52, %v3568_v49 }
0x37b6   :  { %5366 = vmatmul.mubr.msk.f32.vlgmr.msra.gmra.mrb[22].mxu1 %vm156_vm1, %v3083_v55  ;;  %v3202_v21 = vmul.f32 %v3189_v15, %v3083_v55 }
0x37b7   :  { %5658 = vmatpush3.bf16.msra.mxu1 %v6469_v26  ;;  %5387 = vmatprep.mubr.msk.f32.mxu1 %vm6098_vm0, %v6099_v4  ;;  %v3169_v5 = vpop.permute.xlu0 %3168 }
0x37b8   :  { %5659 = vmatprep.subr.bf16.mxu1 %v6097_v3 }
0x37bb   :  { %5661 = vmatpush3.bf16.msra.mxu1 %v6472_v27  ;;  %v3570_v48 = vld [vmem:[#allocation2 + $0x6] sm:$0x3] }
0x37bc   :  { %v3589_v51 = vcombine.low %v3569_v50, %v3570_v48  ;;  %v3558_v48 = vld [vmem:[#allocation9 + $0x70] sm:$0xff]  ;;  %v3559_v50 = vld [vmem:[#allocation9 + $0x78] sm:$0xff] }
0x3889   :  { %v3155_v58 = vpop.f32.mrb[22].mxu1 }
0x388a   :  { %v3159_v59 = vadd.f32 %v3155_v58, %v3085_v57  ;;  %v5367_v54 = vpop.f32.mrb[23].mxu1  ;;  %v3603_v57 = vrot.slane %v3589_v51, %v6208_v10  ;;  %v5672_v51 = vpack.c.bf16 %v3559_v50, %v3558_v48 }
0x388b   :  { %v3596_v54 = vrot.slane %v3588_v53, %v6208_v10 }
0x388c   :  { %5898 = vtanh.f32 %v3159_v59  ;;  %v4889_v61 = vmul.f32 -1.442695, %v3159_v59 }
0x388e   :  { %5900 = vpow2.f32 %v4889_v61  ;;  %v3604_v61 = vcombine.low %v3596_v54, %v3603_v57  ;;  %v3562_v57 = vld [vmem:[#allocation10 + $0x68] sm:$0xff]  ;;  %v3564_v54 = vld [vmem:[#allocation10 + $0x78] sm:$0xff] }
0x3896   :  { %v5899_v60 = vpop.eup %5898 }
0x3897   :  { %3173 = vrot.lane.b32.xlu1 %v5899_v60, %s6090_s13 }
0x3898   :  { %v5901_v62 = vpop.eup %5900 }
0x3899   :  { %v3163_v63 = vadd.f32 1.0, %v5901_v62  ;;  %v3325_v62 = vld [vmem:[#allocation3 + $0xc] sm:$0x3] }
0x389b   :  { %5902 = vrcp.f32 %v3163_v63 }
0x38a5   :  { %v5903_v56 = vpop.eup %5902 }
0x38a6   :  { %v3171_v7 = vmul.f32 %v5903_v56, %v3169_v5 }
0x3909   :  { %v3174_v1 = vpop.permute.xlu1 %3173 }
0x390a   :  { %v3176_v2 = vmul.f32 %v5903_v56, %v3174_v1 }
0x390c   :  { %3178 = vrot.lane.b32.xlu1 %v3176_v2, %s6090_s13 }
0x397e   :  { %v3179_v8 = vpop.permute.xlu1 %3178 }
0x397f   :  { %v3181_v9 = vadd.f32 %v3179_v8, %v3171_v7 }
0x3981   :  { %5904 = vtanh.f32 %v3181_v9 }
0x398b   :  { %v5905_v11 = vpop.eup %5904 }
0x398c   :  { %3184 = vrot.lane.b32.xlu0 %v5905_v11, %s6090_s13 }
0x3990   :  { %3191 = vrot.lane.b32.xlu0 %v3181_v9, %s6100_s29 }
0x39fe   :  { %v3185_v13 = vpop.permute.xlu0 %3184 }
0x39ff   :  { %v3187_v14 = vmul.f32 %v5903_v56, %v3185_v13 }
0x3a01   :  { %3198 = vrot.lane.b32.xlu1 %v3187_v14, %s6101_s30 }
0x3a02   :  { %v3192_v16 = vpop.permute.xlu0 %3191 }
0x3a03   :  { %v3194_v17 = vmul.f32 %v3192_v16, %v3188_v12 }
0x3a05   :  { %v3196_v19 = vadd.f32 %v3195_v18, %v3194_v17  ;;  %v3428_v18 = vld [vmem:[#allocation7 + $0xc] sm:$0x3] }
0x3a07   :  { %3288 = vrot.lane.b32.xlu0 %v3196_v19, %s6090_s13  ;;  %v3315_v46 = vmul.f32 %v3309_v43, %v3196_v19 }
0x3a73   :  { %v3199_v20 = vpop.permute.xlu1 %3198 }
0x3a74   :  { %v3201_v22 = vmul.f32 %v3199_v20, %v3188_v12 }
0x3a76   :  { %v3203_v23 = vadd.f32 %v3202_v21, %v3201_v22  ;;  %3204 = vst.msk [vmem:[#allocation2 + $0x8] sm:$0x3] %vm402_vm2, %v3201_v22  ;;  %v3429_v21 = vsub.f32 1.0, %v3428_v18 }
0x3a78   :  { %5377 = vmatmul.mubr.msk.f32.vlgmr.msra.gmra.mrb[24].mxu0 %vm156_vm1, %v3203_v23  ;;  %v3322_v58 = vmul.f32 %v3309_v43, %v3203_v23 }
0x3a79   :  { %5664 = vmatpush3.bf16.msra.mxu0 %v6469_v26  ;;  %5398 = vmatprep.mubr.msk.f32.mxu0 %vm6098_vm0, %v6099_v4 }
0x3a7a   :  { %5665 = vmatprep.subr.bf16.mxu0 %v6097_v3 }
0x3a7d   :  { %5667 = vmatpush3.bf16.msra.mxu0 %v6472_v27  ;;  %v3289_v27 = vpop.permute.xlu0 %3288 }
0x3a7e   :  { %5676 = vmatprep.subr.bf16.mxu0 %v6097_v3 }
0x3b4b   :  { %v3275_v25 = vpop.f32.mrb[24].mxu0 }
0x3b4c   :  { %v3279_v31 = vadd.f32 %v3275_v25, %v3205_v24  ;;  %v5378_v28 = vpop.f32.mrb[25].mxu0 }
0x3b4e   :  { %5906 = vtanh.f32 %v3279_v31  ;;  %v4891_v30 = vmul.f32 -1.442695, %v3279_v31 }
0x3b50   :  { %5908 = vpow2.f32 %v4891_v30 }
0x3b58   :  { %v5907_v29 = vpop.eup %5906 }
0x3b59   :  { %3293 = vrot.lane.b32.xlu1 %v5907_v29, %s6090_s13 }
0x3b5a   :  { %v5909_v26 = vpop.eup %5908 }
0x3b5b   :  { %v3283_v36 = vadd.f32 1.0, %v5909_v26  ;;  %v3445_v26 = vld [vmem:[#allocation3 + $0xe] sm:$0x3] }
0x3b5d   :  { %5910 = vrcp.f32 %v3283_v36 }
0x3b67   :  { %v5911_v32 = vpop.eup %5910 }
0x3b68   :  { %v3291_v35 = vmul.f32 %v5911_v32, %v3289_v27 }
0x3bcb   :  { %v3294_v33 = vpop.permute.xlu1 %3293 }
0x3bcc   :  { %v3296_v34 = vmul.f32 %v5911_v32, %v3294_v33 }
0x3bce   :  { %3298 = vrot.lane.b32.xlu1 %v3296_v34, %s6090_s13 }
0x3c40   :  { %v3299_v37 = vpop.permute.xlu1 %3298 }
0x3c41   :  { %v3301_v38 = vadd.f32 %v3299_v37, %v3291_v35 }
0x3c43   :  { %5912 = vtanh.f32 %v3301_v38 }
0x3c4d   :  { %v5913_v39 = vpop.eup %5912 }
0x3c4e   :  { %3304 = vrot.lane.b32.xlu0 %v5913_v39, %s6090_s13 }
0x3c52   :  { %3311 = vrot.lane.b32.xlu0 %v3301_v38, %s6100_s29 }
0x3cc0   :  { %v3305_v41 = vpop.permute.xlu0 %3304 }
0x3cc1   :  { %v3307_v42 = vmul.f32 %v5911_v32, %v3305_v41 }
0x3cc3   :  { %3318 = vrot.lane.b32.xlu1 %v3307_v42, %s6101_s30 }
0x3cc4   :  { %v3312_v44 = vpop.permute.xlu0 %3311 }
0x3cc5   :  { %v3314_v45 = vmul.f32 %v3312_v44, %v3308_v40 }
0x3cc7   :  { %v3316_v47 = vadd.f32 %v3315_v46, %v3314_v45  ;;  %v3556_v46 = vld [vmem:[#allocation9 + $0x60] sm:$0xff] }
0x3cc9   :  { %3408 = vrot.lane.b32.xlu0 %v3316_v47, %s6090_s13  ;;  %v3435_v24 = vmul.f32 %v3429_v21, %v3316_v47  ;;  %v3557_v47 = vld [vmem:[#allocation9 + $0x68] sm:$0xff] }
0x3cca   :  { %v5668_v49 = vpack.c.bf16 %v3557_v47, %v3556_v46 }
0x3ccc   :  { %5669 = vmatprep.subr.bf16.mxu1 %v5668_v49 }
0x3d35   :  { %v3319_v55 = vpop.permute.xlu1 %3318 }
0x3d36   :  { %v3321_v59 = vmul.f32 %v3319_v55, %v3308_v40  ;;  %v3561_v55 = vld [vmem:[#allocation10 + $0x60] sm:$0xff] }
0x3d38   :  { %v3323_v60 = vadd.f32 %v3322_v58, %v3321_v59  ;;  %3324 = vst.msk [vmem:[#allocation2 + $0xa] sm:$0x3] %vm402_vm2, %v3321_v59  ;;  %v3563_v58 = vld [vmem:[#allocation10 + $0x70] sm:$0xff]  ;;  %v6597_v59 = vpack.c.bf16 %v3562_v57, %v3561_v55 }
0x3d3a   :  { %5388 = vmatmul.mubr.msk.f32.vlgmr.msra.gmra.mrb[24].mxu1 %vm156_vm1, %v3323_v60  ;;  %v3442_v28 = vmul.f32 %v3429_v21, %v3323_v60  ;;  %v6600_v60 = vpack.c.bf16 %v3564_v54, %v3563_v58 }
0x3d3b   :  { %5409 = vmatprep.mubr.msk.f32.mxu1 %vm156_vm1, %v3604_v61  ;;  %v3409_v13 = vpop.permute.xlu0 %3408  ;;  %5671 = vmatpush3.bf16.msra.mxu1 %v5668_v49  ;;  %v3548_v61 = vld [vmem:[#allocation7 + $0xe] sm:$0x3] }
0x3d3c   :  { %5673 = vmatprep.subr.bf16.mxu1 %v5672_v51 }
0x3d3f   :  { %5675 = vmatpush3.bf16.msra.mxu1 %v5672_v51 }
0x3d40   :  { %5682 = vmatprep.subr.bf16.mxu1 %v6097_v3 }
0x3e0d   :  { %v3395_v63 = vpop.f32.mrb[24].mxu1 }
0x3e0e   :  { %v3399_v56 = vadd.f32 %v3395_v63, %v3325_v62  ;;  %v5389_v1 = vpop.f32.mrb[25].mxu1 }
0x3e0f   :  { %v3571_v1 = vld [vmem:[#allocation2 + $0x8] sm:$0x3] }
0x3e10   :  { %5914 = vtanh.f32 %v3399_v56  ;;  %v4893_v5 = vmul.f32 -1.442695, %v3399_v56  ;;  %v3572_v56 = vld [vmem:[#allocation2 + $0xa] sm:$0x3] }
0x3e12   :  { %5916 = vpow2.f32 %v4893_v5 }
0x3e1a   :  { %v5915_v2 = vpop.eup %5914 }
0x3e1b   :  { %3413 = vrot.lane.b32.xlu1 %v5915_v2, %s6090_s13  ;;  %v3605_v2 = vcombine.low %v3571_v1, %v3572_v56 }
0x3e1c   :  { %v5917_v7 = vpop.eup %5916 }
0x3e1d   :  { %v3403_v8 = vadd.f32 1.0, %v5917_v7 }
0x3e1f   :  { %5918 = vrcp.f32 %v3403_v8 }
0x3e29   :  { %v5919_v9 = vpop.eup %5918 }
0x3e2a   :  { %v3411_v14 = vmul.f32 %v5919_v9, %v3409_v13 }
0x3e8d   :  { %v3414_v11 = vpop.permute.xlu1 %3413 }
0x3e8e   :  { %v3416_v12 = vmul.f32 %v5919_v9, %v3414_v11 }
0x3e90   :  { %3418 = vrot.lane.b32.xlu1 %v3416_v12, %s6090_s13 }
0x3f02   :  { %v3419_v15 = vpop.permute.xlu1 %3418 }
0x3f03   :  { %v3421_v16 = vadd.f32 %v3419_v15, %v3411_v14  ;;  %v4897_v15 = vld [vmem:[%s6742_s4 + $0x3] ss:$0 sm:$0xff] }
0x3f05   :  { %5920 = vtanh.f32 %v3421_v16 }
0x3f0f   :  { %v5921_v17 = vpop.eup %5920 }
0x3f10   :  { %3424 = vrot.lane.b32.xlu0 %v5921_v17, %s6090_s13 }
0x3f14   :  { %3431 = vrot.lane.b32.xlu0 %v3421_v16, %s6100_s29  ;;  %v3622_v16 = vcombine.low %v4897_v15, %v4897_v15  ;;  %v3978_v15 = vld [vmem:[#allocation7 + $0x2] sm:$0x3] }
0x3f16   :  { %v3629_v17 = vrot.slane %v3622_v16, %v6208_v10 }
0x3f82   :  { %v3425_v19 = vpop.permute.xlu0 %3424 }
0x3f83   :  { %v3427_v20 = vmul.f32 %v5919_v9, %v3425_v19  ;;  %v3613_v9 = vrot.slane %v3605_v2, %v6208_v10 }
0x3f85   :  { %3438 = vrot.lane.b32.xlu1 %v3427_v20, %s6101_s30 }
0x3f86   :  { %v3432_v22 = vpop.permute.xlu0 %3431 }
0x3f87   :  { %v3434_v23 = vmul.f32 %v3432_v22, %v3428_v18 }
0x3f89   :  { %v3436_v25 = vadd.f32 %v3435_v24, %v3434_v23 }
0x3f8b   :  { %3528 = vrot.lane.b32.xlu0 %v3436_v25, %s6090_s13 }
0x3ff7   :  { %v3439_v31 = vpop.permute.xlu1 %3438 }
0x3ff8   :  { %v3441_v29 = vmul.f32 %v3439_v31, %v3428_v18  ;;  %v3630_v18 = vcombine.low %v3629_v17, %v3629_v17 }
0x3ffa   :  { %v3443_v30 = vadd.f32 %v3442_v28, %v3441_v29  ;;  %3444 = vst.msk [vmem:[#allocation2 + $0xc] sm:$0x3] %vm402_vm2, %v3441_v29 }
0x3ffc   :  { %5399 = vmatmul.mubr.msk.f32.vlgmr.msra.gmra.mrb[26].mxu0 %vm156_vm1, %v3443_v30 }
0x3ffd   :  { %5420 = vmatprep.mubr.msk.f32.mxu0 %vm6098_vm0, %v6099_v4  ;;  %v3529_v41 = vpop.permute.xlu0 %3528  ;;  %5678 = vmatpush3.bf16.msra.mxu0 %v6597_v59 }
0x3ffe   :  { %5679 = vmatprep.subr.bf16.mxu0 %v6097_v3 }
0x4001   :  { %5681 = vmatpush3.bf16.msra.mxu0 %v6600_v60  ;;  %v3573_v5 = vld [vmem:[#allocation2 + $0xc] sm:$0x3] }
0x4002   :  { %5688 = vmatprep.subr.bf16.mxu0 %v6097_v3 }
0x4004   :  { %5421 = vmatmul.mubr.f32.vlgmr.msra.gmra.mrb[28].mxu0 %v6099_v4 }
0x4005   :  { %5690 = vmatpush3.bf16.msra.mxu0 %v6597_v59  ;;  %5442 = vmatprep.mubr.msk.f32.mxu0 %vm6098_vm0, %v6099_v4 }
0x4006   :  { %5691 = vmatprep.subr.bf16.mxu0 %v6097_v3 }
0x4009   :  { %5693 = vmatpush3.bf16.msra.mxu0 %v6600_v60 }
0x400a   :  { %5700 = vmatprep.subr.bf16.mxu0 %v6097_v3 }
0x40cf   :  { %v3515_v36 = vpop.f32.mrb[26].mxu0 }
0x40d0   :  { %v3519_v32 = vadd.f32 %v3515_v36, %v3445_v26  ;;  %v5400_v33 = vpop.f32.mrb[27].mxu0 }
0x40d2   :  { %5922 = vtanh.f32 %v3519_v32  ;;  %v4895_v27 = vmul.f32 -1.442695, %v3519_v32 }
0x40d4   :  { %5924 = vpow2.f32 %v4895_v27 }
0x40d7   :  { %v3830_v13 = vpop.f32.mrb[28].mxu0 }
0x40d8   :  { %v5422_v14 = vpop.f32.mrb[29].mxu0 }
0x40dc   :  { %v5923_v34 = vpop.eup %5922 }
0x40dd   :  { %3533 = vrot.lane.b32.xlu1 %v5923_v34, %s6090_s13 }
0x40de   :  { %v5925_v35 = vpop.eup %5924 }
0x40df   :  { %v3523_v37 = vadd.f32 1.0, %v5925_v35 }
0x40e1   :  { %5926 = vrcp.f32 %v3523_v37 }
0x40eb   :  { %v5927_v38 = vpop.eup %5926 }
0x40ec   :  { %v3531_v42 = vmul.f32 %v5927_v38, %v3529_v41 }
0x414f   :  { %v3534_v39 = vpop.permute.xlu1 %3533 }
0x4150   :  { %v3536_v40 = vmul.f32 %v5927_v38, %v3534_v39 }
0x4152   :  { %3538 = vrot.lane.b32.xlu1 %v3536_v40, %s6090_s13 }
0x41c4   :  { %v3539_v43 = vpop.permute.xlu1 %3538 }
0x41c5   :  { %v3541_v44 = vadd.f32 %v3539_v43, %v3531_v42 }
0x41c7   :  { %5928 = vtanh.f32 %v3541_v44 }
0x41d1   :  { %v5929_v45 = vpop.eup %5928 }
0x41d2   :  { %3544 = vrot.lane.b32.xlu0 %v5929_v45, %s6090_s13  ;;  %v3859_v45 = vld [vmem:[#allocation7] sm:$0x3] }
0x41d3   :  { %v3860_v46 = vsub.f32 1.0, %v3859_v45 }
0x41d5   :  { %v3866_v49 = vmul.f32 0.0, %v3860_v46 }
0x4244   :  { %v3545_v52 = vpop.permute.xlu0 %3544 }
0x4245   :  { %v3547_v53 = vmul.f32 %v5927_v38, %v3545_v52 }
0x4247   :  { %3550 = vrot.lane.b32.xlu1 %v3547_v53, %s6101_s30 }
0x42b9   :  { %v3551_v62 = vpop.permute.xlu1 %3550 }
0x42ba   :  { %v3553_v63 = vmul.f32 %v3551_v62, %v3548_v61 }
0x42bc   :  { %3554 = vst.msk [vmem:[#allocation2 + $0xe] sm:$0x3] %vm402_vm2, %v3553_v63 }
0x42c3   :  { %v3574_v7 = vld [vmem:[#allocation2 + $0xe] sm:$0x3] }
0x42c4   :  { %v3606_v8 = vcombine.low %v3573_v5, %v3574_v7 }
0x42c6   :  { %v3620_v11 = vrot.slane %v3606_v8, %v6208_v10 }
0x42c8   :  { %v3621_v12 = vcombine.low %v3613_v9, %v3620_v11 }
0x42ca   :  { %5410 = vmatmul.mubr.msk.f32.vlgmr.msra.gmra.mrb[26].mxu1 %vm156_vm1, %v3621_v12 }
0x42cb   :  { %5684 = vmatpush3.bf16.msra.mxu1 %v6597_v59  ;;  %5431 = vmatprep.mubr.msk.f32.mxu1 %vm6098_vm0, %v6099_v4 }
0x42cc   :  { %5685 = vmatprep.subr.bf16.mxu1 %v6097_v3 }
0x42cf   :  { %5687 = vmatpush3.bf16.msra.mxu1 %v6600_v60 }
0x42d0   :  { %5694 = vmatprep.subr.bf16.mxu1 %v6097_v3 }
0x439d   :  { %v5411_v19 = vpop.f32.mrb[26].mxu1 }
0x439e   :  { %v3708_v20 = vadd.f32 %v5411_v19, %v3630_v18  ;;  %v3702_v21 = vpop.f32.mrb[27].mxu1 }
0x439f   :  { %v3703_v22 = vadd.f32 %v3702_v21, %v3630_v18  ;;  %v3979_v18 = vsub.f32 1.0, %v3978_v15 }
0x43a0   :  { %v3730_v23 = vcombine.high %v3708_v20, %v3708_v20  ;;  %v3737_v24 = vrot.slane %v3708_v20, %v6208_v10  ;;  %4902 = vst.sshfl [vmem:[#allocation3 + $0x8] sm:$0x3 pattern:$0x76325410] %v3708_v20 }
0x43a1   :  { %v3713_v25 = vcombine.high %v3703_v22, %v3703_v22  ;;  %v3720_v31 = vrot.slane %v3703_v22, %v6208_v10  ;;  %4900 = vst.sshfl [vmem:[#allocation3] sm:$0x3 pattern:$0x76325410] %v3703_v22 }
0x43a2   :  { %v3744_v28 = vrot.slane %v3730_v23, %v6208_v10  ;;  %v3745_v29 = vcombine.high %v3737_v24, %v3737_v24  ;;  %4903 = vst.sshfl [vmem:[#allocation3 + $0xc] sm:$0x3 pattern:$0x76325410] %v3730_v23 }
0x43a3   :  { %v3727_v30 = vrot.slane %v3713_v25, %v6208_v10  ;;  %v3728_v26 = vcombine.high %v3720_v31, %v3720_v31  ;;  %4901 = vst.sshfl [vmem:[#allocation3 + $0x4] sm:$0x3 pattern:$0x76325410] %v3713_v25 }
0x43a4   :  { %v3746_v36 = vcombine.high %v3744_v28, %v3744_v28  ;;  %3760 = vst [vmem:[#allocation3 + $0xa] sm:$0x3] %v3745_v29 }
0x43a5   :  { %v3729_v32 = vcombine.high %v3727_v30, %v3727_v30  ;;  %3756 = vst [vmem:[#allocation3 + $0x2] sm:$0x3] %v3728_v26 }
0x43a6   :  { %3762 = vst [vmem:[#allocation3 + $0xe] sm:$0x3] %v3746_v36 }
0x43a7   :  { %3758 = vst [vmem:[#allocation3 + $0x6] sm:$0x3] %v3729_v32 }
0x43a8   :  { %v3763_v33 = vld [vmem:[#allocation3] sm:$0x3] }
0x43a9   :  { %v3834_v34 = vadd.f32 %v3830_v13, %v3763_v33 }
0x43aa   :  { %v3995_v28 = vld [vmem:[#allocation3 + $0x4] sm:$0x3] }
0x43ab   :  { %5930 = vtanh.f32 %v3834_v34  ;;  %v4904_v35 = vmul.f32 -1.442695, %v3834_v34 }
0x43ac   :  { %v3875_v58 = vld [vmem:[#allocation3 + $0x2] sm:$0x3] }
0x43ad   :  { %5932 = vpow2.f32 %v4904_v35 }
0x43b5   :  { %v5931_v27 = vpop.eup %5930 }
0x43b6   :  { %3844 = vrot.lane.b32.xlu0 %v5931_v27, %s6090_s13 }
0x43b7   :  { %v5933_v37 = vpop.eup %5932 }
0x43b8   :  { %v3838_v38 = vadd.f32 1.0, %v5933_v37 }
0x43ba   :  { %5934 = vrcp.f32 %v3838_v38 }
0x43c4   :  { %v5935_v10 = vpop.eup %5934 }
0x43c5   :  { %v3842_v41 = vmul.f32 0.0, %v5935_v10 }
0x4428   :  { %v3845_v39 = vpop.permute.xlu0 %3844 }
0x4429   :  { %v3847_v40 = vmul.f32 %v5935_v10, %v3845_v39 }
0x442b   :  { %3849 = vrot.lane.b32.xlu1 %v3847_v40, %s6090_s13 }
0x449d   :  { %v3850_v42 = vpop.permute.xlu1 %3849 }
0x449e   :  { %v3852_v43 = vadd.f32 %v3850_v42, %v3842_v41  ;;  %v4098_v42 = vld [vmem:[#allocation7 + $0x4] sm:$0x3] }
0x44a0   :  { %5936 = vtanh.f32 %v3852_v43 }
0x44aa   :  { %v5937_v44 = vpop.eup %5936 }
0x44ab   :  { %3855 = vrot.lane.b32.xlu0 %v5937_v44, %s6090_s13 }
0x44af   :  { %3862 = vrot.lane.b32.xlu0 %v3852_v43, %s6100_s29 }
0x451d   :  { %v3856_v47 = vpop.permute.xlu0 %3855 }
0x451e   :  { %v3858_v48 = vmul.f32 %v5935_v10, %v3856_v47 }
0x4520   :  { %3869 = vrot.lane.b32.xlu1 %v3858_v48, %s6101_s30 }
0x4521   :  { %v3863_v50 = vpop.permute.xlu0 %3862 }
0x4522   :  { %v3865_v51 = vmul.f32 %v3863_v50, %v3859_v45 }
0x4524   :  { %v3867_v52 = vadd.f32 %v3866_v49, %v3865_v51 }
0x4526   :  { %3958 = vrot.lane.b32.xlu0 %v3867_v52, %s6090_s13  ;;  %v3985_v20 = vmul.f32 %v3979_v18, %v3867_v52 }
0x4592   :  { %v3870_v53 = vpop.permute.xlu1 %3869 }
0x4593   :  { %v3872_v55 = vmul.f32 %v3870_v53, %v3859_v45  ;;  %v4099_v45 = vsub.f32 1.0, %v4098_v42 }
0x4595   :  { %v3873_v57 = vadd.f32 %v3872_v55, %v3866_v49  ;;  %3874 = vst.msk [vmem:[#allocation2] sm:$0x3] %vm402_vm2, %v3872_v55  ;;  %v4115_v55 = vld [vmem:[#allocation3 + $0x6] sm:$0x3] }
0x4597   :  { %5432 = vmatmul.mubr.msk.f32.vlgmr.msra.gmra.mrb[28].mxu1 %vm156_vm1, %v3873_v57  ;;  %v3992_v24 = vmul.f32 %v3979_v18, %v3873_v57 }
0x4598   :  { %5696 = vmatpush3.bf16.msra.mxu1 %v6597_v59  ;;  %5453 = vmatprep.mubr.msk.f32.mxu1 %vm6098_vm0, %v6099_v4  ;;  %v3959_v9 = vpop.permute.xlu0 %3958 }
0x4599   :  { %5697 = vmatprep.subr.bf16.mxu1 %v6097_v3 }
0x459c   :  { %5699 = vmatpush3.bf16.msra.mxu1 %v6600_v60 }
0x459d   :  { %5706 = vmatprep.subr.bf16.mxu1 %v6097_v3 }
0x466a   :  { %v3945_v54 = vpop.f32.mrb[28].mxu1 }
0x466b   :  { %v3949_v61 = vadd.f32 %v3945_v54, %v3875_v58  ;;  %v5433_v62 = vpop.f32.mrb[29].mxu1 }
0x466d   :  { %5938 = vtanh.f32 %v3949_v61  ;;  %v4906_v56 = vmul.f32 -1.442695, %v3949_v61 }
0x466f   :  { %5940 = vpow2.f32 %v4906_v56 }
0x4677   :  { %v5939_v63 = vpop.eup %5938 }
0x4678   :  { %3963 = vrot.lane.b32.xlu1 %v5939_v63, %s6090_s13 }
0x4679   :  { %v5941_v1 = vpop.eup %5940 }
0x467a   :  { %v3953_v2 = vadd.f32 1.0, %v5941_v1 }
0x467c   :  { %5942 = vrcp.f32 %v3953_v2 }
0x4686   :  { %v5943_v5 = vpop.eup %5942 }
0x4687   :  { %v3961_v11 = vmul.f32 %v5943_v5, %v3959_v9 }
0x46ea   :  { %v3964_v7 = vpop.permute.xlu1 %3963 }
0x46eb   :  { %v3966_v8 = vmul.f32 %v5943_v5, %v3964_v7 }
0x46ed   :  { %3968 = vrot.lane.b32.xlu1 %v3966_v8, %s6090_s13 }
0x475f   :  { %v3969_v12 = vpop.permute.xlu1 %3968 }
0x4760   :  { %v3971_v13 = vadd.f32 %v3969_v12, %v3961_v11 }
0x4762   :  { %5944 = vtanh.f32 %v3971_v13 }
0x476c   :  { %v5945_v14 = vpop.eup %5944 }
0x476d   :  { %3974 = vrot.lane.b32.xlu0 %v5945_v14, %s6090_s13 }
0x4771   :  { %3981 = vrot.lane.b32.xlu0 %v3971_v13, %s6100_s29  ;;  %v4218_v13 = vld [vmem:[#allocation7 + $0x6] sm:$0x3] }
0x47df   :  { %v3975_v16 = vpop.permute.xlu0 %3974 }
0x47e0   :  { %v3977_v17 = vmul.f32 %v5943_v5, %v3975_v16  ;;  %v4219_v16 = vsub.f32 1.0, %v4218_v13 }
0x47e2   :  { %3988 = vrot.lane.b32.xlu1 %v3977_v17, %s6101_s30 }
0x47e3   :  { %v3982_v19 = vpop.permute.xlu0 %3981 }
0x47e4   :  { %v3984_v21 = vmul.f32 %v3982_v19, %v3978_v15 }
0x47e6   :  { %v3986_v22 = vadd.f32 %v3985_v20, %v3984_v21 }
0x47e8   :  { %4078 = vrot.lane.b32.xlu0 %v3986_v22, %s6090_s13  ;;  %v4105_v47 = vmul.f32 %v4099_v45, %v3986_v22 }
0x4854   :  { %v3989_v23 = vpop.permute.xlu1 %3988 }
0x4855   :  { %v3991_v25 = vmul.f32 %v3989_v23, %v3978_v15 }
0x4857   :  { %v3993_v31 = vadd.f32 %v3992_v24, %v3991_v25  ;;  %3994 = vst.msk [vmem:[#allocation2 + $0x2] sm:$0x3] %vm402_vm2, %v3991_v25  ;;  %v4235_v25 = vld [vmem:[#allocation3 + $0x8] sm:$0x3] }
0x4859   :  { %5443 = vmatmul.mubr.msk.f32.vlgmr.msra.gmra.mrb[30].mxu0 %vm156_vm1, %v3993_v31  ;;  %v4112_v51 = vmul.f32 %v4099_v45, %v3993_v31 }
0x485a   :  { %5702 = vmatpush3.bf16.msra.mxu0 %v6597_v59  ;;  %5464 = vmatprep.mubr.msk.f32.mxu0 %vm6098_vm0, %v6099_v4  ;;  %v4079_v38 = vpop.permute.xlu0 %4078 }
0x485b   :  { %5703 = vmatprep.subr.bf16.mxu0 %v6097_v3 }
0x485e   :  { %5705 = vmatpush3.bf16.msra.mxu0 %v6600_v60 }
0x485f   :  { %5712 = vmatprep.subr.bf16.mxu0 %v6097_v3 }
0x492c   :  { %v4065_v29 = vpop.f32.mrb[30].mxu0 }
0x492d   :  { %v4069_v30 = vadd.f32 %v4065_v29, %v3995_v28  ;;  %v5444_v26 = vpop.f32.mrb[31].mxu0 }
0x492f   :  { %5946 = vtanh.f32 %v4069_v30  ;;  %v4908_v32 = vmul.f32 -1.442695, %v4069_v30 }
0x4931   :  { %5948 = vpow2.f32 %v4908_v32 }
0x4939   :  { %v5947_v36 = vpop.eup %5946 }
0x493a   :  { %4083 = vrot.lane.b32.xlu1 %v5947_v36, %s6090_s13 }
0x493b   :  { %v5949_v33 = vpop.eup %5948 }
0x493c   :  { %v4073_v34 = vadd.f32 1.0, %v5949_v33 }
0x493e   :  { %5950 = vrcp.f32 %v4073_v34 }
0x4948   :  { %v5951_v27 = vpop.eup %5950 }
0x4949   :  { %v4081_v10 = vmul.f32 %v5951_v27, %v4079_v38 }
0x49ac   :  { %v4084_v35 = vpop.permute.xlu1 %4083 }
0x49ad   :  { %v4086_v37 = vmul.f32 %v5951_v27, %v4084_v35 }
0x49af   :  { %4088 = vrot.lane.b32.xlu1 %v4086_v37, %s6090_s13 }
0x4a21   :  { %v4089_v39 = vpop.permute.xlu1 %4088 }
0x4a22   :  { %v4091_v40 = vadd.f32 %v4089_v39, %v4081_v10 }
0x4a24   :  { %5952 = vtanh.f32 %v4091_v40 }
0x4a2e   :  { %v5953_v41 = vpop.eup %5952 }
0x4a2f   :  { %4094 = vrot.lane.b32.xlu0 %v5953_v41, %s6090_s13 }
0x4a33   :  { %4101 = vrot.lane.b32.xlu0 %v4091_v40, %s6100_s29  ;;  %v4338_v40 = vld [vmem:[#allocation7 + $0x8] sm:$0x3] }
0x4aa1   :  { %v4095_v43 = vpop.permute.xlu0 %4094 }
0x4aa2   :  { %v4097_v44 = vmul.f32 %v5951_v27, %v4095_v43  ;;  %v4339_v43 = vsub.f32 1.0, %v4338_v40 }
0x4aa4   :  { %4108 = vrot.lane.b32.xlu1 %v4097_v44, %s6101_s30 }
0x4aa5   :  { %v4102_v46 = vpop.permute.xlu0 %4101 }
0x4aa6   :  { %v4104_v48 = vmul.f32 %v4102_v46, %v4098_v42 }
0x4aa8   :  { %v4106_v49 = vadd.f32 %v4105_v47, %v4104_v48 }
0x4aaa   :  { %4198 = vrot.lane.b32.xlu0 %v4106_v49, %s6090_s13  ;;  %v4225_v18 = vmul.f32 %v4219_v16, %v4106_v49 }
0x4b16   :  { %v4109_v50 = vpop.permute.xlu1 %4108 }
0x4b17   :  { %v4111_v52 = vmul.f32 %v4109_v50, %v4098_v42 }
0x4b19   :  { %v4113_v53 = vadd.f32 %v4112_v51, %v4111_v52  ;;  %4114 = vst.msk [vmem:[#allocation2 + $0x4] sm:$0x3] %vm402_vm2, %v4111_v52  ;;  %v4355_v52 = vld [vmem:[#allocation3 + $0xa] sm:$0x3] }
0x4b1b   :  { %5454 = vmatmul.mubr.msk.f32.vlgmr.msra.gmra.mrb[30].mxu1 %vm156_vm1, %v4113_v53  ;;  %v4232_v22 = vmul.f32 %v4219_v16, %v4113_v53 }
0x4b1c   :  { %5708 = vmatpush3.bf16.msra.mxu1 %v6597_v59  ;;  %5475 = vmatprep.mubr.msk.f32.mxu1 %vm6098_vm0, %v6099_v4  ;;  %v4199_v7 = vpop.permute.xlu0 %4198 }
0x4b1d   :  { %5709 = vmatprep.subr.bf16.mxu1 %v6097_v3 }
0x4b20   :  { %5711 = vmatpush3.bf16.msra.mxu1 %v6600_v60 }
0x4b21   :  { %5718 = vmatprep.subr.bf16.mxu1 %v6097_v3 }
0x4bee   :  { %v4185_v57 = vpop.f32.mrb[30].mxu1 }
0x4bef   :  { %v4189_v58 = vadd.f32 %v4185_v57, %v4115_v55  ;;  %v5455_v54 = vpop.f32.mrb[31].mxu1 }
0x4bf1   :  { %5954 = vtanh.f32 %v4189_v58  ;;  %v4910_v62 = vmul.f32 -1.442695, %v4189_v58 }
0x4bf3   :  { %5956 = vpow2.f32 %v4910_v62 }
0x4bfb   :  { %v5955_v61 = vpop.eup %5954 }
0x4bfc   :  { %4203 = vrot.lane.b32.xlu1 %v5955_v61, %s6090_s13 }
0x4bfd   :  { %v5957_v63 = vpop.eup %5956 }
0x4bfe   :  { %v4193_v56 = vadd.f32 1.0, %v5957_v63 }
0x4c00   :  { %5958 = vrcp.f32 %v4193_v56 }
0x4c0a   :  { %v5959_v1 = vpop.eup %5958 }
0x4c0b   :  { %v4201_v8 = vmul.f32 %v5959_v1, %v4199_v7 }
0x4c6e   :  { %v4204_v2 = vpop.permute.xlu1 %4203 }
0x4c6f   :  { %v4206_v5 = vmul.f32 %v5959_v1, %v4204_v2 }
0x4c71   :  { %4208 = vrot.lane.b32.xlu1 %v4206_v5, %s6090_s13  ;;  %v4458_v5 = vld [vmem:[#allocation7 + $0xa] sm:$0x3] }
0x4ce3   :  { %v4209_v9 = vpop.permute.xlu1 %4208 }
0x4ce4   :  { %v4211_v11 = vadd.f32 %v4209_v9, %v4201_v8  ;;  %v4459_v9 = vsub.f32 1.0, %v4458_v5 }
0x4ce6   :  { %5960 = vtanh.f32 %v4211_v11 }
0x4cf0   :  { %v5961_v12 = vpop.eup %5960 }
0x4cf1   :  { %4214 = vrot.lane.b32.xlu0 %v5961_v12, %s6090_s13 }
0x4cf5   :  { %4221 = vrot.lane.b32.xlu0 %v4211_v11, %s6100_s29 }
0x4d63   :  { %v4215_v14 = vpop.permute.xlu0 %4214 }
0x4d64   :  { %v4217_v15 = vmul.f32 %v5959_v1, %v4215_v14 }
0x4d66   :  { %4228 = vrot.lane.b32.xlu1 %v4217_v15, %s6101_s30 }
0x4d67   :  { %v4222_v17 = vpop.permute.xlu0 %4221 }
0x4d68   :  { %v4224_v19 = vmul.f32 %v4222_v17, %v4218_v13 }
0x4d6a   :  { %v4226_v20 = vadd.f32 %v4225_v18, %v4224_v19  ;;  %v4475_v19 = vld [vmem:[#allocation3 + $0xc] sm:$0x3] }
0x4d6c   :  { %4318 = vrot.lane.b32.xlu0 %v4226_v20, %s6090_s13  ;;  %v4345_v46 = vmul.f32 %v4339_v43, %v4226_v20 }
0x4dd8   :  { %v4229_v21 = vpop.permute.xlu1 %4228 }
0x4dd9   :  { %v4231_v23 = vmul.f32 %v4229_v21, %v4218_v13 }
0x4ddb   :  { %v4233_v24 = vadd.f32 %v4232_v22, %v4231_v23  ;;  %4234 = vst.msk [vmem:[#allocation2 + $0x6] sm:$0x3] %vm402_vm2, %v4231_v23 }
0x4ddd   :  { %5465 = vmatmul.mubr.msk.f32.vlgmr.msra.gmra.mrb[32].mxu0 %vm156_vm1, %v4233_v24  ;;  %v4352_v49 = vmul.f32 %v4339_v43, %v4233_v24 }
0x4dde   :  { %5714 = vmatpush3.bf16.msra.mxu0 %v6597_v59  ;;  %5486 = vmatprep.mubr.msk.f32.mxu0 %vm6098_vm0, %v6099_v4  ;;  %v4319_v35 = vpop.permute.xlu0 %4318 }
0x4ddf   :  { %5715 = vmatprep.subr.bf16.mxu0 %v6097_v3 }
0x4de2   :  { %5717 = vmatpush3.bf16.msra.mxu0 %v6600_v60 }
0x4eb0   :  { %v4305_v31 = vpop.f32.mrb[32].mxu0 }
0x4eb1   :  { %v4309_v28 = vadd.f32 %v4305_v31, %v4235_v25  ;;  %v5466_v29 = vpop.f32.mrb[33].mxu0 }
0x4eb3   :  { %5962 = vtanh.f32 %v4309_v28  ;;  %v4912_v26 = vmul.f32 -1.442695, %v4309_v28 }
0x4eb5   :  { %5964 = vpow2.f32 %v4912_v26 }
0x4ebd   :  { %v5963_v30 = vpop.eup %5962 }
0x4ebe   :  { %4323 = vrot.lane.b32.xlu1 %v5963_v30, %s6090_s13 }
0x4ebf   :  { %v5965_v36 = vpop.eup %5964 }
0x4ec0   :  { %v4313_v32 = vadd.f32 1.0, %v5965_v36 }
0x4ec2   :  { %5966 = vrcp.f32 %v4313_v32 }
0x4ecc   :  { %v5967_v33 = vpop.eup %5966 }
0x4ecd   :  { %v4321_v37 = vmul.f32 %v5967_v33, %v4319_v35 }
0x4f30   :  { %v4324_v34 = vpop.permute.xlu1 %4323 }
0x4f31   :  { %v4326_v27 = vmul.f32 %v5967_v33, %v4324_v34 }
0x4f33   :  { %4328 = vrot.lane.b32.xlu1 %v4326_v27, %s6090_s13  ;;  %v4578_v27 = vld [vmem:[#allocation7 + $0xc] sm:$0x3] }
0x4fa5   :  { %v4329_v38 = vpop.permute.xlu1 %4328 }
0x4fa6   :  { %v4331_v10 = vadd.f32 %v4329_v38, %v4321_v37  ;;  %v4579_v38 = vsub.f32 1.0, %v4578_v27 }
0x4fa8   :  { %5968 = vtanh.f32 %v4331_v10 }
0x4fb2   :  { %v5969_v39 = vpop.eup %5968 }
0x4fb3   :  { %4334 = vrot.lane.b32.xlu0 %v5969_v39, %s6090_s13 }
0x4fb7   :  { %4341 = vrot.lane.b32.xlu0 %v4331_v10, %s6100_s29 }
0x5025   :  { %v4335_v41 = vpop.permute.xlu0 %4334 }
0x5026   :  { %v4337_v42 = vmul.f32 %v5967_v33, %v4335_v41 }
0x5028   :  { %4348 = vrot.lane.b32.xlu1 %v4337_v42, %s6101_s30 }
0x5029   :  { %v4342_v44 = vpop.permute.xlu0 %4341 }
0x502a   :  { %v4344_v45 = vmul.f32 %v4342_v44, %v4338_v40 }
0x502c   :  { %v4346_v47 = vadd.f32 %v4345_v46, %v4344_v45  ;;  %v4595_v46 = vld [vmem:[#allocation3 + $0xe] sm:$0x3] }
0x502e   :  { %4438 = vrot.lane.b32.xlu0 %v4346_v47, %s6090_s13  ;;  %v4465_v13 = vmul.f32 %v4459_v9, %v4346_v47 }
0x509a   :  { %v4349_v48 = vpop.permute.xlu1 %4348 }
0x509b   :  { %v4351_v50 = vmul.f32 %v4349_v48, %v4338_v40 }
0x509d   :  { %v4353_v51 = vadd.f32 %v4352_v49, %v4351_v50  ;;  %4354 = vst.msk [vmem:[#allocation2 + $0x8] sm:$0x3] %vm402_vm2, %v4351_v50 }
0x509f   :  { %5476 = vmatmul.mubr.msk.f32.vlgmr.msra.gmra.mrb[32].mxu1 %vm156_vm1, %v4353_v51  ;;  %v4472_v16 = vmul.f32 %v4459_v9, %v4353_v51 }
0x50a0   :  { %5720 = vmatpush3.bf16.msra.mxu1 %v6597_v59  ;;  %5497 = vmatprep.mubr.msk.f32.mxu1 %vm6098_vm0, %v6099_v4 }
0x50a1   :  { %5721 = vmatprep.subr.bf16.mxu1 %v6097_v3  ;;  %v4439_v3 = vpop.permute.xlu0 %4438 }
0x50a4   :  { %5723 = vmatpush3.bf16.msra.mxu1 %v6600_v60 }
0x5172   :  { %v4425_v53 = vpop.f32.mrb[32].mxu1 }
0x5173   :  { %v4429_v55 = vadd.f32 %v4425_v53, %v4355_v52  ;;  %v5477_v57 = vpop.f32.mrb[33].mxu1 }
0x5175   :  { %5970 = vtanh.f32 %v4429_v55  ;;  %v4914_v54 = vmul.f32 -1.442695, %v4429_v55 }
0x5177   :  { %5972 = vpow2.f32 %v4914_v54 }
0x517f   :  { %v5971_v58 = vpop.eup %5970 }
0x5180   :  { %4443 = vrot.lane.b32.xlu1 %v5971_v58, %s6090_s13 }
0x5181   :  { %v5973_v61 = vpop.eup %5972 }
0x5182   :  { %v4433_v62 = vadd.f32 1.0, %v5973_v61 }
0x5184   :  { %5974 = vrcp.f32 %v4433_v62 }
0x518e   :  { %v5975_v59 = vpop.eup %5974 }
0x518f   :  { %v4441_v60 = vmul.f32 %v5975_v59, %v4439_v3  ;;  %v4919_v3 = vld [vmem:[%s6743_s5] ss:$0 sm:$0xff] }
0x51f2   :  { %v4444_v63 = vpop.permute.xlu1 %4443 }
0x51f3   :  { %v4446_v4 = vmul.f32 %v5975_v59, %v4444_v63 }
0x51f5   :  { %4448 = vrot.lane.b32.xlu1 %v4446_v4, %s6090_s13  ;;  %v4705_v4 = vld [vmem:[#allocation2] sm:$0x3] }
0x5267   :  { %v4449_v56 = vpop.permute.xlu1 %4448 }
0x5268   :  { %v4451_v1 = vadd.f32 %v4449_v56, %v4441_v60  ;;  %v4720_v60 = vmul.f32 %v4919_v3, %v4705_v4  ;;  %v4707_v56 = vld [vmem:[#allocation2 + $0x4] sm:$0x3] }
0x526a   :  { %5976 = vtanh.f32 %v4451_v1 }
0x5274   :  { %v5977_v2 = vpop.eup %5976 }
0x5275   :  { %4454 = vrot.lane.b32.xlu0 %v5977_v2, %s6090_s13  ;;  %v4722_v2 = vmul.f32 %v4919_v3, %v4707_v56 }
0x5279   :  { %4461 = vrot.lane.b32.xlu0 %v4451_v1, %s6100_s29  ;;  %v4728_v1 = vsel %vm402_vm2, %v4720_v60, 0.0 }
0x52e7   :  { %v4455_v7 = vpop.permute.xlu0 %4454 }
0x52e8   :  { %v4457_v8 = vmul.f32 %v5975_v59, %v4455_v7  ;;  %v4734_v7 = vsel %vm402_vm2, %v4722_v2, 0.0 }
0x52ea   :  { %4468 = vrot.lane.b32.xlu1 %v4457_v8, %s6101_s30 }
0x52eb   :  { %v4462_v11 = vpop.permute.xlu0 %4461 }
0x52ec   :  { %v4464_v12 = vmul.f32 %v4462_v11, %v4458_v5 }
0x52ee   :  { %v4466_v14 = vadd.f32 %v4465_v13, %v4464_v12 }
0x52f0   :  { %4558 = vrot.lane.b32.xlu0 %v4466_v14, %s6090_s13  ;;  %v4585_v40 = vmul.f32 %v4579_v38, %v4466_v14 }
0x535c   :  { %v4469_v15 = vpop.permute.xlu1 %4468 }
0x535d   :  { %v4471_v17 = vmul.f32 %v4469_v15, %v4458_v5  ;;  %v4708_v5 = vld [vmem:[#allocation2 + $0x6] sm:$0x3] }
0x535e   :  { %v4723_v8 = vmul.f32 %v4919_v3, %v4708_v5 }
0x535f   :  { %v4473_v18 = vadd.f32 %v4472_v16, %v4471_v17  ;;  %4474 = vst.msk [vmem:[#allocation2 + $0xa] sm:$0x3] %vm402_vm2, %v4471_v17  ;;  %v4706_v16 = vld [vmem:[#allocation2 + $0x2] sm:$0x3] }
0x5360   :  { %v4737_v11 = vsel %vm402_vm2, %v4723_v8, 0.0  ;;  %v4721_v17 = vmul.f32 %v4919_v3, %v4706_v16 }
0x5361   :  { %5487 = vmatmul.mubr.msk.f32.vlgmr.msra.gmra.mrb[34].mxu0 %vm156_vm1, %v4473_v18  ;;  %v4592_v43 = vmul.f32 %v4579_v38, %v4473_v18  ;;  %v4709_v18 = vld [vmem:[#allocation2 + $0x8] sm:$0x3] }
0x5362   :  { %v4559_v26 = vpop.permute.xlu0 %4558 }
0x5366   :  { %v4710_v9 = vld [vmem:[#allocation2 + $0xa] sm:$0x3] }
0x5367   :  { %v4725_v12 = vmul.f32 %v4919_v3, %v4710_v9 }
0x5369   :  { %v4743_v13 = vsel %vm402_vm2, %v4725_v12, 0.0 }
0x5434   :  { %v4545_v20 = vpop.f32.mrb[34].mxu0 }
0x5435   :  { %v4549_v21 = vadd.f32 %v4545_v20, %v4475_v19  ;;  %v5488_v22 = vpop.f32.mrb[35].mxu0  ;;  %v4731_v19 = vsel %vm402_vm2, %v4721_v17, 0.0  ;;  %v4724_v20 = vmul.f32 %v4919_v3, %v4709_v18 }
0x5437   :  { %5978 = vtanh.f32 %v4549_v21  ;;  %v4916_v24 = vmul.f32 -1.442695, %v4549_v21  ;;  %v4740_v22 = vsel %vm402_vm2, %v4724_v20, 0.0 }
0x5439   :  { %5980 = vpow2.f32 %v4916_v24 }
0x5441   :  { %v5979_v23 = vpop.eup %5978 }
0x5442   :  { %4563 = vrot.lane.b32.xlu1 %v5979_v23, %s6090_s13 }
0x5443   :  { %v5981_v25 = vpop.eup %5980 }
0x5444   :  { %v4553_v31 = vadd.f32 1.0, %v5981_v25  ;;  %v4698_v25 = vld [vmem:[#allocation7 + $0xe] sm:$0x3] }
0x5446   :  { %5982 = vrcp.f32 %v4553_v31 }
0x5450   :  { %v5983_v28 = vpop.eup %5982 }
0x5451   :  { %v4561_v36 = vmul.f32 %v5983_v28, %v4559_v26 }
0x54b4   :  { %v4564_v29 = vpop.permute.xlu1 %4563 }
0x54b5   :  { %v4566_v30 = vmul.f32 %v5983_v28, %v4564_v29 }
0x54b7   :  { %4568 = vrot.lane.b32.xlu1 %v4566_v30, %s6090_s13 }
0x5529   :  { %v4569_v32 = vpop.permute.xlu1 %4568 }
0x552a   :  { %v4571_v33 = vadd.f32 %v4569_v32, %v4561_v36 }
0x552c   :  { %5984 = vtanh.f32 %v4571_v33 }
0x5536   :  { %v5985_v34 = vpop.eup %5984 }
0x5537   :  { %4574 = vrot.lane.b32.xlu0 %v5985_v34, %s6090_s13  ;;  %v4753_v34 = vstv %s6744_s6 }
0x553b   :  { %4581 = vrot.lane.b32.xlu0 %v4571_v33, %s6100_s29  ;;  %v4771_v33 = vand.u32 127, %v117_v0 }
0x55a9   :  { %v4575_v35 = vpop.permute.xlu0 %4574 }
0x55aa   :  { %v4577_v37 = vmul.f32 %v5983_v28, %v4575_v35 }
0x55ac   :  { %4588 = vrot.lane.b32.xlu1 %v4577_v37, %s6101_s30  ;;  %v4774_v37 = vsub.s32 %v4771_v33, %v6205_v6 }
0x55ad   :  { %v4582_v10 = vpop.permute.xlu0 %4581 }
0x55ae   :  { %v4584_v39 = vmul.f32 %v4582_v10, %v4578_v27 }
0x55b0   :  { %v4586_v41 = vadd.f32 %v4585_v40, %v4584_v39 }
0x55b2   :  { %4678 = vrot.lane.b32.xlu0 %v4586_v41, %s6090_s13 }
0x561e   :  { %v4589_v42 = vpop.permute.xlu1 %4588 }
0x561f   :  { %v4591_v44 = vmul.f32 %v4589_v42, %v4578_v27 }
0x5621   :  { %v4593_v45 = vadd.f32 %v4592_v43, %v4591_v44  ;;  %4594 = vst.msk [vmem:[#allocation2 + $0xc] sm:$0x3] %vm402_vm2, %v4591_v44 }
0x5623   :  { %5498 = vmatmul.mubr.msk.f32.vlgmr.msra.gmra.mrb[34].mxu1 %vm156_vm1, %v4593_v45 }
0x5624   :  { %v4679_v54 = vpop.permute.xlu0 %4678 }
0x5628   :  { %v4711_v21 = vld [vmem:[#allocation2 + $0xc] sm:$0x3] }
0x5629   :  { %v4726_v23 = vmul.f32 %v4919_v3, %v4711_v21 }
0x562b   :  { %v4746_v24 = vsel %vm402_vm2, %v4726_v23, 0.0 }
0x56f6   :  { %v4665_v47 = vpop.f32.mrb[34].mxu1 }
0x56f7   :  { %v4669_v48 = vadd.f32 %v4665_v47, %v4595_v46  ;;  %v5499_v49 = vpop.f32.mrb[35].mxu1 }
0x56f9   :  { %5986 = vtanh.f32 %v4669_v48  ;;  %v4918_v51 = vmul.f32 -1.442695, %v4669_v48 }
0x56fb   :  { %5988 = vpow2.f32 %v4918_v51 }
0x5703   :  { %v5987_v50 = vpop.eup %5986 }
0x5704   :  { %4683 = vrot.lane.b32.xlu1 %v5987_v50, %s6090_s13 }
0x5705   :  { %v5989_v52 = vpop.eup %5988 }
0x5706   :  { %v4673_v53 = vadd.f32 1.0, %v5989_v52 }
0x5708   :  { %5990 = vrcp.f32 %v4673_v53 }
0x5712   :  { %v5991_v55 = vpop.eup %5990 }
0x5713   :  { %v4681_v61 = vmul.f32 %v5991_v55, %v4679_v54 }
0x5776   :  { %v4684_v57 = vpop.permute.xlu1 %4683 }
0x5777   :  { %v4686_v58 = vmul.f32 %v5991_v55, %v4684_v57 }
0x5779   :  { %4688 = vrot.lane.b32.xlu1 %v4686_v58, %s6090_s13 }
0x57eb   :  { %v4689_v62 = vpop.permute.xlu1 %4688 }
0x57ec   :  { %v4691_v59 = vadd.f32 %v4689_v62, %v4681_v61 }
0x57ee   :  { %5992 = vtanh.f32 %v4691_v59 }
0x57f8   :  { %v5993_v63 = vpop.eup %5992 }
0x57f9   :  { %4694 = vrot.lane.b32.xlu0 %v5993_v63, %s6090_s13 }
0x5818   :  { %4729 = vadd.xlane.f32.xlu0 %v4728_v1 }
0x581c   :  { %4735 = vadd.xlane.f32.xlu0 %v4734_v7 }
0x5820   :  { %4738 = vadd.xlane.f32.xlu0 %v4737_v11 }
0x5824   :  { %4744 = vadd.xlane.f32.xlu0 %v4743_v13 }
0x586b   :  { %v4695_v14 = vpop.permute.xlu0 %4694 }
0x586c   :  { %v4697_v15 = vmul.f32 %v5991_v55, %v4695_v14 }
0x586e   :  { %4700 = vrot.lane.b32.xlu1 %v4697_v15, %s6101_s30 }
0x5892   :  { %4732 = vadd.xlane.f32.xlu1 %v4731_v19 }
0x5896   :  { %4741 = vadd.xlane.f32.xlu1 %v4740_v22 }
0x589a   :  { %4747 = vadd.xlane.f32.xlu1 %v4746_v24 }
0x58a5   :  { %v4730_v36 = vpop.xlane.xlu0 %4729 }
0x58a6   :  { %v4754_v38 = vadd.f32 %v4753_v34, %v4730_v36 }
0x58a8   :  { %v4775_v42 = vrot.slane %v4754_v38, %v4774_v37 }
0x58a9   :  { %v4736_v27 = vpop.xlane.xlu0 %4735 }
0x58aa   :  { %v4756_v40 = vadd.f32 %v4753_v34, %v4736_v27 }
0x58ac   :  { %v4783_v45 = vrot.slane %v4756_v40, %v4774_v37 }
0x58ad   :  { %v4739_v41 = vpop.xlane.xlu0 %4738 }
0x58ae   :  { %v4757_v43 = vadd.f32 %v4753_v34, %v4739_v41 }
0x58b0   :  { %v4787_v49 = vrot.slane %v4757_v43, %v4774_v37 }
0x58b1   :  { %v4745_v47 = vpop.xlane.xlu0 %4744 }
0x58b2   :  { %v4759_v6 = vadd.f32 %v4753_v34, %v4745_v47 }
0x58b4   :  { %v4795_v58 = vrot.slane %v4759_v6, %v4774_v37 }
0x58e0   :  { %v4701_v31 = vpop.permute.xlu1 %4700 }
0x58e1   :  { %v4703_v28 = vmul.f32 %v4701_v31, %v4698_v25 }
0x58e3   :  { %4704 = vst.msk [vmem:[#allocation2 + $0xe] sm:$0x3] %vm402_vm2, %v4703_v28 }
0x58ea   :  { %v4712_v29 = vld [vmem:[#allocation2 + $0xe] sm:$0x3] }
0x58eb   :  { %v4727_v30 = vmul.f32 %v4919_v3, %v4712_v29 }
0x58ed   :  { %v4749_v26 = vsel %vm402_vm2, %v4727_v30, 0.0 }
0x58ee   :  { %4750 = vadd.xlane.f32.xlu0 %v4749_v26 }
0x591f   :  { %v4733_v32 = vpop.xlane.xlu1 %4732 }
0x5920   :  { %v4755_v35 = vadd.f32 %v4753_v34, %v4733_v32 }
0x5922   :  { %v4779_v10 = vrot.slane %v4755_v35, %v4774_v37 }
0x5923   :  { %v4742_v39 = vpop.xlane.xlu1 %4741 }
0x5924   :  { %v4805_v44 = vsel %vm4804_vm3, %v4779_v10, %v4775_v42  ;;  %v4758_v0 = vadd.f32 %v4753_v34, %v4742_v39 }
0x5925   :  { %v4807_v48 = vsel %vm4806_vm4, %v4783_v45, %v4805_v44 }
0x5926   :  { %v4791_v50 = vrot.slane %v4758_v0, %v4774_v37  ;;  %v4809_v52 = vsel %vm4808_vm5, %v4787_v49, %v4807_v48 }
0x5927   :  { %v4748_v46 = vpop.xlane.xlu1 %4747 }
0x5928   :  { %v4760_v51 = vadd.f32 %v4753_v34, %v4748_v46  ;;  %v4811_v53 = vsel %vm4810_vm6, %v4791_v50, %v4809_v52 }
0x5929   :  { %v4813_v61 = vsel %vm4812_vm7, %v4795_v58, %v4811_v53 }
0x592a   :  { %v4799_v55 = vrot.slane %v4760_v51, %v4774_v37 }
0x592c   :  { %v4815_v59 = vsel %vm4814_vm8, %v4799_v55, %v4813_v61 }
0x597b   :  { %v4751_v57 = vpop.xlane.xlu0 %4750 }
0x597c   :  { %v4761_v54 = vadd.f32 %v4753_v34, %v4751_v57 }
0x597e   :  { %v4803_v62 = vrot.slane %v4761_v54, %v4774_v37 }
0x5980   :  { %v4817_v63 = vsel %vm4816_vm9, %v4803_v62, %v4815_v59 }
0x5981   :  { %4820 = vst.msk [vmem:[%s6745_s7] sm:$0xff] %vm4819_vm10, %v4817_v63 }
0x5982   :  { %4825 = vsyncpa [#allocation6], 1 }
0x5983   :  { %4826 = vsyncpa [#allocation8], 1 }
0x5984   :  { %4827 = vsyncpa [#allocation11], 1 }

</bundles_post_ra>
